<compile_context>
chip_gen: v7x
topology: tpu7x:2x2x1
jax: 0.10.0
libtpu: 0.0.40
codegen_flags: <defaults>
</compile_context>

<pallas_src>
import jax
import jax.numpy as jnp
from jax.experimental import pallas as pl
from jax.experimental.pallas import tpu as pltpu

CG_ITER = 5
_BATCH_ALIGN = 16        # sublane alignment; 16 keeps bf16 batch tiles packed
_TINY = 1e-30            # guards 0/0 on all-zero (padded) batch rows


def _round_up(v, m):
    return ((v + m - 1) // m) * m


def _metainvh_kernel(scal_ref,                                    # (1,) SMEM: laam
                     x_ref, sino_ref, xw1_ref, aw_ref, w2_ref,
                     b1_ref, b2_ref, g_ref, out_ref):
    f32 = jnp.float32
    dot = lambda a, b: jnp.dot(a, b, preferred_element_type=f32)
    tiny = f32(_TINY)

    hidp = b1_ref.shape[1]
    kw = xw1_ref.shape[1] - hidp            # width of the W block inside [W^T | w1]
    lam = scal_ref[0]

    # ---- fused prologue: one bf16 matmul yields W(x) and the CNN hidden pre-act ----
    t = dot(x_ref[...], xw1_ref[...])                     # (Bt, K+HIDp), f32 accum
    wu = t[:, :kw]                                        # CgModule.W(x)
    dnz = jax.nn.relu(wu - lam) - jax.nn.relu(-wu - lam)  # soft threshold
    # rhs = BwAt(sino) + miu * Wt(dnz) as ONE f32 matmul against [A ; miu*W].
    rhs = dot(jnp.concatenate([sino_ref[...], dnz], axis=1), aw_ref[...])
    # CGInitCNN (2-layer MLP stand-in), bf16 operands / f32 accumulation.
    h = jax.nn.relu(t[:, kw:] + b1_ref[...])
    uk0 = dot(h.astype(w2_ref.dtype), w2_ref[...]) + b2_ref[...]

    # ---- CG_alg on the folded Gram operator G = A^T A + miu W^T W ----
    g = g_ref[...]
    dot_g = lambda a: dot(a.astype(g.dtype), g)           # no-op cast for f32 G

    r = dot_g(uk0) - rhs                                  # AWx(uk0, miu) - rhs
    xk = uk0
    p = -r
    rtr = jnp.sum(r * r, axis=1, keepdims=True)
    for _ in range(CG_ITER):                              # static -> unrolled
        q = dot_g(p)                                      # ONE matmul per iteration
        denom = jnp.sum(p * q, axis=1, keepdims=True)     # == pATAp + miu*pWTWp
        alphak = rtr / jnp.maximum(denom, tiny)
        xk = xk + alphak * p
        r = r + alphak * q
        rtr_new = jnp.sum(r * r, axis=1, keepdims=True)
        betak = rtr_new / jnp.maximum(rtr, tiny)
        p = -r + betak * p
        rtr = rtr_new
    q = dot_g(p)                                          # trailing half-step
    denom = jnp.sum(p * q, axis=1, keepdims=True)
    out_ref[...] = xk + (rtr / jnp.maximum(denom, tiny)) * p


def _prep_operands(A, Wm, w1, b1, w2, b2, miu):
    """Fold/stack the operators once per call (plain XLA)."""
    f32 = jnp.float32
    hp = jax.lax.Precision.HIGHEST
    A = A.astype(f32)
    Wm = Wm.astype(f32)
    w1 = w1.astype(f32)
    w2 = w2.astype(f32)
    hid = w1.shape[1]
    hidp = max(128, _round_up(hid, 128))          # lane-dense CNN hidden width
    w1p = jnp.pad(w1, ((0, 0), (0, hidp - hid)))
    b1p = jnp.pad(b1.astype(f32).reshape(1, -1), ((0, 0), (0, hidp - hid)))
    w2p = jnp.pad(w2, ((0, hidp - hid), (0, 0)))
    # x @ [W^T | w1] -> [W(x) | CNN hidden pre-activation]   (bf16 operands)
    xw1 = jnp.concatenate([Wm.T, w1p], axis=1).astype(jnp.bfloat16)
    # [sino | dnz] @ [A ; miu*W] -> BwAt(sino) + miu*Wt(dnz)  (kept f32)
    aw = jnp.concatenate([A, f32(miu) * Wm], axis=0)
    # Gram operator in true f32 (explicit precision so XLA's default cannot
    # silently truncate the f32 matmuls to bf16 passes).
    G = (jnp.dot(A.T, A, precision=hp)
         + f32(miu) * jnp.dot(Wm.T, Wm, precision=hp))
    return xw1, aw, w2p.astype(jnp.bfloat16), b1p, b2.astype(f32).reshape(1, -1), G


def metainvh_forward(x_img, sino, A, Wm, w1, b1, w2, b2, laam, miu,
                     *, b_tile_max=256, g_dtype=jnp.float32):
    """x_img: (B,1,H,W) NCHW; sino: (B,M). Returns (B,1,H,W)."""
    B, C, H, Wd = x_img.shape
    assert C == 1
    N = H * Wd
    M = sino.shape[-1]
    K = Wm.shape[0]

    xw1, aw, w2p, b1p, b2p, G = _prep_operands(A, Wm, w1, b1, w2, b2, miu)
    G = G.astype(g_dtype)        # bf16 trial knob (halves G VMEM); default f32
    hidp = b1p.shape[1]
    mk = aw.shape[0]

    x_flat = x_img.reshape(B, N).astype(jnp.bfloat16)   # only feeds the bf16 fused matmul
    sino_flat = sino.reshape(B, M).astype(jnp.float32)

    # --- batch tiling: one big tile when B is small, 256-row tiles otherwise ---
    Bp = _round_up(B, _BATCH_ALIGN)
    b_tile = min(_round_up(b_tile_max, _BATCH_ALIGN), Bp)
    Bp = _round_up(Bp, b_tile)
    nb = Bp // b_tile
    try:   # v7x has 2 TensorCores/chip: prefer an even number of parallel batch tiles
        two_tc = "v7" in jax.devices()[0].device_kind.lower()
    except Exception:
        two_tc = False
    if two_tc:
        if nb == 1 and b_tile % 32 == 0:
            b_tile //= 2
            nb = 2
        elif nb > 1 and nb % 2 == 1:
            Bp += b_tile          # one extra (all-padding) tile keeps both cores busy
            nb += 1
    if Bp != B:
        x_flat = jnp.pad(x_flat, ((0, Bp - B), (0, 0)))
        sino_flat = jnp.pad(sino_flat, ((0, Bp - B), (0, 0)))

    scal = jnp.asarray([laam], dtype=jnp.float32)

    # index_maps receive the scalar-prefetch ref (laam) as a trailing arg.
    tile_map = lambda i, s: (i, 0)
    full_map = lambda i, s: (0, 0)

    # --- VMEM sizing: weights resident (ideally once) + double-buffered tiles ---
    wbytes = sum(int(a.size) * a.dtype.itemsize for a in (xw1, aw, w2p, b1p, b2p, G))
    tbytes = b_tile * N * 2 + b_tile * M * 4 + b_tile * N * 4   # x(bf16)+sino+out per buf
    try:
        phys_vmem = int(pltpu.get_tpu_info().vmem_capacity_bytes)
    except Exception:
        phys_vmem = 64 * 1024 * 1024      # conservative (v7x per-core VMEM)

    mm = lambda m, k, n: 2 * m * k * n
    flops = (mm(Bp, N, K + hidp) + mm(Bp, mk, N) + mm(Bp, hidp, N)
             + (CG_ITER + 2) * mm(Bp, N, N))
    bytes_accessed = int(x_flat.size * 2 + sino_flat.size * 4 + Bp * N * 4 + wbytes)

    def call(single_buffer_weights):
        if single_buffer_weights:
            # Batch-invariant operands: constant index_map, so the default 2-deep
            # buffering only doubles their VMEM residency; keep a single buffer.
            wspec = lambda shape: pl.BlockSpec(shape, full_map,
                                               pipeline_mode=pl.Buffered(1))
            wcopies = 1
        else:
            wspec = lambda shape: pl.BlockSpec(shape, full_map)
            wcopies = 2
        vmem_limit = min(
            max(int(1.25 * (wcopies * wbytes + 2 * tbytes)) + (8 << 20), 32 << 20),
            int(0.9 * phys_vmem))

        grid_spec = pltpu.PrefetchScalarGridSpec(
            num_scalar_prefetch=1,
            grid=(nb,),
            in_specs=[
                pl.BlockSpec((b_tile, N), tile_map),    # x (bf16)
                pl.BlockSpec((b_tile, M), tile_map),    # sino (f32)
                wspec((N, K + hidp)),                   # [W^T | w1]  (bf16)
                wspec((mk, N)),                         # [A ; miu*W] (f32)
                wspec((hidp, N)),                       # w2 (bf16)
                wspec((1, hidp)),                       # b1
                wspec((1, N)),                          # b2
                wspec((N, N)),                          # G
            ],
            out_specs=pl.BlockSpec((b_tile, N), tile_map),
        )
        out = pl.pallas_call(
            _metainvh_kernel,
            out_shape=jax.ShapeDtypeStruct((Bp, N), jnp.float32),
            grid_spec=grid_spec,
            compiler_params=pltpu.CompilerParams(
                dimension_semantics=("parallel",),
                vmem_limit_bytes=vmem_limit),
            cost_estimate=pl.CostEstimate(
                flops=int(flops), transcendentals=0,
                bytes_accessed=bytes_accessed),
        )(scal, x_flat, sino_flat, xw1, aw, w2p, b1p, b2p, G)
        return jax.block_until_ready(out)

    if hasattr(pl, "Buffered"):
        try:
            out = call(True)
        except Exception:
            out = call(False)    # Buffered(1)/pipeline_mode unsupported -> default buffering
    else:
        out = call(False)

    return out[:B].reshape(B, 1, H, Wd)


def _reference_matched(x_img, sino, prepped, laam):
    """Pure-JAX reference with the kernel's exact precision policy (plumbing check)."""
    xw1, aw, w2p, b1p, b2p, G = prepped
    B = x_img.shape[0]
    dot = lambda a, b: jnp.dot(a, b, preferred_element_type=jnp.float32)
    tiny = jnp.float32(_TINY)
    hidp = b1p.shape[1]
    kw = xw1.shape[1] - hidp
    lam = jnp.float32(laam)

    x = x_img.reshape(B, -1).astype(jnp.bfloat16)
    s = sino.reshape(B, -1).astype(jnp.float32)
    t = dot(x, xw1)
    wu = t[:, :kw]
    dnz = jax.nn.relu(wu - lam) - jax.nn.relu(-wu - lam)
    rhs = dot(jnp.concatenate([s, dnz], axis=1), aw)
    h = jax.nn.relu(t[:, kw:] + b1p)
    uk0 = dot(h.astype(w2p.dtype), w2p) + b2p
    dot_g = lambda a: dot(a.astype(G.dtype), G)

    r = dot_g(uk0) - rhs
    xk, p = uk0, -r
    rtr = jnp.sum(r * r, axis=1, keepdims=True)
    for _ in range(CG_ITER):
        q = dot_g(p)
        denom = jnp.sum(p * q, axis=1, keepdims=True)
        a_k = rtr / jnp.maximum(denom, tiny)
        xk = xk + a_k * p
        r = r + a_k * q
        rtr_new = jnp.sum(r * r, axis=1, keepdims=True)
        b_k = rtr_new / jnp.maximum(rtr, tiny)
        p = -r + b_k * p
        rtr = rtr_new
    q = dot_g(p)
    denom = jnp.sum(p * q, axis=1, keepdims=True)
    out = xk + (rtr / jnp.maximum(denom, tiny)) * p
    return out.reshape(x_img.shape)


def _reference_torch_order(x_img, sino, A, Wm, w1, b1, w2, b2, laam, miu):
    """Pure-JAX f32 reference mirroring the original PyTorch op order/precision."""
    hp = jax.lax.Precision.HIGHEST
    dot = lambda a, b: jnp.dot(a, b, precision=hp)
    B = x_img.shape[0]
    x = x_img.reshape(B, -1)
    s = sino.reshape(B, -1)

    W_op = lambda u: dot(u, Wm.T)
    Wt_op = lambda v: dot(v, Wm)
    A_op = lambda u: dot(u, A.T)
    At_op = lambda v: dot(v, A)
    AWx = lambda u, mu: At_op(A_op(u)) + mu * Wt_op(W_op(u))
    pATAp = lambda p: jnp.sum(A_op(p) ** 2, axis=1, keepdims=True)
    pWTWp = lambda p, mu: mu * jnp.sum(W_op(p) ** 2, axis=1, keepdims=True)

    Wu = W_op(x)
    dnz = jax.nn.relu(Wu - laam) - jax.nn.relu(-Wu - laam)
    rhs = At_op(s) + Wt_op(dnz) * miu
    h = jax.nn.relu(dot(x, w1) + b1)
    uk0 = dot(h, w2) + b2
    res = AWx(uk0, miu) - rhs

    xk, r, p = uk0, res, -res
    for _ in range(CG_ITER):
        rTr = jnp.sum(r * r, axis=1, keepdims=True)
        alphak = rTr / (pWTWp(p, miu) + pATAp(p))
        xk = xk + alphak * p
        r = r + alphak * AWx(p, miu)
        betak = jnp.sum(r * r, axis=1, keepdims=True) / rTr
        p = -r + betak * p
    rTr = jnp.sum(r * r, axis=1, keepdims=True)
    alphak = rTr / (pWTWp(p, miu) + pATAp(p))
    return (xk + alphak * p).reshape(x_img.shape)


if __name__ == "__main__":
    # Small deterministic problem sizes.
    B, H, Wd = 2, 16, 16
    N = H * Wd            # 256
    M = 128               # sinogram samples
    K = 256               # sparsifying-transform output size
    HID = 32              # CGInitCNN hidden width (zero-padded to 128 in the wrapper)

    key = jax.random.PRNGKey(0)
    kx, ks, kA, kW, k1, k2 = jax.random.split(key, 6)

    x_img = jax.random.normal(kx, (B, 1, H, Wd), dtype=jnp.float32)
    sino = jax.random.normal(ks, (B, M), dtype=jnp.float32)

    # TODO(synk): CgModule / CGInitCNN are external runtime modules in the
    # original code; synthesized here as deterministic dense operators / MLP.
    A = jax.random.normal(kA, (M, N), dtype=jnp.float32) / jnp.sqrt(N)
    Wm = jax.random.normal(kW, (K, N), dtype=jnp.float32) / jnp.sqrt(N)
    w1 = jax.random.normal(k1, (N, HID), dtype=jnp.float32) / jnp.sqrt(N)
    b1 = jnp.zeros((1, HID), dtype=jnp.float32)
    w2 = jax.random.normal(k2, (HID, N), dtype=jnp.float32) / jnp.sqrt(HID)
    b2 = jnp.zeros((1, N), dtype=jnp.float32)

    laam = 0.05
    miu = 0.1

    img = metainvh_forward(x_img, sino, A, Wm, w1, b1, w2, b2, laam, miu)
    img = jax.block_until_ready(img)

    assert img.shape == (B, 1, H, Wd)
    assert bool(jnp.all(jnp.isfinite(img)))

    # Tight check: same math / same precision policy in plain JAX (isolates
    # kernel plumbing from the intended bf16-operand policy).
    prepped = _prep_operands(A, Wm, w1, b1, w2, b2, miu)
    ref_m = _reference_matched(x_img, sino, prepped, laam)
    assert bool(jnp.allclose(img, ref_m, atol=2e-3, rtol=2e-3))

    # Loose semantic check vs. the original-op-order full-f32 reference; the
    # tolerance bounds the intended bf16-operand drift of the prologue/CNN
    # (analysis: ~1e-2 worst-case at these shapes).
    ref_f = _reference_torch_order(x_img, sino, A, Wm, w1, b1, w2, b2, laam, miu)
    assert bool(jnp.allclose(img, ref_f, atol=5e-2, rtol=5e-2))

    print("KERNEL_OK")
</pallas_src>

<mosaic_0001>
module attributes {stable_mosaic.version = 11 : i64} {
  func.func @_metainvh_kernel(%arg0: i32, %arg1: memref<1xf32, #tpu.memory_space<smem>>, %arg2: memref<16x256xbf16, #tpu.memory_space<vmem>>, %arg3: memref<16x128xf32, #tpu.memory_space<vmem>>, %arg4: memref<256x384xbf16, #tpu.memory_space<vmem>>, %arg5: memref<384x256xf32, #tpu.memory_space<vmem>>, %arg6: memref<128x256xbf16, #tpu.memory_space<vmem>>, %arg7: memref<1x128xf32, #tpu.memory_space<vmem>>, %arg8: memref<1x256xf32, #tpu.memory_space<vmem>>, %arg9: memref<256x256xf32, #tpu.memory_space<vmem>>, %arg10: memref<16x256xf32, #tpu.memory_space<vmem>>) attributes {dimension_semantics = [#tpu.dimension_semantics<parallel>], iteration_bounds = array<i64: 1>, scalar_prefetch = 1 : i64, scratch_operands = 0 : i64, tpu.core_type = #tpu.core_type<tc>, window_params = [{transform_indices = @transform_0, window_bounds = array<i64: 16, 256>}, {transform_indices = @transform_1, window_bounds = array<i64: 16, 128>}, {pipeline_mode = #tpu.pipeline_mode<synchronous>, transform_indices = @transform_2, window_bounds = array<i64: 256, 384>}, {pipeline_mode = #tpu.pipeline_mode<synchronous>, transform_indices = @transform_3, window_bounds = array<i64: 384, 256>}, {pipeline_mode = #tpu.pipeline_mode<synchronous>, transform_indices = @transform_4, window_bounds = array<i64: 128, 256>}, {pipeline_mode = #tpu.pipeline_mode<synchronous>, transform_indices = @transform_5, window_bounds = array<i64: 1, 128>}, {pipeline_mode = #tpu.pipeline_mode<synchronous>, transform_indices = @transform_6, window_bounds = array<i64: 1, 256>}, {pipeline_mode = #tpu.pipeline_mode<synchronous>, transform_indices = @transform_7, window_bounds = array<i64: 256, 256>}, {transform_indices = @transform_8, window_bounds = array<i64: 16, 256>}]} {
    %c0 = arith.constant 0 : index
    %0 = memref.load %arg1[%c0] : memref<1xf32, #tpu.memory_space<smem>>
    %c0_0 = arith.constant 0 : index
    %c0_1 = arith.constant 0 : index
    %1 = vector.load %arg2[%c0_0, %c0_1] : memref<16x256xbf16, #tpu.memory_space<vmem>>, vector<16x256xbf16>
    %c0_2 = arith.constant 0 : index
    %c0_3 = arith.constant 0 : index
    %2 = vector.load %arg4[%c0_2, %c0_3] : memref<256x384xbf16, #tpu.memory_space<vmem>>, vector<256x384xbf16>
    %cst = arith.constant dense<0.000000e+00> : vector<16x384xf32>
    %3 = tpu.matmul %1, %2, %cst {dimension_numbers = #tpu.dot_dimension_numbers<[1], [0], [0], [1], [0, 0, 1, 1], [], []>} : vector<16x256xbf16>, vector<256x384xbf16>, vector<16x384xf32> -> vector<16x384xf32>
    %4 = vector.extract_strided_slice %3 {offsets = [0, 0], sizes = [16, 256], strides = [1, 1]} : vector<16x384xf32> to vector<16x256xf32>
    %5 = vector.broadcast %0 : f32 to vector<16x256xf32>
    %6 = arith.subf %4, %5 : vector<16x256xf32>
    %cst_4 = arith.constant 0.000000e+00 : f32
    %7 = vector.broadcast %cst_4 : f32 to vector<16x256xf32>
    %8 = arith.maximumf %6, %7 : vector<16x256xf32>
    %cst_5 = arith.constant 0.000000e+00 : f32
    %9 = vector.broadcast %cst_5 : f32 to vector<16x256xf32>
    %10 = arith.subf %9, %4 : vector<16x256xf32>
    %11 = vector.broadcast %0 : f32 to vector<16x256xf32>
    %12 = arith.subf %10, %11 : vector<16x256xf32>
    %cst_6 = arith.constant 0.000000e+00 : f32
    %13 = vector.broadcast %cst_6 : f32 to vector<16x256xf32>
    %14 = arith.maximumf %12, %13 : vector<16x256xf32>
    %15 = arith.subf %8, %14 : vector<16x256xf32>
    %c0_7 = arith.constant 0 : index
    %c0_8 = arith.constant 0 : index
    %16 = vector.load %arg3[%c0_7, %c0_8] : memref<16x128xf32, #tpu.memory_space<vmem>>, vector<16x128xf32>
    %17 = tpu.concatenate %16, %15 in 1 : vector<16x128xf32>, vector<16x256xf32> -> vector<16x384xf32>
    %c0_9 = arith.constant 0 : index
    %c0_10 = arith.constant 0 : index
    %18 = vector.load %arg5[%c0_9, %c0_10] : memref<384x256xf32, #tpu.memory_space<vmem>>, vector<384x256xf32>
    %cst_11 = arith.constant dense<0.000000e+00> : vector<16x256xf32>
    %19 = tpu.matmul %17, %18, %cst_11 {dimension_numbers = #tpu.dot_dimension_numbers<[1], [0], [0], [1], [0, 0, 1, 1], [], []>} : vector<16x384xf32>, vector<384x256xf32>, vector<16x256xf32> -> vector<16x256xf32>
    %20 = vector.extract_strided_slice %3 {offsets = [0, 256], sizes = [16, 128], strides = [1, 1]} : vector<16x384xf32> to vector<16x128xf32>
    %c0_12 = arith.constant 0 : index
    %c0_13 = arith.constant 0 : index
    %21 = vector.load %arg7[%c0_12, %c0_13] : memref<1x128xf32, #tpu.memory_space<vmem>>, vector<1x128xf32>
    %22 = vector.broadcast %21 : vector<1x128xf32> to vector<16x128xf32>
    %23 = arith.addf %20, %22 : vector<16x128xf32>
    %cst_14 = arith.constant 0.000000e+00 : f32
    %24 = vector.broadcast %cst_14 : f32 to vector<16x128xf32>
    %25 = arith.maximumf %23, %24 : vector<16x128xf32>
    %26 = arith.truncf %25 : vector<16x128xf32> to vector<16x128xbf16>
    %c0_15 = arith.constant 0 : index
    %c0_16 = arith.constant 0 : index
    %27 = vector.load %arg6[%c0_15, %c0_16] : memref<128x256xbf16, #tpu.memory_space<vmem>>, vector<128x256xbf16>
    %cst_17 = arith.constant dense<0.000000e+00> : vector<16x256xf32>
    %28 = tpu.matmul %26, %27, %cst_17 {dimension_numbers = #tpu.dot_dimension_numbers<[1], [0], [0], [1], [0, 0, 1, 1], [], []>} : vector<16x128xbf16>, vector<128x256xbf16>, vector<16x256xf32> -> vector<16x256xf32>
    %c0_18 = arith.constant 0 : index
    %c0_19 = arith.constant 0 : index
    %29 = vector.load %arg8[%c0_18, %c0_19] : memref<1x256xf32, #tpu.memory_space<vmem>>, vector<1x256xf32>
    %30 = vector.broadcast %29 : vector<1x256xf32> to vector<16x256xf32>
    %31 = arith.addf %28, %30 : vector<16x256xf32>
    %c0_20 = arith.constant 0 : index
    %c0_21 = arith.constant 0 : index
    %32 = vector.load %arg9[%c0_20, %c0_21] : memref<256x256xf32, #tpu.memory_space<vmem>>, vector<256x256xf32>
    %cst_22 = arith.constant dense<0.000000e+00> : vector<16x256xf32>
    %33 = tpu.matmul %31, %32, %cst_22 {dimension_numbers = #tpu.dot_dimension_numbers<[1], [0], [0], [1], [0, 0, 1, 1], [], []>} : vector<16x256xf32>, vector<256x256xf32>, vector<16x256xf32> -> vector<16x256xf32>
    %34 = arith.subf %33, %19 : vector<16x256xf32>
    %cst_23 = arith.constant 0.000000e+00 : f32
    %35 = vector.broadcast %cst_23 : f32 to vector<16x256xf32>
    %36 = arith.subf %35, %34 : vector<16x256xf32>
    %37 = arith.mulf %34, %34 : vector<16x256xf32>
    %cst_24 = arith.constant dense<0.000000e+00> : vector<16xf32>
    %38 = vector.multi_reduction <add>, %37, %cst_24 [1] : vector<16x256xf32> to vector<16xf32>
    %39 = vector.shape_cast %38 : vector<16xf32> to vector<16x1xf32>
    %cst_25 = arith.constant dense<0.000000e+00> : vector<16x256xf32>
    %40 = tpu.matmul %36, %32, %cst_25 {dimension_numbers = #tpu.dot_dimension_numbers<[1], [0], [0], [1], [0, 0, 1, 1], [], []>} : vector<16x256xf32>, vector<256x256xf32>, vector<16x256xf32> -> vector<16x256xf32>
    %41 = arith.mulf %36, %40 : vector<16x256xf32>
    %cst_26 = arith.constant dense<0.000000e+00> : vector<16xf32>
    %42 = vector.multi_reduction <add>, %41, %cst_26 [1] : vector<16x256xf32> to vector<16xf32>
    %43 = vector.shape_cast %42 : vector<16xf32> to vector<16x1xf32>
    %cst_27 = arith.constant 1.000000e-30 : f32
    %44 = vector.broadcast %cst_27 : f32 to vector<16x1xf32>
    %45 = arith.maximumf %43, %44 : vector<16x1xf32>
    %46 = arith.divf %39, %45 : vector<16x1xf32>
    %47 = vector.broadcast %46 : vector<16x1xf32> to vector<16x256xf32>
    %48 = arith.mulf %47, %36 : vector<16x256xf32>
    %49 = arith.addf %31, %48 : vector<16x256xf32>
    %50 = vector.broadcast %46 : vector<16x1xf32> to vector<16x256xf32>
    %51 = arith.mulf %50, %40 : vector<16x256xf32>
    %52 = arith.addf %34, %51 : vector<16x256xf32>
    %53 = arith.mulf %52, %52 : vector<16x256xf32>
    %cst_28 = arith.constant dense<0.000000e+00> : vector<16xf32>
    %54 = vector.multi_reduction <add>, %53, %cst_28 [1] : vector<16x256xf32> to vector<16xf32>
    %55 = vector.shape_cast %54 : vector<16xf32> to vector<16x1xf32>
    %cst_29 = arith.constant 1.000000e-30 : f32
    %56 = vector.broadcast %cst_29 : f32 to vector<16x1xf32>
    %57 = arith.maximumf %39, %56 : vector<16x1xf32>
    %58 = arith.divf %55, %57 : vector<16x1xf32>
    %cst_30 = arith.constant 0.000000e+00 : f32
    %59 = vector.broadcast %cst_30 : f32 to vector<16x256xf32>
    %60 = arith.subf %59, %52 : vector<16x256xf32>
    %61 = vector.broadcast %58 : vector<16x1xf32> to vector<16x256xf32>
    %62 = arith.mulf %61, %36 : vector<16x256xf32>
    %63 = arith.addf %60, %62 : vector<16x256xf32>
    %cst_31 = arith.constant dense<0.000000e+00> : vector<16x256xf32>
    %64 = tpu.matmul %63, %32, %cst_31 {dimension_numbers = #tpu.dot_dimension_numbers<[1], [0], [0], [1], [0, 0, 1, 1], [], []>} : vector<16x256xf32>, vector<256x256xf32>, vector<16x256xf32> -> vector<16x256xf32>
    %65 = arith.mulf %63, %64 : vector<16x256xf32>
    %cst_32 = arith.constant dense<0.000000e+00> : vector<16xf32>
    %66 = vector.multi_reduction <add>, %65, %cst_32 [1] : vector<16x256xf32> to vector<16xf32>
    %67 = vector.shape_cast %66 : vector<16xf32> to vector<16x1xf32>
    %cst_33 = arith.constant 1.000000e-30 : f32
    %68 = vector.broadcast %cst_33 : f32 to vector<16x1xf32>
    %69 = arith.maximumf %67, %68 : vector<16x1xf32>
    %70 = arith.divf %55, %69 : vector<16x1xf32>
    %71 = vector.broadcast %70 : vector<16x1xf32> to vector<16x256xf32>
    %72 = arith.mulf %71, %63 : vector<16x256xf32>
    %73 = arith.addf %49, %72 : vector<16x256xf32>
    %74 = vector.broadcast %70 : vector<16x1xf32> to vector<16x256xf32>
    %75 = arith.mulf %74, %64 : vector<16x256xf32>
    %76 = arith.addf %52, %75 : vector<16x256xf32>
    %77 = arith.mulf %76, %76 : vector<16x256xf32>
    %cst_34 = arith.constant dense<0.000000e+00> : vector<16xf32>
    %78 = vector.multi_reduction <add>, %77, %cst_34 [1] : vector<16x256xf32> to vector<16xf32>
    %79 = vector.shape_cast %78 : vector<16xf32> to vector<16x1xf32>
    %cst_35 = arith.constant 1.000000e-30 : f32
    %80 = vector.broadcast %cst_35 : f32 to vector<16x1xf32>
    %81 = arith.maximumf %55, %80 : vector<16x1xf32>
    %82 = arith.divf %79, %81 : vector<16x1xf32>
    %cst_36 = arith.constant 0.000000e+00 : f32
    %83 = vector.broadcast %cst_36 : f32 to vector<16x256xf32>
    %84 = arith.subf %83, %76 : vector<16x256xf32>
    %85 = vector.broadcast %82 : vector<16x1xf32> to vector<16x256xf32>
    %86 = arith.mulf %85, %63 : vector<16x256xf32>
    %87 = arith.addf %84, %86 : vector<16x256xf32>
    %cst_37 = arith.constant dense<0.000000e+00> : vector<16x256xf32>
    %88 = tpu.matmul %87, %32, %cst_37 {dimension_numbers = #tpu.dot_dimension_numbers<[1], [0], [0], [1], [0, 0, 1, 1], [], []>} : vector<16x256xf32>, vector<256x256xf32>, vector<16x256xf32> -> vector<16x256xf32>
    %89 = arith.mulf %87, %88 : vector<16x256xf32>
    %cst_38 = arith.constant dense<0.000000e+00> : vector<16xf32>
    %90 = vector.multi_reduction <add>, %89, %cst_38 [1] : vector<16x256xf32> to vector<16xf32>
    %91 = vector.shape_cast %90 : vector<16xf32> to vector<16x1xf32>
    %cst_39 = arith.constant 1.000000e-30 : f32
    %92 = vector.broadcast %cst_39 : f32 to vector<16x1xf32>
    %93 = arith.maximumf %91, %92 : vector<16x1xf32>
    %94 = arith.divf %79, %93 : vector<16x1xf32>
    %95 = vector.broadcast %94 : vector<16x1xf32> to vector<16x256xf32>
    %96 = arith.mulf %95, %87 : vector<16x256xf32>
    %97 = arith.addf %73, %96 : vector<16x256xf32>
    %98 = vector.broadcast %94 : vector<16x1xf32> to vector<16x256xf32>
    %99 = arith.mulf %98, %88 : vector<16x256xf32>
    %100 = arith.addf %76, %99 : vector<16x256xf32>
    %101 = arith.mulf %100, %100 : vector<16x256xf32>
    %cst_40 = arith.constant dense<0.000000e+00> : vector<16xf32>
    %102 = vector.multi_reduction <add>, %101, %cst_40 [1] : vector<16x256xf32> to vector<16xf32>
    %103 = vector.shape_cast %102 : vector<16xf32> to vector<16x1xf32>
    %cst_41 = arith.constant 1.000000e-30 : f32
    %104 = vector.broadcast %cst_41 : f32 to vector<16x1xf32>
    %105 = arith.maximumf %79, %104 : vector<16x1xf32>
    %106 = arith.divf %103, %105 : vector<16x1xf32>
    %cst_42 = arith.constant 0.000000e+00 : f32
    %107 = vector.broadcast %cst_42 : f32 to vector<16x256xf32>
    %108 = arith.subf %107, %100 : vector<16x256xf32>
    %109 = vector.broadcast %106 : vector<16x1xf32> to vector<16x256xf32>
    %110 = arith.mulf %109, %87 : vector<16x256xf32>
    %111 = arith.addf %108, %110 : vector<16x256xf32>
    %cst_43 = arith.constant dense<0.000000e+00> : vector<16x256xf32>
    %112 = tpu.matmul %111, %32, %cst_43 {dimension_numbers = #tpu.dot_dimension_numbers<[1], [0], [0], [1], [0, 0, 1, 1], [], []>} : vector<16x256xf32>, vector<256x256xf32>, vector<16x256xf32> -> vector<16x256xf32>
    %113 = arith.mulf %111, %112 : vector<16x256xf32>
    %cst_44 = arith.constant dense<0.000000e+00> : vector<16xf32>
    %114 = vector.multi_reduction <add>, %113, %cst_44 [1] : vector<16x256xf32> to vector<16xf32>
    %115 = vector.shape_cast %114 : vector<16xf32> to vector<16x1xf32>
    %cst_45 = arith.constant 1.000000e-30 : f32
    %116 = vector.broadcast %cst_45 : f32 to vector<16x1xf32>
    %117 = arith.maximumf %115, %116 : vector<16x1xf32>
    %118 = arith.divf %103, %117 : vector<16x1xf32>
    %119 = vector.broadcast %118 : vector<16x1xf32> to vector<16x256xf32>
    %120 = arith.mulf %119, %111 : vector<16x256xf32>
    %121 = arith.addf %97, %120 : vector<16x256xf32>
    %122 = vector.broadcast %118 : vector<16x1xf32> to vector<16x256xf32>
    %123 = arith.mulf %122, %112 : vector<16x256xf32>
    %124 = arith.addf %100, %123 : vector<16x256xf32>
    %125 = arith.mulf %124, %124 : vector<16x256xf32>
    %cst_46 = arith.constant dense<0.000000e+00> : vector<16xf32>
    %126 = vector.multi_reduction <add>, %125, %cst_46 [1] : vector<16x256xf32> to vector<16xf32>
    %127 = vector.shape_cast %126 : vector<16xf32> to vector<16x1xf32>
    %cst_47 = arith.constant 1.000000e-30 : f32
    %128 = vector.broadcast %cst_47 : f32 to vector<16x1xf32>
    %129 = arith.maximumf %103, %128 : vector<16x1xf32>
    %130 = arith.divf %127, %129 : vector<16x1xf32>
    %cst_48 = arith.constant 0.000000e+00 : f32
    %131 = vector.broadcast %cst_48 : f32 to vector<16x256xf32>
    %132 = arith.subf %131, %124 : vector<16x256xf32>
    %133 = vector.broadcast %130 : vector<16x1xf32> to vector<16x256xf32>
    %134 = arith.mulf %133, %111 : vector<16x256xf32>
    %135 = arith.addf %132, %134 : vector<16x256xf32>
    %cst_49 = arith.constant dense<0.000000e+00> : vector<16x256xf32>
    %136 = tpu.matmul %135, %32, %cst_49 {dimension_numbers = #tpu.dot_dimension_numbers<[1], [0], [0], [1], [0, 0, 1, 1], [], []>} : vector<16x256xf32>, vector<256x256xf32>, vector<16x256xf32> -> vector<16x256xf32>
    %137 = arith.mulf %135, %136 : vector<16x256xf32>
    %cst_50 = arith.constant dense<0.000000e+00> : vector<16xf32>
    %138 = vector.multi_reduction <add>, %137, %cst_50 [1] : vector<16x256xf32> to vector<16xf32>
    %139 = vector.shape_cast %138 : vector<16xf32> to vector<16x1xf32>
    %cst_51 = arith.constant 1.000000e-30 : f32
    %140 = vector.broadcast %cst_51 : f32 to vector<16x1xf32>
    %141 = arith.maximumf %139, %140 : vector<16x1xf32>
    %142 = arith.divf %127, %141 : vector<16x1xf32>
    %143 = vector.broadcast %142 : vector<16x1xf32> to vector<16x256xf32>
    %144 = arith.mulf %143, %135 : vector<16x256xf32>
    %145 = arith.addf %121, %144 : vector<16x256xf32>
    %146 = vector.broadcast %142 : vector<16x1xf32> to vector<16x256xf32>
    %147 = arith.mulf %146, %136 : vector<16x256xf32>
    %148 = arith.addf %124, %147 : vector<16x256xf32>
    %149 = arith.mulf %148, %148 : vector<16x256xf32>
    %cst_52 = arith.constant dense<0.000000e+00> : vector<16xf32>
    %150 = vector.multi_reduction <add>, %149, %cst_52 [1] : vector<16x256xf32> to vector<16xf32>
    %151 = vector.shape_cast %150 : vector<16xf32> to vector<16x1xf32>
    %cst_53 = arith.constant 1.000000e-30 : f32
    %152 = vector.broadcast %cst_53 : f32 to vector<16x1xf32>
    %153 = arith.maximumf %127, %152 : vector<16x1xf32>
    %154 = arith.divf %151, %153 : vector<16x1xf32>
    %cst_54 = arith.constant 0.000000e+00 : f32
    %155 = vector.broadcast %cst_54 : f32 to vector<16x256xf32>
    %156 = arith.subf %155, %148 : vector<16x256xf32>
    %157 = vector.broadcast %154 : vector<16x1xf32> to vector<16x256xf32>
    %158 = arith.mulf %157, %135 : vector<16x256xf32>
    %159 = arith.addf %156, %158 : vector<16x256xf32>
    %cst_55 = arith.constant dense<0.000000e+00> : vector<16x256xf32>
    %160 = tpu.matmul %159, %32, %cst_55 {dimension_numbers = #tpu.dot_dimension_numbers<[1], [0], [0], [1], [0, 0, 1, 1], [], []>} : vector<16x256xf32>, vector<256x256xf32>, vector<16x256xf32> -> vector<16x256xf32>
    %161 = arith.mulf %159, %160 : vector<16x256xf32>
    %cst_56 = arith.constant dense<0.000000e+00> : vector<16xf32>
    %162 = vector.multi_reduction <add>, %161, %cst_56 [1] : vector<16x256xf32> to vector<16xf32>
    %163 = vector.shape_cast %162 : vector<16xf32> to vector<16x1xf32>
    %cst_57 = arith.constant 1.000000e-30 : f32
    %164 = vector.broadcast %cst_57 : f32 to vector<16x1xf32>
    %165 = arith.maximumf %163, %164 : vector<16x1xf32>
    %166 = arith.divf %151, %165 : vector<16x1xf32>
    %167 = vector.broadcast %166 : vector<16x1xf32> to vector<16x256xf32>
    %168 = arith.mulf %167, %159 : vector<16x256xf32>
    %169 = arith.addf %145, %168 : vector<16x256xf32>
    %c0_58 = arith.constant 0 : index
    %c0_59 = arith.constant 0 : index
    %170 = vector.load %arg10[%c0_58, %c0_59] : memref<16x256xf32, #tpu.memory_space<vmem>>, vector<16x256xf32>
    tpu.vector_store %arg10[%c0_58, %c0_59], %169 {strides = array<i32>} : memref<16x256xf32, #tpu.memory_space<vmem>>, vector<16x256xf32>,
    return
  }
  func.func @transform_0(%arg0: i32, %arg1: memref<1xf32, #tpu.memory_space<smem>>) -> (i32, i32) {
    %c0_i32 = arith.constant 0 : i32
    %c0_i32_0 = arith.constant 0 : i32
    return %arg0, %c0_i32 : i32, i32
  }
  func.func @transform_1(%arg0: i32, %arg1: memref<1xf32, #tpu.memory_space<smem>>) -> (i32, i32) {
    %c0_i32 = arith.constant 0 : i32
    %c0_i32_0 = arith.constant 0 : i32
    return %arg0, %c0_i32 : i32, i32
  }
  func.func @transform_2(%arg0: i32, %arg1: memref<1xf32, #tpu.memory_space<smem>>) -> (i32, i32) {
    %c0_i32 = arith.constant 0 : i32
    %c0_i32_0 = arith.constant 0 : i32
    %c0_i32_1 = arith.constant 0 : i32
    return %c0_i32, %c0_i32_0 : i32, i32
  }
  func.func @transform_3(%arg0: i32, %arg1: memref<1xf32, #tpu.memory_space<smem>>) -> (i32, i32) {
    %c0_i32 = arith.constant 0 : i32
    %c0_i32_0 = arith.constant 0 : i32
    %c0_i32_1 = arith.constant 0 : i32
    return %c0_i32, %c0_i32_0 : i32, i32
  }
  func.func @transform_4(%arg0: i32, %arg1: memref<1xf32, #tpu.memory_space<smem>>) -> (i32, i32) {
    %c0_i32 = arith.constant 0 : i32
    %c0_i32_0 = arith.constant 0 : i32
    %c0_i32_1 = arith.constant 0 : i32
    return %c0_i32, %c0_i32_0 : i32, i32
  }
  func.func @transform_5(%arg0: i32, %arg1: memref<1xf32, #tpu.memory_space<smem>>) -> (i32, i32) {
    %c0_i32 = arith.constant 0 : i32
    %c0_i32_0 = arith.constant 0 : i32
    %c0_i32_1 = arith.constant 0 : i32
    return %c0_i32, %c0_i32_0 : i32, i32
  }
  func.func @transform_6(%arg0: i32, %arg1: memref<1xf32, #tpu.memory_space<smem>>) -> (i32, i32) {
    %c0_i32 = arith.constant 0 : i32
    %c0_i32_0 = arith.constant 0 : i32
    %c0_i32_1 = arith.constant 0 : i32
    return %c0_i32, %c0_i32_0 : i32, i32
  }
  func.func @transform_7(%arg0: i32, %arg1: memref<1xf32, #tpu.memory_space<smem>>) -> (i32, i32) {
    %c0_i32 = arith.constant 0 : i32
    %c0_i32_0 = arith.constant 0 : i32
    %c0_i32_1 = arith.constant 0 : i32
    return %c0_i32, %c0_i32_0 : i32, i32
  }
  func.func @transform_8(%arg0: i32, %arg1: memref<1xf32, #tpu.memory_space<smem>>) -> (i32, i32) {
    %c0_i32 = arith.constant 0 : i32
    %c0_i32_0 = arith.constant 0 : i32
    return %arg0, %c0_i32 : i32, i32
  }
}

module attributes {stable_mosaic.version = 11 : i64} {
  func.func @_metainvh_kernel(%arg0: i32, %arg1: memref<1xf32, #tpu.memory_space<smem>>, %arg2: memref<16x256xbf16, #tpu.memory_space<vmem>>, %arg3: memref<16x128xf32, #tpu.memory_space<vmem>>, %arg4: memref<256x384xbf16, #tpu.memory_space<vmem>>, %arg5: memref<384x256xf32, #tpu.memory_space<vmem>>, %arg6: memref<128x256xbf16, #tpu.memory_space<vmem>>, %arg7: memref<1x128xf32, #tpu.memory_space<vmem>>, %arg8: memref<1x256xf32, #tpu.memory_space<vmem>>, %arg9: memref<256x256xf32, #tpu.memory_space<vmem>>, %arg10: memref<16x256xf32, #tpu.memory_space<vmem>>) attributes {dimension_semantics = [#tpu.dimension_semantics<parallel>], iteration_bounds = array<i64: 1>, scalar_prefetch = 1 : i64, scratch_operands = 0 : i64, tpu.core_type = #tpu.core_type<tc>, window_params = [{transform_indices = @transform_0, window_bounds = array<i64: 16, 256>}, {transform_indices = @transform_1, window_bounds = array<i64: 16, 128>}, {pipeline_mode = #tpu.pipeline_mode<synchronous>, transform_indices = @transform_2, window_bounds = array<i64: 256, 384>}, {pipeline_mode = #tpu.pipeline_mode<synchronous>, transform_indices = @transform_3, window_bounds = array<i64: 384, 256>}, {pipeline_mode = #tpu.pipeline_mode<synchronous>, transform_indices = @transform_4, window_bounds = array<i64: 128, 256>}, {pipeline_mode = #tpu.pipeline_mode<synchronous>, transform_indices = @transform_5, window_bounds = array<i64: 1, 128>}, {pipeline_mode = #tpu.pipeline_mode<synchronous>, transform_indices = @transform_6, window_bounds = array<i64: 1, 256>}, {pipeline_mode = #tpu.pipeline_mode<synchronous>, transform_indices = @transform_7, window_bounds = array<i64: 256, 256>}, {transform_indices = @transform_8, window_bounds = array<i64: 16, 256>}]} {
    %c0 = arith.constant 0 : index
    %0 = memref.load %arg1[%c0] : memref<1xf32, #tpu.memory_space<smem>>
    %c0_0 = arith.constant 0 : index
    %c0_1 = arith.constant 0 : index
    %1 = vector.load %arg2[%c0_0, %c0_1] : memref<16x256xbf16, #tpu.memory_space<vmem>>, vector<16x256xbf16>
    %c0_2 = arith.constant 0 : index
    %c0_3 = arith.constant 0 : index
    %2 = vector.load %arg4[%c0_2, %c0_3] : memref<256x384xbf16, #tpu.memory_space<vmem>>, vector<256x384xbf16>
    %cst = arith.constant dense<0.000000e+00> : vector<16x384xf32>
    %3 = tpu.matmul %1, %2, %cst {dimension_numbers = #tpu.dot_dimension_numbers<[1], [0], [0], [1], [0, 0, 1, 1], [], []>} : vector<16x256xbf16>, vector<256x384xbf16>, vector<16x384xf32> -> vector<16x384xf32>
    %4 = vector.extract_strided_slice %3 {offsets = [0, 0], sizes = [16, 256], strides = [1, 1]} : vector<16x384xf32> to vector<16x256xf32>
    %5 = vector.broadcast %0 : f32 to vector<16x256xf32>
    %6 = arith.subf %4, %5 : vector<16x256xf32>
    %cst_4 = arith.constant 0.000000e+00 : f32
    %7 = vector.broadcast %cst_4 : f32 to vector<16x256xf32>
    %8 = arith.maximumf %6, %7 : vector<16x256xf32>
    %cst_5 = arith.constant 0.000000e+00 : f32
    %9 = vector.broadcast %cst_5 : f32 to vector<16x256xf32>
    %10 = arith.subf %9, %4 : vector<16x256xf32>
    %11 = vector.broadcast %0 : f32 to vector<16x256xf32>
    %12 = arith.subf %10, %11 : vector<16x256xf32>
    %cst_6 = arith.constant 0.000000e+00 : f32
    %13 = vector.broadcast %cst_6 : f32 to vector<16x256xf32>
    %14 = arith.maximumf %12, %13 : vector<16x256xf32>
    %15 = arith.subf %8, %14 : vector<16x256xf32>
    %c0_7 = arith.constant 0 : index
    %c0_8 = arith.constant 0 : index
    %16 = vector.load %arg3[%c0_7, %c0_8] : memref<16x128xf32, #tpu.memory_space<vmem>>, vector<16x128xf32>
    %17 = tpu.concatenate %16, %15 in 1 : vector<16x128xf32>, vector<16x256xf32> -> vector<16x384xf32>
    %c0_9 = arith.constant 0 : index
    %c0_10 = arith.constant 0 : index
    %18 = vector.load %arg5[%c0_9, %c0_10] : memref<384x256xf32, #tpu.memory_space<vmem>>, vector<384x256xf32>
    %cst_11 = arith.constant dense<0.000000e+00> : vector<16x256xf32>
    %19 = tpu.matmul %17, %18, %cst_11 {dimension_numbers = #tpu.dot_dimension_numbers<[1], [0], [0], [1], [0, 0, 1, 1], [], []>} : vector<16x384xf32>, vector<384x256xf32>, vector<16x256xf32> -> vector<16x256xf32>
    %20 = vector.extract_strided_slice %3 {offsets = [0, 256], sizes = [16, 128], strides = [1, 1]} : vector<16x384xf32> to vector<16x128xf32>
    %c0_12 = arith.constant 0 : index
    %c0_13 = arith.constant 0 : index
    %21 = vector.load %arg7[%c0_12, %c0_13] : memref<1x128xf32, #tpu.memory_space<vmem>>, vector<1x128xf32>
    %22 = vector.broadcast %21 : vector<1x128xf32> to vector<16x128xf32>
    %23 = arith.addf %20, %22 : vector<16x128xf32>
    %cst_14 = arith.constant 0.000000e+00 : f32
    %24 = vector.broadcast %cst_14 : f32 to vector<16x128xf32>
    %25 = arith.maximumf %23, %24 : vector<16x128xf32>
    %26 = arith.truncf %25 : vector<16x128xf32> to vector<16x128xbf16>
    %c0_15 = arith.constant 0 : index
    %c0_16 = arith.constant 0 : index
    %27 = vector.load %arg6[%c0_15, %c0_16] : memref<128x256xbf16, #tpu.memory_space<vmem>>, vector<128x256xbf16>
    %cst_17 = arith.constant dense<0.000000e+00> : vector<16x256xf32>
    %28 = tpu.matmul %26, %27, %cst_17 {dimension_numbers = #tpu.dot_dimension_numbers<[1], [0], [0], [1], [0, 0, 1, 1], [], []>} : vector<16x128xbf16>, vector<128x256xbf16>, vector<16x256xf32> -> vector<16x256xf32>
    %c0_18 = arith.constant 0 : index
    %c0_19 = arith.constant 0 : index
    %29 = vector.load %arg8[%c0_18, %c0_19] : memref<1x256xf32, #tpu.memory_space<vmem>>, vector<1x256xf32>
    %30 = vector.broadcast %29 : vector<1x256xf32> to vector<16x256xf32>
    %31 = arith.addf %28, %30 : vector<16x256xf32>
    %c0_20 = arith.constant 0 : index
    %c0_21 = arith.constant 0 : index
    %32 = vector.load %arg9[%c0_20, %c0_21] : memref<256x256xf32, #tpu.memory_space<vmem>>, vector<256x256xf32>
    %cst_22 = arith.constant dense<0.000000e+00> : vector<16x256xf32>
    %33 = tpu.matmul %31, %32, %cst_22 {dimension_numbers = #tpu.dot_dimension_numbers<[1], [0], [0], [1], [0, 0, 1, 1], [], []>} : vector<16x256xf32>, vector<256x256xf32>, vector<16x256xf32> -> vector<16x256xf32>
    %34 = arith.subf %33, %19 : vector<16x256xf32>
    %cst_23 = arith.constant 0.000000e+00 : f32
    %35 = vector.broadcast %cst_23 : f32 to vector<16x256xf32>
    %36 = arith.subf %35, %34 : vector<16x256xf32>
    %37 = arith.mulf %34, %34 : vector<16x256xf32>
    %cst_24 = arith.constant dense<0.000000e+00> : vector<16xf32>
    %38 = vector.multi_reduction <add>, %37, %cst_24 [1] : vector<16x256xf32> to vector<16xf32>
    %39 = vector.shape_cast %38 : vector<16xf32> to vector<16x1xf32>
    %cst_25 = arith.constant dense<0.000000e+00> : vector<16x256xf32>
    %40 = tpu.matmul %36, %32, %cst_25 {dimension_numbers = #tpu.dot_dimension_numbers<[1], [0], [0], [1], [0, 0, 1, 1], [], []>} : vector<16x256xf32>, vector<256x256xf32>, vector<16x256xf32> -> vector<16x256xf32>
    %41 = arith.mulf %36, %40 : vector<16x256xf32>
    %cst_26 = arith.constant dense<0.000000e+00> : vector<16xf32>
    %42 = vector.multi_reduction <add>, %41, %cst_26 [1] : vector<16x256xf32> to vector<16xf32>
    %43 = vector.shape_cast %42 : vector<16xf32> to vector<16x1xf32>
    %cst_27 = arith.constant 1.000000e-30 : f32
    %44 = vector.broadcast %cst_27 : f32 to vector<16x1xf32>
    %45 = arith.maximumf %43, %44 : vector<16x1xf32>
    %46 = arith.divf %39, %45 : vector<16x1xf32>
    %47 = vector.broadcast %46 : vector<16x1xf32> to vector<16x256xf32>
    %48 = arith.mulf %47, %36 : vector<16x256xf32>
    %49 = arith.addf %31, %48 : vector<16x256xf32>
    %50 = vector.broadcast %46 : vector<16x1xf32> to vector<16x256xf32>
    %51 = arith.mulf %50, %40 : vector<16x256xf32>
    %52 = arith.addf %34, %51 : vector<16x256xf32>
    %53 = arith.mulf %52, %52 : vector<16x256xf32>
    %cst_28 = arith.constant dense<0.000000e+00> : vector<16xf32>
    %54 = vector.multi_reduction <add>, %53, %cst_28 [1] : vector<16x256xf32> to vector<16xf32>
    %55 = vector.shape_cast %54 : vector<16xf32> to vector<16x1xf32>
    %cst_29 = arith.constant 1.000000e-30 : f32
    %56 = vector.broadcast %cst_29 : f32 to vector<16x1xf32>
    %57 = arith.maximumf %39, %56 : vector<16x1xf32>
    %58 = arith.divf %55, %57 : vector<16x1xf32>
    %cst_30 = arith.constant 0.000000e+00 : f32
    %59 = vector.broadcast %cst_30 : f32 to vector<16x256xf32>
    %60 = arith.subf %59, %52 : vector<16x256xf32>
    %61 = vector.broadcast %58 : vector<16x1xf32> to vector<16x256xf32>
    %62 = arith.mulf %61, %36 : vector<16x256xf32>
    %63 = arith.addf %60, %62 : vector<16x256xf32>
    %cst_31 = arith.constant dense<0.000000e+00> : vector<16x256xf32>
    %64 = tpu.matmul %63, %32, %cst_31 {dimension_numbers = #tpu.dot_dimension_numbers<[1], [0], [0], [1], [0, 0, 1, 1], [], []>} : vector<16x256xf32>, vector<256x256xf32>, vector<16x256xf32> -> vector<16x256xf32>
    %65 = arith.mulf %63, %64 : vector<16x256xf32>
    %cst_32 = arith.constant dense<0.000000e+00> : vector<16xf32>
    %66 = vector.multi_reduction <add>, %65, %cst_32 [1] : vector<16x256xf32> to vector<16xf32>
    %67 = vector.shape_cast %66 : vector<16xf32> to vector<16x1xf32>
    %cst_33 = arith.constant 1.000000e-30 : f32
    %68 = vector.broadcast %cst_33 : f32 to vector<16x1xf32>
    %69 = arith.maximumf %67, %68 : vector<16x1xf32>
    %70 = arith.divf %55, %69 : vector<16x1xf32>
    %71 = vector.broadcast %70 : vector<16x1xf32> to vector<16x256xf32>
    %72 = arith.mulf %71, %63 : vector<16x256xf32>
    %73 = arith.addf %49, %72 : vector<16x256xf32>
    %74 = vector.broadcast %70 : vector<16x1xf32> to vector<16x256xf32>
    %75 = arith.mulf %74, %64 : vector<16x256xf32>
    %76 = arith.addf %52, %75 : vector<16x256xf32>
    %77 = arith.mulf %76, %76 : vector<16x256xf32>
    %cst_34 = arith.constant dense<0.000000e+00> : vector<16xf32>
    %78 = vector.multi_reduction <add>, %77, %cst_34 [1] : vector<16x256xf32> to vector<16xf32>
    %79 = vector.shape_cast %78 : vector<16xf32> to vector<16x1xf32>
    %cst_35 = arith.constant 1.000000e-30 : f32
    %80 = vector.broadcast %cst_35 : f32 to vector<16x1xf32>
    %81 = arith.maximumf %55, %80 : vector<16x1xf32>
    %82 = arith.divf %79, %81 : vector<16x1xf32>
    %cst_36 = arith.constant 0.000000e+00 : f32
    %83 = vector.broadcast %cst_36 : f32 to vector<16x256xf32>
    %84 = arith.subf %83, %76 : vector<16x256xf32>
    %85 = vector.broadcast %82 : vector<16x1xf32> to vector<16x256xf32>
    %86 = arith.mulf %85, %63 : vector<16x256xf32>
    %87 = arith.addf %84, %86 : vector<16x256xf32>
    %cst_37 = arith.constant dense<0.000000e+00> : vector<16x256xf32>
    %88 = tpu.matmul %87, %32, %cst_37 {dimension_numbers = #tpu.dot_dimension_numbers<[1], [0], [0], [1], [0, 0, 1, 1], [], []>} : vector<16x256xf32>, vector<256x256xf32>, vector<16x256xf32> -> vector<16x256xf32>
    %89 = arith.mulf %87, %88 : vector<16x256xf32>
    %cst_38 = arith.constant dense<0.000000e+00> : vector<16xf32>
    %90 = vector.multi_reduction <add>, %89, %cst_38 [1] : vector<16x256xf32> to vector<16xf32>
    %91 = vector.shape_cast %90 : vector<16xf32> to vector<16x1xf32>
    %cst_39 = arith.constant 1.000000e-30 : f32
    %92 = vector.broadcast %cst_39 : f32 to vector<16x1xf32>
    %93 = arith.maximumf %91, %92 : vector<16x1xf32>
    %94 = arith.divf %79, %93 : vector<16x1xf32>
    %95 = vector.broadcast %94 : vector<16x1xf32> to vector<16x256xf32>
    %96 = arith.mulf %95, %87 : vector<16x256xf32>
    %97 = arith.addf %73, %96 : vector<16x256xf32>
    %98 = vector.broadcast %94 : vector<16x1xf32> to vector<16x256xf32>
    %99 = arith.mulf %98, %88 : vector<16x256xf32>
    %100 = arith.addf %76, %99 : vector<16x256xf32>
    %101 = arith.mulf %100, %100 : vector<16x256xf32>
    %cst_40 = arith.constant dense<0.000000e+00> : vector<16xf32>
    %102 = vector.multi_reduction <add>, %101, %cst_40 [1] : vector<16x256xf32> to vector<16xf32>
    %103 = vector.shape_cast %102 : vector<16xf32> to vector<16x1xf32>
    %cst_41 = arith.constant 1.000000e-30 : f32
    %104 = vector.broadcast %cst_41 : f32 to vector<16x1xf32>
    %105 = arith.maximumf %79, %104 : vector<16x1xf32>
    %106 = arith.divf %103, %105 : vector<16x1xf32>
    %cst_42 = arith.constant 0.000000e+00 : f32
    %107 = vector.broadcast %cst_42 : f32 to vector<16x256xf32>
    %108 = arith.subf %107, %100 : vector<16x256xf32>
    %109 = vector.broadcast %106 : vector<16x1xf32> to vector<16x256xf32>
    %110 = arith.mulf %109, %87 : vector<16x256xf32>
    %111 = arith.addf %108, %110 : vector<16x256xf32>
    %cst_43 = arith.constant dense<0.000000e+00> : vector<16x256xf32>
    %112 = tpu.matmul %111, %32, %cst_43 {dimension_numbers = #tpu.dot_dimension_numbers<[1], [0], [0], [1], [0, 0, 1, 1], [], []>} : vector<16x256xf32>, vector<256x256xf32>, vector<16x256xf32> -> vector<16x256xf32>
    %113 = arith.mulf %111, %112 : vector<16x256xf32>
    %cst_44 = arith.constant dense<0.000000e+00> : vector<16xf32>
    %114 = vector.multi_reduction <add>, %113, %cst_44 [1] : vector<16x256xf32> to vector<16xf32>
    %115 = vector.shape_cast %114 : vector<16xf32> to vector<16x1xf32>
    %cst_45 = arith.constant 1.000000e-30 : f32
    %116 = vector.broadcast %cst_45 : f32 to vector<16x1xf32>
    %117 = arith.maximumf %115, %116 : vector<16x1xf32>
    %118 = arith.divf %103, %117 : vector<16x1xf32>
    %119 = vector.broadcast %118 : vector<16x1xf32> to vector<16x256xf32>
    %120 = arith.mulf %119, %111 : vector<16x256xf32>
    %121 = arith.addf %97, %120 : vector<16x256xf32>
    %122 = vector.broadcast %118 : vector<16x1xf32> to vector<16x256xf32>
    %123 = arith.mulf %122, %112 : vector<16x256xf32>
    %124 = arith.addf %100, %123 : vector<16x256xf32>
    %125 = arith.mulf %124, %124 : vector<16x256xf32>
    %cst_46 = arith.constant dense<0.000000e+00> : vector<16xf32>
    %126 = vector.multi_reduction <add>, %125, %cst_46 [1] : vector<16x256xf32> to vector<16xf32>
    %127 = vector.shape_cast %126 : vector<16xf32> to vector<16x1xf32>
    %cst_47 = arith.constant 1.000000e-30 : f32
    %128 = vector.broadcast %cst_47 : f32 to vector<16x1xf32>
    %129 = arith.maximumf %103, %128 : vector<16x1xf32>
    %130 = arith.divf %127, %129 : vector<16x1xf32>
    %cst_48 = arith.constant 0.000000e+00 : f32
    %131 = vector.broadcast %cst_48 : f32 to vector<16x256xf32>
    %132 = arith.subf %131, %124 : vector<16x256xf32>
    %133 = vector.broadcast %130 : vector<16x1xf32> to vector<16x256xf32>
    %134 = arith.mulf %133, %111 : vector<16x256xf32>
    %135 = arith.addf %132, %134 : vector<16x256xf32>
    %cst_49 = arith.constant dense<0.000000e+00> : vector<16x256xf32>
    %136 = tpu.matmul %135, %32, %cst_49 {dimension_numbers = #tpu.dot_dimension_numbers<[1], [0], [0], [1], [0, 0, 1, 1], [], []>} : vector<16x256xf32>, vector<256x256xf32>, vector<16x256xf32> -> vector<16x256xf32>
    %137 = arith.mulf %135, %136 : vector<16x256xf32>
    %cst_50 = arith.constant dense<0.000000e+00> : vector<16xf32>
    %138 = vector.multi_reduction <add>, %137, %cst_50 [1] : vector<16x256xf32> to vector<16xf32>
    %139 = vector.shape_cast %138 : vector<16xf32> to vector<16x1xf32>
    %cst_51 = arith.constant 1.000000e-30 : f32
    %140 = vector.broadcast %cst_51 : f32 to vector<16x1xf32>
    %141 = arith.maximumf %139, %140 : vector<16x1xf32>
    %142 = arith.divf %127, %141 : vector<16x1xf32>
    %143 = vector.broadcast %142 : vector<16x1xf32> to vector<16x256xf32>
    %144 = arith.mulf %143, %135 : vector<16x256xf32>
    %145 = arith.addf %121, %144 : vector<16x256xf32>
    %146 = vector.broadcast %142 : vector<16x1xf32> to vector<16x256xf32>
    %147 = arith.mulf %146, %136 : vector<16x256xf32>
    %148 = arith.addf %124, %147 : vector<16x256xf32>
    %149 = arith.mulf %148, %148 : vector<16x256xf32>
    %cst_52 = arith.constant dense<0.000000e+00> : vector<16xf32>
    %150 = vector.multi_reduction <add>, %149, %cst_52 [1] : vector<16x256xf32> to vector<16xf32>
    %151 = vector.shape_cast %150 : vector<16xf32> to vector<16x1xf32>
    %cst_53 = arith.constant 1.000000e-30 : f32
    %152 = vector.broadcast %cst_53 : f32 to vector<16x1xf32>
    %153 = arith.maximumf %127, %152 : vector<16x1xf32>
    %154 = arith.divf %151, %153 : vector<16x1xf32>
    %cst_54 = arith.constant 0.000000e+00 : f32
    %155 = vector.broadcast %cst_54 : f32 to vector<16x256xf32>
    %156 = arith.subf %155, %148 : vector<16x256xf32>
    %157 = vector.broadcast %154 : vector<16x1xf32> to vector<16x256xf32>
    %158 = arith.mulf %157, %135 : vector<16x256xf32>
    %159 = arith.addf %156, %158 : vector<16x256xf32>
    %cst_55 = arith.constant dense<0.000000e+00> : vector<16x256xf32>
    %160 = tpu.matmul %159, %32, %cst_55 {dimension_numbers = #tpu.dot_dimension_numbers<[1], [0], [0], [1], [0, 0, 1, 1], [], []>} : vector<16x256xf32>, vector<256x256xf32>, vector<16x256xf32> -> vector<16x256xf32>
    %161 = arith.mulf %159, %160 : vector<16x256xf32>
    %cst_56 = arith.constant dense<0.000000e+00> : vector<16xf32>
    %162 = vector.multi_reduction <add>, %161, %cst_56 [1] : vector<16x256xf32> to vector<16xf32>
    %163 = vector.shape_cast %162 : vector<16xf32> to vector<16x1xf32>
    %cst_57 = arith.constant 1.000000e-30 : f32
    %164 = vector.broadcast %cst_57 : f32 to vector<16x1xf32>
    %165 = arith.maximumf %163, %164 : vector<16x1xf32>
    %166 = arith.divf %151, %165 : vector<16x1xf32>
    %167 = vector.broadcast %166 : vector<16x1xf32> to vector<16x256xf32>
    %168 = arith.mulf %167, %159 : vector<16x256xf32>
    %169 = arith.addf %145, %168 : vector<16x256xf32>
    %c0_58 = arith.constant 0 : index
    %c0_59 = arith.constant 0 : index
    %170 = vector.load %arg10[%c0_58, %c0_59] : memref<16x256xf32, #tpu.memory_space<vmem>>, vector<16x256xf32>
    tpu.vector_store %arg10[%c0_58, %c0_59], %169 {strides = array<i32>} : memref<16x256xf32, #tpu.memory_space<vmem>>, vector<16x256xf32>,
    return
  }
  func.func @transform_0(%arg0: i32, %arg1: memref<1xf32, #tpu.memory_space<smem>>) -> (i32, i32) {
    %c0_i32 = arith.constant 0 : i32
    %c0_i32_0 = arith.constant 0 : i32
    return %arg0, %c0_i32 : i32, i32
  }
  func.func @transform_1(%arg0: i32, %arg1: memref<1xf32, #tpu.memory_space<smem>>) -> (i32, i32) {
    %c0_i32 = arith.constant 0 : i32
    %c0_i32_0 = arith.constant 0 : i32
    return %arg0, %c0_i32 : i32, i32
  }
  func.func @transform_2(%arg0: i32, %arg1: memref<1xf32, #tpu.memory_space<smem>>) -> (i32, i32) {
    %c0_i32 = arith.constant 0 : i32
    %c0_i32_0 = arith.constant 0 : i32
    %c0_i32_1 = arith.constant 0 : i32
    return %c0_i32, %c0_i32_0 : i32, i32
  }
  func.func @transform_3(%arg0: i32, %arg1: memref<1xf32, #tpu.memory_space<smem>>) -> (i32, i32) {
    %c0_i32 = arith.constant 0 : i32
    %c0_i32_0 = arith.constant 0 : i32
    %c0_i32_1 = arith.constant 0 : i32
    return %c0_i32, %c0_i32_0 : i32, i32
  }
  func.func @transform_4(%arg0: i32, %arg1: memref<1xf32, #tpu.memory_space<smem>>) -> (i32, i32) {
    %c0_i32 = arith.constant 0 : i32
    %c0_i32_0 = arith.constant 0 : i32
    %c0_i32_1 = arith.constant 0 : i32
    return %c0_i32, %c0_i32_0 : i32, i32
  }
  func.func @transform_5(%arg0: i32, %arg1: memref<1xf32, #tpu.memory_space<smem>>) -> (i32, i32) {
    %c0_i32 = arith.constant 0 : i32
    %c0_i32_0 = arith.constant 0 : i32
    %c0_i32_1 = arith.constant 0 : i32
    return %c0_i32, %c0_i32_0 : i32, i32
  }
  func.func @transform_6(%arg0: i32, %arg1: memref<1xf32, #tpu.memory_space<smem>>) -> (i32, i32) {
    %c0_i32 = arith.constant 0 : i32
    %c0_i32_0 = arith.constant 0 : i32
    %c0_i32_1 = arith.constant 0 : i32
    return %c0_i32, %c0_i32_0 : i32, i32
  }
  func.func @transform_7(%arg0: i32, %arg1: memref<1xf32, #tpu.memory_space<smem>>) -> (i32, i32) {
    %c0_i32 = arith.constant 0 : i32
    %c0_i32_0 = arith.constant 0 : i32
    %c0_i32_1 = arith.constant 0 : i32
    return %c0_i32, %c0_i32_0 : i32, i32
  }
  func.func @transform_8(%arg0: i32, %arg1: memref<1xf32, #tpu.memory_space<smem>>) -> (i32, i32) {
    %c0_i32 = arith.constant 0 : i32
    %c0_i32_0 = arith.constant 0 : i32
    return %arg0, %c0_i32 : i32, i32
  }
}

</mosaic_0001>

<bundles_post_ra>
// kernel: tpu_custom_call.1
= control target key start
LH: loop header
LB: loop body
LE: loop exit
PB: predicated region body
PF: predicated region fallthrough
CT: control target
= control target key end

     0   :  { %15 = vsyncpa [#allocation5], 0  ;;  %s3746_s0 = inlined_call_operand.<no memory space> [shape: f32[1], index: 0, kind: input, shape index: {}]   ;;  %s3747_s1 = inlined_call_operand.hbm [shape: bf16[16,256], index: 1, kind: input, shape index: {}]   ;;  %s3748_s2 = inlined_call_operand.hbm [shape: f32[16,128], index: 2, kind: input, shape index: {}]   ;;  %s3749_s3 = inlined_call_operand.hbm [shape: bf16[256,384], index: 3, kind: input, shape index: {}]   ;;  %s3750_s4 = inlined_call_operand.hbm [shape: f32[384,256], index: 4, kind: input, shape index: {}]   ;;  %s3751_s5 = inlined_call_operand.hbm [shape: bf16[128,256], index: 5, kind: input, shape index: {}]   ;;  %s3752_s6 = inlined_call_operand.vmem [shape: f32[1,128], index: 6, kind: input, shape index: {}]   ;;  %s3753_s7 = inlined_call_operand.vmem [shape: f32[1,256], index: 7, kind: input, shape index: {}]   ;;  %s3754_s8 = inlined_call_operand.hbm [shape: f32[256,256], index: 8, kind: input, shape index: {}]   ;;  %s3755_s9 = inlined_call_operand.hbm [shape: f32[16,256], index: 9, kind: output, shape index: {}]  }
   0x1   :  { %16 = vsyncpa [#allocation8], 0 }
   0x2   :  { %17 = vsyncpa [#allocation11], 0 }
   0x3   :  { %18 = vsyncpa [#allocation14], 0 }
   0x4   :  { %19 = vsyncpa [#allocation6], 0  ;;  %s2892_s30 = smov [#allocation7]   ;;  %s2893_s11 = smov [#allocation10]  }
   0x5   :  { %s37_s10 = sshll.u32 %s2892_s30, 4  ;;  %s61_s12 = sshll.u32 %s2893_s11, 4  ;;  %s38_s10 = int_to_ptr.vmem [resolvable:$true] %s37_s10  ;;  %s2957_s12 = int_to_ptr.vmem [resolvable:$true] %s61_s12 }
   0x6   :  { %s2728_s15 = scalar_lea.hbm %s3748_s2, 256 }
   0x7   :  { %p2729_p0 = scmp.ne.s32.totalorder %s3748_s2, %s2728_s15  ;;  %p2732_p1 = scmp.lt.u32.totalorder %s2728_s15, %s3748_s2 }
   0x9   :  { %p2734_p2 = pnand %p2732_p1, %p2729_p0 }
   0xb   :  { %2737 = shalt.err (!%p2734_p2)
}
   0xc   :  { %s2738_s20 = scalar_lea.vmem %s38_s10, 256  ;;  %p2743_p4 = scmp.lt.s32.totalorder %s38_s10, %s38_s10 }
   0xd   :  { %p2739_p3 = scmp.ne.s32.totalorder %s38_s10, %s2738_s20  ;;  %p2744_p5 = scmp.lt.s32.totalorder %s2738_s20, %s2738_s20 }
   0xf   :  { %p2745_p6 = por %p2744_p5, %p2743_p4 }
  0x11   :  { %p2746_p7 = pnand %p2745_p6, %p2739_p3 }
  0x13   :  { %2749 = shalt.err (!%p2746_p7)
}
  0x14   :  { %s2894_s21 = smov 128   ;;  %s2895_s22 = smov 8  }
  0x15   :  { %43 = dma.hbm_to_vmem [thread:$0]  %s3748_s2, 256, %s38_s10, [#allocation8], %s2894_s21, %s2894_s21, %s2895_s22  }
  0x16   :  { %s2750_s27 = scalar_lea.hbm %s3750_s4, 12288 }
  0x17   :  { %p2751_p8 = scmp.ne.s32.totalorder %s3750_s4, %s2750_s27  ;;  %p2754_p9 = scmp.lt.u32.totalorder %s2750_s27, %s3750_s4 }
  0x19   :  { %p2756_p10 = pnand %p2754_p9, %p2751_p8 }
  0x1b   :  { %2759 = shalt.err (!%p2756_p10)
}
  0x1c   :  { %s2760_s13 = scalar_lea.vmem %s2957_s12, 12288  ;;  %p2765_p12 = scmp.lt.s32.totalorder %s2957_s12, %s2957_s12 }
  0x1d   :  { %p2761_p11 = scmp.ne.s32.totalorder %s2957_s12, %s2760_s13  ;;  %p2766_p13 = scmp.lt.s32.totalorder %s2760_s13, %s2760_s13 }
  0x1f   :  { %p2767_p0 = por %p2766_p13, %p2765_p12 }
  0x21   :  { %p2768_p1 = pnand %p2767_p0, %p2761_p11 }
  0x23   :  { %2771 = shalt.err (!%p2768_p1)
}
  0x24   :  { %s2896_s2 = smov 256   ;;  %s2897_s10 = smov 16  }
  0x25   :  { %67 = dma.hbm_to_vmem [thread:$0]  %s3750_s4, 12288, %s2957_s12, [#allocation11], %s2896_s2, %s2896_s2, %s2897_s10  }
  0x26   :  { %s2898_s16 = smov [#allocation4]   ;;  %s2899_s18 = smov [#allocation9]  }
  0x27   :  { %s25_s17 = sshll.u32 %s2898_s16, 4  ;;  %s49_s19 = sshll.u32 %s2899_s18, 4  ;;  %s26_s17 = int_to_ptr.vmem [resolvable:$true] %s25_s17  ;;  %s2994_s19 = int_to_ptr.vmem [resolvable:$true] %s49_s19 }
  0x28   :  { %s2772_s24 = scalar_lea.hbm %s3747_s1, 256 }
  0x29   :  { %p2773_p2 = scmp.ne.s32.totalorder %s3747_s1, %s2772_s24  ;;  %p2776_p3 = scmp.lt.u32.totalorder %s2772_s24, %s3747_s1 }
  0x2b   :  { %p2778_p4 = pnand %p2776_p3, %p2773_p2 }
  0x2d   :  { %2781 = shalt.err (!%p2778_p4)
}
  0x2e   :  { %s2782_s4 = scalar_lea.vmem %s26_s17, 256  ;;  %p2787_p6 = scmp.lt.s32.totalorder %s26_s17, %s26_s17 }
  0x2f   :  { %p2783_p5 = scmp.ne.s32.totalorder %s26_s17, %s2782_s4  ;;  %p2788_p7 = scmp.lt.s32.totalorder %s2782_s4, %s2782_s4 }
  0x31   :  { %p2789_p8 = por %p2788_p7, %p2787_p6 }
  0x33   :  { %p2790_p9 = pnand %p2789_p8, %p2783_p5 }
  0x35   :  { %2793 = shalt.err (!%p2790_p9)
}
  0x36   :  { %31 = dma.hbm_to_vmem [thread:$0]  %s3747_s1, 256, %s26_s17, [#allocation5], %s2894_s21, %s2894_s21, %s2895_s22  }
  0x37   :  { %s2794_s13 = scalar_lea.hbm %s3749_s3, 6144 }
  0x38   :  { %p2795_p10 = scmp.ne.s32.totalorder %s3749_s3, %s2794_s13  ;;  %p2798_p11 = scmp.lt.u32.totalorder %s2794_s13, %s3749_s3 }
  0x3a   :  { %p2800_p12 = pnand %p2798_p11, %p2795_p10 }
  0x3c   :  { %2803 = shalt.err (!%p2800_p12)
}
  0x3d   :  { %s2804_s20 = scalar_lea.vmem %s2994_s19, 6144  ;;  %p2809_p0 = scmp.lt.s32.totalorder %s2994_s19, %s2994_s19 }
  0x3e   :  { %p2805_p13 = scmp.ne.s32.totalorder %s2994_s19, %s2804_s20  ;;  %p2810_p1 = scmp.lt.s32.totalorder %s2804_s20, %s2804_s20 }
  0x40   :  { %p2811_p2 = por %p2810_p1, %p2809_p0 }
  0x42   :  { %p2812_p3 = pnand %p2811_p2, %p2805_p13 }
  0x44   :  { %2815 = shalt.err (!%p2812_p3)
}
  0x45   :  { %s2900_s1 = smov 192   ;;  %s2901_s17 = smov 12  }
  0x46   :  { %55 = dma.hbm_to_vmem [thread:$0]  %s3749_s3, 6144, %s2994_s19, [#allocation8], %s2900_s1, %s2900_s1, %s2901_s17  }
  0x47   :  { %s2902_s25 = smov [#allocation12]   ;;  %s2903_s27 = smov [#allocation13]  }
  0x48   :  { %s73_s26 = sshll.u32 %s2902_s25, 4  ;;  %s89_s28 = sshll.u32 %s2903_s27, 4  ;;  %s74_s26 = int_to_ptr.vmem [resolvable:$true] %s73_s26  ;;  %s3028_s28 = int_to_ptr.vmem [resolvable:$true] %s89_s28 }
  0x49   :  { %s2816_s29 = scalar_lea.hbm %s3751_s5, 2048 }
  0x4a   :  { %p2817_p4 = scmp.ne.s32.totalorder %s3751_s5, %s2816_s29  ;;  %p2820_p5 = scmp.lt.u32.totalorder %s2816_s29, %s3751_s5 }
  0x4c   :  { %p2822_p6 = pnand %p2820_p5, %p2817_p4 }
  0x4e   :  { %2825 = shalt.err (!%p2822_p6)
}
  0x4f   :  { %s2826_s3 = scalar_lea.vmem %s74_s26, 2048  ;;  %p2831_p8 = scmp.lt.s32.totalorder %s74_s26, %s74_s26 }
  0x50   :  { %p2827_p7 = scmp.ne.s32.totalorder %s74_s26, %s2826_s3  ;;  %p2832_p9 = scmp.lt.s32.totalorder %s2826_s3, %s2826_s3 }
  0x52   :  { %p2833_p10 = por %p2832_p9, %p2831_p8 }
  0x54   :  { %p2834_p11 = pnand %p2833_p10, %p2827_p7 }
  0x56   :  { %2837 = shalt.err (!%p2834_p11)
}
  0x57   :  { %79 = dma.hbm_to_vmem [thread:$0]  %s3751_s5, 2048, %s74_s26, [#allocation11], %s2894_s21, %s2894_s21, %s2895_s22  }
  0x58   :  { %s2838_s20 = scalar_lea.hbm %s3754_s8, 8192 }
  0x59   :  { %p2839_p12 = scmp.ne.s32.totalorder %s3754_s8, %s2838_s20  ;;  %p2842_p13 = scmp.lt.u32.totalorder %s2838_s20, %s3754_s8 }
  0x5b   :  { %p2844_p0 = pnand %p2842_p13, %p2839_p12 }
  0x5d   :  { %2847 = shalt.err (!%p2844_p0)
}
  0x5e   :  { %s2848_s25 = scalar_lea.vmem %s3028_s28, 8192  ;;  %p2853_p2 = scmp.lt.s32.totalorder %s3028_s28, %s3028_s28 }
  0x5f   :  { %p2849_p1 = scmp.ne.s32.totalorder %s3028_s28, %s2848_s25  ;;  %p2854_p3 = scmp.lt.s32.totalorder %s2848_s25, %s2848_s25 }
  0x61   :  { %p2855_p4 = por %p2854_p3, %p2853_p2 }
  0x63   :  { %p2856_p5 = pnand %p2855_p4, %p2849_p1 }
  0x65   :  { %2859 = shalt.err (!%p2856_p5)
}
  0x66   :  { %95 = dma.hbm_to_vmem [thread:$0]  %s3754_s8, 8192, %s3028_s28, [#allocation14], %s2896_s2, %s2896_s2, %s2897_s10  }
  0x67   :  { %2882 = dma.done.wait [#allocation5], 256  }
  0x68   :  { %2883 = vsyncadd [#allocation5], 4294967040 }
  0x69   :  { %2884 = dma.done.wait [#allocation8], 6400  }
  0x6a   :  { %2885 = vsyncadd [#allocation8], 4294960896 }
  0x6b   :  { %2886 = dma.done.wait [#allocation11], 14336  }
  0x6c   :  { %2887 = vsyncadd [#allocation11], 4294952960 }
  0x6d   :  { %2888 = dma.done.wait [#allocation14], 8192  }
  0x6e   :  { %2889 = vsyncadd [#allocation14], 4294959104  ;;  %v2593_v0 = vld [vmem:[#allocation9 + $0xc8] ss:$12 sps:$4 sm:$0xff]   ;;  %v2595_v2 = vld [vmem:[#allocation9 + $0xe0] ss:$12 sps:$4 sm:$0xff]  }
  0x6f   :  { %v2594_v1 = vld [vmem:[#allocation9 + $0x8] ss:$12 sps:$4 sm:$0xff]   ;;  %2008 = vmatprep.subr.bf16.mxu1 %v2593_v0  ;;  %v2596_v3 = vld [vmem:[#allocation9 + $0x20] ss:$12 sps:$4 sm:$0xff]   ;;  %v2597_v4 = vld [vmem:[#allocation9 + $0xf8] ss:$12 sps:$4 sm:$0xff]  }
  0x70   :  { %2009 = vmatpush3.bf16.msra.mxu1 %v2594_v1  ;;  %v2598_v5 = vld [vmem:[#allocation9 + $0x38] ss:$12 sps:$4 sm:$0xff]   ;;  %v2599_v6 = vld [vmem:[#allocation9 + $0x110] ss:$12 sps:$4 sm:$0xff]   ;;  %v2601_v8 = vld [vmem:[#allocation9 + $0x128] ss:$12 sps:$4 sm:$0xff]  }
  0x71   :  { %2010 = vmatprep.subr.bf16.mxu1 %v2595_v2  ;;  %v2600_v7 = vld [vmem:[#allocation9 + $0x50] ss:$12 sps:$4 sm:$0xff]   ;;  %v2602_v9 = vld [vmem:[#allocation9 + $0x68] ss:$12 sps:$4 sm:$0xff]   ;;  %v2603_v10 = vld [vmem:[#allocation9 + $0x140] ss:$12 sps:$4 sm:$0xff]  }
  0x72   :  { %v2611_v11 = vld [vmem:[#allocation4 + $0x4] ss:$8 sps:$4 sm:$0xff]   ;;  %v2615_v15 = vld [vmem:[#allocation9 + $0x1c] ss:$12 sps:$4 sm:$0xff]   ;;  %v2618_v18 = vld [vmem:[#allocation9 + $0x34] ss:$12 sps:$4 sm:$0xff]  }
  0x73   :  { %v2612_v12 = vld [vmem:[#allocation9 + $0x4] ss:$12 sps:$4 sm:$0xff]   ;;  %v2614_v13 = vld [vmem:[#allocation9] ss:$12 sps:$4 sm:$0xff]   ;;  %523 = vmatprep.mubr.bf16.mxu1 %v2611_v11  ;;  %480 = vmatprep.mubr.bf16.mxu0 %v2611_v11  ;;  %v2623_v24 = vld [vmem:[#allocation9 + $0x48] ss:$12 sps:$4 sm:$0xff]  }
  0x74   :  { %2011 = vmatpush3.bf16.msra.mxu1 %v2596_v3  ;;  %v2604_v14 = vld [vmem:[#allocation9 + $0x80] ss:$12 sps:$4 sm:$0xff]   ;;  %v2605_v16 = vld [vmem:[#allocation9 + $0x158] ss:$12 sps:$4 sm:$0xff]   ;;  %448 = vmatprep.subr.bf16.mxu0 %v2612_v12  ;;  %v2607_v20 = vld [vmem:[#allocation9 + $0x170] ss:$12 sps:$4 sm:$0xff]  }
  0x75   :  { %2012 = vmatprep.subr.bf16.mxu1 %v2597_v4  ;;  %449 = vmatpush1.bf16.msra.mxu0 %v2614_v13  ;;  %v2617_v17 = vld [vmem:[#allocation9 + $0x18] ss:$12 sps:$4 sm:$0xff]   ;;  %v2620_v21 = vld [vmem:[#allocation9 + $0x30] ss:$12 sps:$4 sm:$0xff]   ;;  %v2609_v25 = vld [vmem:[#allocation4] ss:$8 sps:$4 sm:$0xff]  }
  0x76   :  { %450 = vmatprep.subr.bf16.mxu0 %v2615_v15  ;;  %v2606_v19 = vld [vmem:[#allocation9 + $0x98] ss:$12 sps:$4 sm:$0xff]   ;;  %v2608_v23 = vld [vmem:[#allocation9 + $0xb0] ss:$12 sps:$4 sm:$0xff]   ;;  %v2626_v27 = vld [vmem:[#allocation9 + $0x60] ss:$12 sps:$4 sm:$0xff]  }
  0x77   :  { %v2621_v22 = vld [vmem:[#allocation9 + $0x4c] ss:$12 sps:$4 sm:$0xff]   ;;  %v2624_v26 = vld [vmem:[#allocation9 + $0x64] ss:$12 sps:$4 sm:$0xff]   ;;  %v2627_v28 = vld [vmem:[#allocation9 + $0x7c] ss:$12 sps:$4 sm:$0xff]  }
  0x78   :  { %2013 = vmatpush3.bf16.msra.mxu1 %v2598_v5  ;;  %v2629_v29 = vld [vmem:[#allocation9 + $0x78] ss:$12 sps:$4 sm:$0xff]   ;;  %v2630_v30 = vld [vmem:[#allocation9 + $0x94] ss:$12 sps:$4 sm:$0xff]   ;;  %v2632_v31 = vld [vmem:[#allocation9 + $0x90] ss:$12 sps:$4 sm:$0xff]  }
  0x79   :  { %2014 = vmatprep.subr.bf16.mxu1 %v2599_v6  ;;  %451 = vmatpush1.bf16.msra.mxu0 %v2617_v17  ;;  %v2633_v32 = vld [vmem:[#allocation9 + $0xac] ss:$12 sps:$4 sm:$0xff]   ;;  %v2635_v33 = vld [vmem:[#allocation9 + $0xa8] ss:$12 sps:$4 sm:$0xff]   ;;  %v2636_v34 = vld [vmem:[#allocation9 + $0xc4] ss:$12 sps:$4 sm:$0xff]  }
  0x7a   :  { %452 = vmatprep.subr.bf16.mxu0 %v2618_v18  ;;  %v2638_v35 = vld [vmem:[#allocation9 + $0xc0] ss:$12 sps:$4 sm:$0xff]   ;;  %v2639_v36 = vld [vmem:[#allocation9 + $0xdc] ss:$12 sps:$4 sm:$0xff]   ;;  %v2641_v37 = vld [vmem:[#allocation9 + $0xd8] ss:$12 sps:$4 sm:$0xff]  }
  0x7b   :  { %v2642_v38 = vld [vmem:[#allocation9 + $0xf4] ss:$12 sps:$4 sm:$0xff]   ;;  %v2644_v39 = vld [vmem:[#allocation9 + $0xf0] ss:$12 sps:$4 sm:$0xff]   ;;  %v2645_v40 = vld [vmem:[#allocation9 + $0x10c] ss:$12 sps:$4 sm:$0xff]  }
  0x7c   :  { %2015 = vmatpush3.bf16.msra.mxu1 %v2600_v7  ;;  %v2647_v41 = vld [vmem:[#allocation9 + $0x108] ss:$12 sps:$4 sm:$0xff]   ;;  %v2648_v42 = vld [vmem:[#allocation9 + $0x124] ss:$12 sps:$4 sm:$0xff]   ;;  %v2650_v43 = vld [vmem:[#allocation9 + $0x120] ss:$12 sps:$4 sm:$0xff]  }
  0x7d   :  { %2016 = vmatprep.subr.bf16.mxu1 %v2601_v8  ;;  %453 = vmatpush1.bf16.msra.mxu0 %v2620_v21  ;;  %v2651_v44 = vld [vmem:[#allocation9 + $0x13c] ss:$12 sps:$4 sm:$0xff]   ;;  %v2653_v45 = vld [vmem:[#allocation9 + $0x138] ss:$12 sps:$4 sm:$0xff]   ;;  %v2654_v46 = vld [vmem:[#allocation9 + $0x154] ss:$12 sps:$4 sm:$0xff]  }
  0x7e   :  { %454 = vmatprep.subr.bf16.mxu0 %v2621_v22  ;;  %v2656_v47 = vld [vmem:[#allocation9 + $0x150] ss:$12 sps:$4 sm:$0xff]   ;;  %v2657_v48 = vld [vmem:[#allocation9 + $0x16c] ss:$12 sps:$4 sm:$0xff]   ;;  %v2659_v49 = vld [vmem:[#allocation9 + $0x168] ss:$12 sps:$4 sm:$0xff]  }
  0x7f   :  { %v2662_v50 = vld [vmem:[#allocation12 + $0x4] ss:$8 sps:$4 sm:$0xff]   ;;  %v2660_v51 = vld [vmem:[#allocation12] ss:$8 sps:$4 sm:$0xff]   ;;  %v2665_v52 = vld [vmem:[#allocation12 + $0x14] ss:$8 sps:$4 sm:$0xff]  }
  0x80   :  { %2017 = vmatpush3.bf16.msra.mxu1 %v2602_v9  ;;  %v2663_v53 = vld [vmem:[#allocation12 + $0x10] ss:$8 sps:$4 sm:$0xff]   ;;  %v2668_v54 = vld [vmem:[#allocation12 + $0x24] ss:$8 sps:$4 sm:$0xff]   ;;  %v2666_v55 = vld [vmem:[#allocation12 + $0x20] ss:$8 sps:$4 sm:$0xff]  }
  0x81   :  { %2018 = vmatprep.subr.bf16.mxu1 %v2603_v10  ;;  %455 = vmatpush1.bf16.msra.mxu0 %v2623_v24  ;;  %v2671_v56 = vld [vmem:[#allocation12 + $0x34] ss:$8 sps:$4 sm:$0xff]   ;;  %v2669_v57 = vld [vmem:[#allocation12 + $0x30] ss:$8 sps:$4 sm:$0xff]   ;;  %v2674_v58 = vld [vmem:[#allocation12 + $0x44] ss:$8 sps:$4 sm:$0xff]  }
  0x82   :  { %456 = vmatprep.subr.bf16.mxu0 %v2624_v26  ;;  %v2672_v59 = vld [vmem:[#allocation12 + $0x40] ss:$8 sps:$4 sm:$0xff]   ;;  %v2677_v60 = vld [vmem:[#allocation12 + $0x54] ss:$8 sps:$4 sm:$0xff]   ;;  %v2675_v61 = vld [vmem:[#allocation12 + $0x50] ss:$8 sps:$4 sm:$0xff]  }
  0x83   :  { %v2680_v62 = vld [vmem:[#allocation12 + $0x64] ss:$8 sps:$4 sm:$0xff]   ;;  %v2678_v63 = vld [vmem:[#allocation12 + $0x60] ss:$8 sps:$4 sm:$0xff]   ;;  %v2683_v0 = vld [vmem:[#allocation12 + $0x74] ss:$8 sps:$4 sm:$0xff]  }
  0x84   :  { %2019 = vmatpush3.bf16.msra.mxu1 %v2604_v14  ;;  %v2681_v1 = vld [vmem:[#allocation12 + $0x70] ss:$8 sps:$4 sm:$0xff]   ;;  %v2904_v2 = vmov 0   ;;  %v560_v3 = vld [vmem:[#allocation10 + $0x8] sm:$0xff]  ;;  %v559_v5 = vld [vmem:[#allocation10] sm:$0xff] }
  0x85   :  { %2020 = vmatprep.subr.bf16.mxu1 %v2605_v16  ;;  %457 = vmatpush1.bf16.msra.mxu0 %v2626_v27  ;;  %v562_v4 = vld [vmem:[#allocation10 + $0x18] sm:$0xff]  ;;  %v561_v7 = vld [vmem:[#allocation10 + $0x10] sm:$0xff]  ;;  %v564_v8 = vld [vmem:[#allocation10 + $0x28] sm:$0xff] }
  0x86   :  { %458 = vmatprep.subr.bf16.mxu0 %v2627_v28  ;;  %v2030_v6 = vpack.c.bf16 %v562_v4, %v560_v3  ;;  %v566_v9 = vld [vmem:[#allocation10 + $0x38] sm:$0xff]  ;;  %v2032_v10 = vpack.c.bf16 %v561_v7, %v559_v5  ;;  %v563_v12 = vld [vmem:[#allocation10 + $0x20] sm:$0xff]  ;;  %v565_v13 = vld [vmem:[#allocation10 + $0x30] sm:$0xff] }
  0x87   :  { %v2034_v11 = vpack.c.bf16 %v566_v9, %v564_v8  ;;  %v568_v14 = vld [vmem:[#allocation10 + $0x48] sm:$0xff]  ;;  %v570_v15 = vld [vmem:[#allocation10 + $0x58] sm:$0xff]  ;;  %v2036_v16 = vpack.c.bf16 %v565_v13, %v563_v12  ;;  %v567_v18 = vld [vmem:[#allocation10 + $0x40] sm:$0xff] }
  0x88   :  { %2021 = vmatpush3.bf16.msra.mxu1 %v2606_v19  ;;  %v2038_v17 = vpack.c.bf16 %v570_v15, %v568_v14  ;;  %v569_v19 = vld [vmem:[#allocation10 + $0x50] sm:$0xff]  ;;  %v574_v21 = vld [vmem:[#allocation10 + $0x78] sm:$0xff]  ;;  %v571_v24 = vld [vmem:[#allocation10 + $0x60] sm:$0xff] }
  0x89   :  { %2022 = vmatprep.subr.bf16.mxu1 %v2607_v20  ;;  %459 = vmatpush1.bf16.msra.mxu0 %v2629_v29  ;;  %v572_v20 = vld [vmem:[#allocation10 + $0x68] sm:$0xff]  ;;  %v2040_v22 = vpack.c.bf16 %v569_v19, %v567_v18  ;;  %v578_v27 = vld [vmem:[#allocation10 + $0x98] sm:$0xff]  ;;  %v601_v3 = vld [vmem:[#allocation10 + $0x150] sm:$0xff] }
  0x8a   :  { %460 = vmatprep.subr.bf16.mxu0 %v2630_v30  ;;  %v576_v26 = vld [vmem:[#allocation10 + $0x88] sm:$0xff]  ;;  %v575_v30 = vld [vmem:[#allocation10 + $0x80] sm:$0xff]  ;;  %v606_v5 = vld [vmem:[#allocation10 + $0x178] sm:$0xff] }
  0x8b   :  { %v2046_v29 = vpack.c.bf16 %v578_v27, %v576_v26  ;;  %v604_v4 = vld [vmem:[#allocation10 + $0x168] sm:$0xff]  ;;  %v603_v8 = vld [vmem:[#allocation10 + $0x160] sm:$0xff]  ;;  %v605_v9 = vld [vmem:[#allocation10 + $0x170] sm:$0xff] }
  0x8c   :  { %2023 = vmatpush3.bf16.msra.mxu1 %v2608_v23  ;;  %v2042_v23 = vpack.c.bf16 %v574_v21, %v572_v20  ;;  %v2074_v7 = vpack.c.bf16 %v606_v5, %v604_v4  ;;  %v2076_v12 = vpack.c.bf16 %v605_v9, %v603_v8  ;;  %v607_v14 = vld [vmem:[#allocation10 + $0x180] sm:$0xff]  ;;  %v609_v15 = vld [vmem:[#allocation10 + $0x190] sm:$0xff]  ;;  %v987_v4 = vld [vmem:[#allocation13 + $0x78] sm:$0xff] }
  0x8d   :  { %461 = vmatpush1.bf16.msra.mxu0 %v2632_v31  ;;  %2031 = vmatprep.subr.bf16.mxu1 %v2030_v6  ;;  %v577_v31 = vld [vmem:[#allocation10 + $0x90] sm:$0xff]  ;;  %v2080_v18 = vpack.c.bf16 %v609_v15, %v607_v14  ;;  %v611_v20 = vld [vmem:[#allocation10 + $0x1a0] sm:$0xff]  ;;  %v989_v9 = vld [vmem:[#allocation13 + $0x88] sm:$0xff] }
  0x8e   :  { %462 = vmatprep.subr.bf16.mxu0 %v2633_v32  ;;  %v580_v32 = vld [vmem:[#allocation10 + $0xa8] sm:$0xff]  ;;  %v613_v21 = vld [vmem:[#allocation10 + $0x1b0] sm:$0xff] }
  0x8f   :  { %524 = vmatmul.mubr.bf16.vlgmr.msra.gmra.mrb[0].mxu1 %v2609_v25  ;;  %v617_v27 = vld [vmem:[#allocation10 + $0x1d0] sm:$0xff]  ;;  %v993_v15 = vld [vmem:[#allocation13 + $0xa8] sm:$0xff] }
  0x90   :  { %2033 = vmatpush1.bf16.msra.mxu1 %v2032_v10  ;;  %v608_v10 = vld [vmem:[#allocation10 + $0x188] sm:$0xff]  ;;  %v986_v8 = vld [vmem:[#allocation13 + $0x70] sm:$0xff] }
  0x91   :  { %463 = vmatpush1.bf16.msra.mxu0 %v2635_v33  ;;  %2035 = vmatprep.subr.bf16.mxu1 %v2034_v11  ;;  %v582_v33 = vld [vmem:[#allocation10 + $0xb8] sm:$0xff]  ;;  %v990_v14 = vld [vmem:[#allocation13 + $0x90] sm:$0xff] }
  0x92   :  { %464 = vmatprep.subr.bf16.mxu0 %v2636_v34  ;;  %v2048_v34 = vpack.c.bf16 %v577_v31, %v575_v30  ;;  %v610_v11 = vld [vmem:[#allocation10 + $0x198] sm:$0xff]  ;;  %v620_v30 = vld [vmem:[#allocation10 + $0x1e8] sm:$0xff] }
  0x93   :  { %v2078_v13 = vpack.c.bf16 %v610_v11, %v608_v10  ;;  %v622_v31 = vld [vmem:[#allocation10 + $0x1f8] sm:$0xff] }
  0x94   :  { %2037 = vmatpush1.bf16.msra.mxu1 %v2036_v16  ;;  %v612_v16 = vld [vmem:[#allocation10 + $0x1a8] sm:$0xff]  ;;  %v991_v10 = vld [vmem:[#allocation13 + $0x98] sm:$0xff] }
  0x95   :  { %465 = vmatpush1.bf16.msra.mxu0 %v2638_v35  ;;  %2039 = vmatprep.subr.bf16.mxu1 %v2038_v17  ;;  %v2050_v35 = vpack.c.bf16 %v582_v33, %v580_v32  ;;  %v614_v17 = vld [vmem:[#allocation10 + $0x1b8] sm:$0xff] }
  0x96   :  { %466 = vmatprep.subr.bf16.mxu0 %v2639_v36  ;;  %v579_v36 = vld [vmem:[#allocation10 + $0xa0] sm:$0xff]  ;;  %v2082_v19 = vpack.c.bf16 %v614_v17, %v612_v16  ;;  %v995_v16 = vld [vmem:[#allocation13 + $0xb8] sm:$0xff] }
  0x98   :  { %2041 = vmatpush1.bf16.msra.mxu1 %v2040_v22  ;;  %v616_v22 = vld [vmem:[#allocation10 + $0x1c8] sm:$0xff] }
  0x99   :  { %467 = vmatpush1.bf16.msra.mxu0 %v2641_v37  ;;  %2043 = vmatprep.subr.bf16.mxu1 %v2042_v23  ;;  %v581_v37 = vld [vmem:[#allocation10 + $0xb0] sm:$0xff]  ;;  %v618_v23 = vld [vmem:[#allocation10 + $0x1d8] sm:$0xff] }
  0x9a   :  { %468 = vmatprep.subr.bf16.mxu0 %v2642_v38  ;;  %v584_v38 = vld [vmem:[#allocation10 + $0xc8] sm:$0xff]  ;;  %v2086_v26 = vpack.c.bf16 %v618_v23, %v616_v22  ;;  %v999_v22 = vld [vmem:[#allocation13 + $0xd8] sm:$0xff] }
  0x9d   :  { %469 = vmatpush1.bf16.msra.mxu0 %v2644_v39  ;;  %v586_v39 = vld [vmem:[#allocation10 + $0xd8] sm:$0xff] }
  0x9e   :  { %470 = vmatprep.subr.bf16.mxu0 %v2645_v40  ;;  %v2052_v40 = vpack.c.bf16 %v581_v37, %v579_v36  ;;  %v621_v36 = vld [vmem:[#allocation10 + $0x1f0] sm:$0xff]  ;;  %v624_v37 = vld [vmem:[#allocation10 + $0x208] sm:$0xff] }
  0xa1   :  { %471 = vmatpush1.bf16.msra.mxu0 %v2647_v41  ;;  %v2054_v41 = vpack.c.bf16 %v586_v39, %v584_v38  ;;  %v626_v38 = vld [vmem:[#allocation10 + $0x218] sm:$0xff] }
  0xa2   :  { %472 = vmatprep.subr.bf16.mxu0 %v2648_v42  ;;  %v583_v42 = vld [vmem:[#allocation10 + $0xc0] sm:$0xff] }
  0xa5   :  { %473 = vmatpush1.bf16.msra.mxu0 %v2650_v43  ;;  %v585_v43 = vld [vmem:[#allocation10 + $0xd0] sm:$0xff] }
  0xa6   :  { %474 = vmatprep.subr.bf16.mxu0 %v2651_v44  ;;  %v588_v44 = vld [vmem:[#allocation10 + $0xe8] sm:$0xff] }
  0xa9   :  { %475 = vmatpush1.bf16.msra.mxu0 %v2653_v45  ;;  %v590_v45 = vld [vmem:[#allocation10 + $0xf8] sm:$0xff] }
  0xaa   :  { %476 = vmatprep.subr.bf16.mxu0 %v2654_v46  ;;  %v2056_v46 = vpack.c.bf16 %v585_v43, %v583_v42  ;;  %v1991_v43 = vld [vmem:[%s3752_s6] ss:$0 sm:$0xff] }
  0xad   :  { %477 = vmatpush1.bf16.msra.mxu0 %v2656_v47  ;;  %v2058_v47 = vpack.c.bf16 %v590_v45, %v588_v44 }
  0xae   :  { %478 = vmatprep.subr.bf16.mxu0 %v2657_v48  ;;  %v587_v48 = vld [vmem:[#allocation10 + $0xe0] sm:$0xff] }
  0xb1   :  { %479 = vmatpush1.bf16.msra.mxu0 %v2659_v49  ;;  %v589_v49 = vld [vmem:[#allocation10 + $0xf0] sm:$0xff] }
  0xb2   :  { %929 = vmatprep.subr.bf16.mxu0 %v2662_v50  ;;  %v592_v50 = vld [vmem:[#allocation10 + $0x108] sm:$0xff] }
  0xb4   :  { %481 = vmatmul.mubr.bf16.vlgmr.msra.gmra.mrb[0].mxu0 %v2609_v25  ;;  %v573_v25 = vld [vmem:[#allocation10 + $0x70] sm:$0xff] }
  0xb5   :  { %930 = vmatpush1.bf16.msra.mxu0 %v2660_v51  ;;  %961 = vmatprep.mubr.bf16.mxu0 %v2904_v2  ;;  %v2044_v28 = vpack.c.bf16 %v573_v25, %v571_v24  ;;  %v594_v51 = vld [vmem:[#allocation10 + $0x118] sm:$0xff]  ;;  %v599_v2 = vld [vmem:[#allocation10 + $0x140] sm:$0xff]  ;;  %v2084_v24 = vpack.c.bf16 %v613_v21, %v611_v20  ;;  %v994_v20 = vld [vmem:[#allocation13 + $0xb0] sm:$0xff] }
  0xb6   :  { %931 = vmatprep.subr.bf16.mxu0 %v2665_v52  ;;  %v2060_v52 = vpack.c.bf16 %v589_v49, %v587_v48  ;;  %v2072_v6 = vpack.c.bf16 %v601_v3, %v599_v2  ;;  %v615_v25 = vld [vmem:[#allocation10 + $0x1c0] sm:$0xff]  ;;  %v982_v2 = vld [vmem:[#allocation13 + $0x50] sm:$0xff]  ;;  %v985_v3 = vld [vmem:[#allocation13 + $0x68] sm:$0xff] }
  0xb7   :  { %2045 = vmatpush1.bf16.msra.mxu1 %v2044_v28  ;;  %v973_v28 = vld [vmem:[#allocation13 + $0x8] sm:$0xff]  ;;  %v2088_v33 = vpack.c.bf16 %v617_v27, %v615_v25  ;;  %v996_v25 = vld [vmem:[#allocation13 + $0xc0] sm:$0xff] }
  0xb8   :  { %2047 = vmatprep.subr.bf16.mxu1 %v2046_v29  ;;  %v975_v29 = vld [vmem:[#allocation13 + $0x18] sm:$0xff]  ;;  %v997_v21 = vld [vmem:[#allocation13 + $0xc8] sm:$0xff] }
  0xb9   :  { %932 = vmatpush1.bf16.msra.mxu0 %v2663_v53  ;;  %v2062_v53 = vpack.c.bf16 %v594_v51, %v592_v50  ;;  %v3065_v32 = vpack.c.bf16 %v975_v29, %v973_v28  ;;  %v972_v50 = vld [vmem:[#allocation13] sm:$0xff]  ;;  %v974_v51 = vld [vmem:[#allocation13 + $0x10] sm:$0xff]  ;;  %v1001_v27 = vld [vmem:[#allocation13 + $0xe8] sm:$0xff] }
  0xba   :  { %933 = vmatprep.subr.bf16.mxu0 %v2668_v54  ;;  %v591_v54 = vld [vmem:[#allocation10 + $0x100] sm:$0xff]  ;;  %v1003_v28 = vld [vmem:[#allocation13 + $0xf8] sm:$0xff] }
  0xbb   :  { %2049 = vmatpush1.bf16.msra.mxu1 %v2048_v34  ;;  %v2090_v34 = vpack.c.bf16 %v622_v31, %v620_v30  ;;  %v3109_v30 = vpack.c.bf16 %v1003_v28, %v1001_v27  ;;  %v1000_v31 = vld [vmem:[#allocation13 + $0xe0] sm:$0xff] }
  0xbc   :  { %2051 = vmatprep.subr.bf16.mxu1 %v2050_v35  ;;  %v619_v35 = vld [vmem:[#allocation10 + $0x1e0] sm:$0xff] }
  0xbd   :  { %934 = vmatpush1.bf16.msra.mxu0 %v2666_v55  ;;  %v593_v55 = vld [vmem:[#allocation10 + $0x110] sm:$0xff]  ;;  %v2092_v39 = vpack.c.bf16 %v621_v36, %v619_v35  ;;  %v1007_v35 = vld [vmem:[#allocation13 + $0x118] sm:$0xff]  ;;  %v1020_v28 = vld [vmem:[#allocation13 + $0x180] sm:$0xff] }
  0xbe   :  { %935 = vmatprep.subr.bf16.mxu0 %v2671_v56  ;;  %v596_v56 = vld [vmem:[#allocation10 + $0x128] sm:$0xff] }
  0xbf   :  { %2053 = vmatpush1.bf16.msra.mxu1 %v2052_v40  ;;  %v2094_v40 = vpack.c.bf16 %v626_v38, %v624_v37  ;;  %v1004_v38 = vld [vmem:[#allocation13 + $0x100] sm:$0xff] }
  0xc0   :  { %2055 = vmatprep.subr.bf16.mxu1 %v2054_v41 }
  0xc1   :  { %936 = vmatpush1.bf16.msra.mxu0 %v2669_v57  ;;  %v598_v57 = vld [vmem:[#allocation10 + $0x138] sm:$0xff] }
  0xc2   :  { %937 = vmatprep.subr.bf16.mxu0 %v2674_v58  ;;  %v2064_v58 = vpack.c.bf16 %v593_v55, %v591_v54 }
  0xc3   :  { %2057 = vmatpush1.bf16.msra.mxu1 %v2056_v46 }
  0xc4   :  { %2059 = vmatprep.subr.bf16.mxu1 %v2058_v47 }
  0xc5   :  { %938 = vmatpush1.bf16.msra.mxu0 %v2672_v59  ;;  %v2066_v59 = vpack.c.bf16 %v598_v57, %v596_v56  ;;  %v3071_v56 = vpack.c.bf16 %v974_v51, %v972_v50  ;;  %v1012_v50 = vld [vmem:[#allocation13 + $0x140] sm:$0xff]  ;;  %v1014_v51 = vld [vmem:[#allocation13 + $0x150] sm:$0xff] }
  0xc6   :  { %939 = vmatprep.subr.bf16.mxu0 %v2677_v60  ;;  %v595_v60 = vld [vmem:[#allocation10 + $0x120] sm:$0xff] }
  0xc7   :  { %2061 = vmatpush1.bf16.msra.mxu1 %v2060_v52  ;;  %v977_v52 = vld [vmem:[#allocation13 + $0x28] sm:$0xff] }
  0xc8   :  { %2063 = vmatprep.subr.bf16.mxu1 %v2062_v53  ;;  %v979_v53 = vld [vmem:[#allocation13 + $0x38] sm:$0xff] }
  0xc9   :  { %940 = vmatpush1.bf16.msra.mxu0 %v2675_v61  ;;  %v597_v61 = vld [vmem:[#allocation10 + $0x130] sm:$0xff] }
  0xca   :  { %941 = vmatprep.subr.bf16.mxu0 %v2680_v62  ;;  %v600_v62 = vld [vmem:[#allocation10 + $0x148] sm:$0xff] }
  0xcb   :  { %2065 = vmatpush1.bf16.msra.mxu1 %v2064_v58  ;;  %v3073_v58 = vpack.c.bf16 %v979_v53, %v977_v52  ;;  %v1017_v52 = vld [vmem:[#allocation13 + $0x168] sm:$0xff]  ;;  %v1019_v53 = vld [vmem:[#allocation13 + $0x178] sm:$0xff] }
  0xcc   :  { %2067 = vmatprep.subr.bf16.mxu1 %v2066_v59  ;;  %v976_v59 = vld [vmem:[#allocation13 + $0x20] sm:$0xff] }
  0xcd   :  { %942 = vmatpush1.bf16.msra.mxu0 %v2678_v63  ;;  %v602_v63 = vld [vmem:[#allocation10 + $0x158] sm:$0xff] }
  0xce   :  { %943 = vmatprep.subr.bf16.mxu0 %v2683_v0  ;;  %v2068_v0 = vpack.c.bf16 %v597_v61, %v595_v60  ;;  %v978_v60 = vld [vmem:[#allocation13 + $0x30] sm:$0xff]  ;;  %v981_v61 = vld [vmem:[#allocation13 + $0x48] sm:$0xff] }
  0xd0   :  { %2069 = vmatpush1.bf16.msra.mxu1 %v2068_v0 }
  0xd1   :  { %944 = vmatpush1.bf16.msra.mxu0 %v2681_v1  ;;  %v2070_v1 = vpack.c.bf16 %v602_v63, %v600_v62  ;;  %v983_v62 = vld [vmem:[#allocation13 + $0x58] sm:$0xff]  ;;  %v3076_v63 = vpack.c.bf16 %v978_v60, %v976_v59  ;;  %v1018_v59 = vld [vmem:[#allocation13 + $0x170] sm:$0xff] }
  0xd2   :  { %2127 = vmatprep.subr.bf16.mxu0 %v3065_v32  ;;  %v3079_v0 = vpack.c.bf16 %v983_v62, %v981_v61  ;;  %v3138_v61 = vpack.c.bf16 %v1019_v53, %v1017_v52  ;;  %v1024_v53 = vld [vmem:[#allocation13 + $0x1a0] sm:$0xff] }
  0xd3   :  { %2071 = vmatprep.subr.bf16.mxu1 %v2070_v1  ;;  %v980_v1 = vld [vmem:[#allocation13 + $0x40] sm:$0xff] }
  0xd4   :  { %2073 = vmatpush1.bf16.msra.mxu1 %v2072_v6  ;;  %v3082_v5 = vpack.c.bf16 %v982_v2, %v980_v1  ;;  %v3085_v6 = vpack.c.bf16 %v987_v4, %v985_v3  ;;  %v1021_v3 = vld [vmem:[#allocation13 + $0x188] sm:$0xff]  ;;  %v1023_v4 = vld [vmem:[#allocation13 + $0x198] sm:$0xff] }
  0xd5   :  { %2075 = vmatprep.subr.bf16.mxu1 %v2074_v7  ;;  %v984_v7 = vld [vmem:[#allocation13 + $0x60] sm:$0xff] }
  0xd6   :  { %v3088_v11 = vpack.c.bf16 %v986_v8, %v984_v7 }
  0xd8   :  { %2077 = vmatpush1.bf16.msra.mxu1 %v2076_v12  ;;  %v3091_v12 = vpack.c.bf16 %v991_v10, %v989_v9 }
  0xd9   :  { %2079 = vmatprep.subr.bf16.mxu1 %v2078_v13  ;;  %v988_v13 = vld [vmem:[#allocation13 + $0x80] sm:$0xff] }
  0xda   :  { %v3094_v17 = vpack.c.bf16 %v990_v14, %v988_v13 }
  0xdc   :  { %2081 = vmatpush1.bf16.msra.mxu1 %v2080_v18  ;;  %v3097_v18 = vpack.c.bf16 %v995_v16, %v993_v15  ;;  %v623_v16 = vld [vmem:[#allocation10 + $0x200] sm:$0xff] }
  0xdd   :  { %2083 = vmatprep.subr.bf16.mxu1 %v2082_v19  ;;  %v992_v19 = vld [vmem:[#allocation13 + $0xa0] sm:$0xff] }
  0xde   :  { %v3100_v23 = vpack.c.bf16 %v994_v20, %v992_v19  ;;  %v625_v19 = vld [vmem:[#allocation10 + $0x210] sm:$0xff]  ;;  %v628_v20 = vld [vmem:[#allocation10 + $0x228] sm:$0xff] }
  0xe0   :  { %2085 = vmatpush1.bf16.msra.mxu1 %v2084_v24  ;;  %v3103_v24 = vpack.c.bf16 %v999_v22, %v997_v21  ;;  %v3151_v21 = vpack.c.bf16 %v1023_v4, %v1021_v3  ;;  %v631_v4 = vld [vmem:[#allocation10 + $0x240] sm:$0xff] }
  0xe1   :  { %2087 = vmatprep.subr.bf16.mxu1 %v2086_v26  ;;  %v998_v26 = vld [vmem:[#allocation13 + $0xd0] sm:$0xff] }
  0xe2   :  { %v3106_v29 = vpack.c.bf16 %v998_v26, %v996_v25  ;;  %v630_v25 = vld [vmem:[#allocation10 + $0x238] sm:$0xff] }
  0xe4   :  { %2089 = vmatpush1.bf16.msra.mxu1 %v2088_v33  ;;  %v1002_v33 = vld [vmem:[#allocation13 + $0xf0] sm:$0xff] }
  0xe5   :  { %2091 = vmatprep.subr.bf16.mxu1 %v2090_v34  ;;  %v1005_v34 = vld [vmem:[#allocation13 + $0x108] sm:$0xff]  ;;  %v3112_v36 = vpack.c.bf16 %v1002_v33, %v1000_v31  ;;  %v1022_v31 = vld [vmem:[#allocation13 + $0x190] sm:$0xff] }
  0xe6   :  { %v3115_v37 = vpack.c.bf16 %v1007_v35, %v1005_v34  ;;  %v1025_v33 = vld [vmem:[#allocation13 + $0x1a8] sm:$0xff]  ;;  %v1027_v34 = vld [vmem:[#allocation13 + $0x1b8] sm:$0xff] }
  0xe7   :  { %v3158_v52 = vpack.c.bf16 %v1027_v34, %v1025_v33  ;;  %v642_v33 = vld [vmem:[#allocation10 + $0x298] sm:$0xff] }
  0xe8   :  { %2093 = vmatpush1.bf16.msra.mxu1 %v2092_v39  ;;  %v1006_v39 = vld [vmem:[#allocation13 + $0x110] sm:$0xff] }
  0xe9   :  { %2095 = vmatprep.subr.bf16.mxu1 %v2094_v40  ;;  %v1009_v40 = vld [vmem:[#allocation13 + $0x128] sm:$0xff] }
 0x162   :  { %v2024_v41 = vpop.f32.mrb[0].mxu1 }
 0x163   :  { %v2025_v42 = vpop.f32.mrb[1].mxu1 }
 0x164   :  { %v2026_v44 = vadd.f32 %v2025_v42, %v2024_v41  ;;  %v2027_v45 = vpop.f32.mrb[2].mxu1  ;;  %v1011_v41 = vld [vmem:[#allocation13 + $0x138] sm:$0xff]  ;;  %v3118_v42 = vpack.c.bf16 %v1006_v39, %v1004_v38  ;;  %v557_v38 = vld [vmem:[#allocation7] sm:$0xff]  ;;  %v2096_v39 = vpack.c.bf16 %v625_v19, %v623_v16  ;;  %v1028_v16 = vld [vmem:[#allocation13 + $0x1c0] sm:$0xff] }
 0x165   :  { %v2028_v46 = vpop.f32.mrb[3].mxu1  ;;  %v1030_v19 = vld [vmem:[#allocation13 + $0x1d0] sm:$0xff] }
 0x166   :  { %v816_v47 = vadd.f32 %v2026_v44, %v1991_v43  ;;  %v2029_v48 = vadd.f32 %v2028_v46, %v2027_v45  ;;  %v1008_v44 = vld [vmem:[#allocation13 + $0x120] sm:$0xff]  ;;  %v1010_v45 = vld [vmem:[#allocation13 + $0x130] sm:$0xff]  ;;  %v1013_v46 = vld [vmem:[#allocation13 + $0x148] sm:$0xff] }
 0x168   :  { %v817_v49 = vadd.f32 %v2029_v48, %v1991_v43  ;;  %v818_v54 = vmax.f32 %v816_v47, 0.0  ;;  %v3121_v43 = vpack.c.bf16 %v1011_v41, %v1009_v40  ;;  %v1015_v47 = vld [vmem:[#allocation13 + $0x158] sm:$0xff]  ;;  %v3124_v48 = vpack.c.bf16 %v1010_v45, %v1008_v44  ;;  %v627_v44 = vld [vmem:[#allocation10 + $0x220] sm:$0xff]  ;;  %v629_v45 = vld [vmem:[#allocation10 + $0x230] sm:$0xff] }
 0x169   :  { %v2098_v41 = vpack.c.bf16 %v630_v25, %v628_v20 }
 0x16a   :  { %v819_v55 = vmax.f32 %v817_v49, 0.0  ;;  %v3127_v49 = vpack.c.bf16 %v1015_v47, %v1013_v46  ;;  %v632_v46 = vld [vmem:[#allocation10 + $0x248] sm:$0xff]  ;;  %v3156_v47 = vpack.c.bf16 %v1022_v31, %v1020_v28  ;;  %v3167_v28 = vpack.c.bf16 %v1030_v19, %v1028_v16 }
 0x16b   :  { %v640_v31 = vld [vmem:[#allocation10 + $0x288] sm:$0xff] }
 0x16c   :  { %v820_v57 = vpack.c.bf16 %v819_v55, %v818_v54  ;;  %v3132_v54 = vstv %s3746_s0  ;;  %v3135_v55 = vpack.c.bf16 %v1014_v51, %v1012_v50  ;;  %v634_v50 = vld [vmem:[#allocation10 + $0x258] sm:$0xff]  ;;  %3762 = vst [vmem:[#allocation21_spill] sm:$0xff] %v3167_v28 }
 0x16d   :  { %v2102_v3 = vpack.c.bf16 %v634_v50, %v632_v46  ;;  %v643_v46 = vld [vmem:[#allocation10 + $0x2a0] sm:$0xff]  ;;  %v645_v50 = vld [vmem:[#allocation10 + $0x2b0] sm:$0xff] }
 0x16e   :  { %962 = vmatmul.mubr.bf16.vlgmr.msra.gmra.mrb[4].mxu0 %v820_v57  ;;  %v1016_v57 = vld [vmem:[#allocation13 + $0x160] sm:$0xff] }
 0x16f   :  { %2129 = vmatpush1.bf16.msra.mxu0 %v3071_v56  ;;  %v3143_v8 = vpack.c.bf16 %v1018_v59, %v1016_v57  ;;  %v1026_v57 = vld [vmem:[#allocation13 + $0x1b0] sm:$0xff]  ;;  %v1029_v59 = vld [vmem:[#allocation13 + $0x1c8] sm:$0xff] }
 0x170   :  { %2131 = vmatprep.subr.bf16.mxu0 %v3073_v58 }
 0x173   :  { %2133 = vmatpush1.bf16.msra.mxu0 %v3076_v63 }
 0x174   :  { %2135 = vmatprep.subr.bf16.mxu0 %v3079_v0 }
 0x177   :  { %2137 = vmatpush1.bf16.msra.mxu0 %v3082_v5 }
 0x178   :  { %2139 = vmatprep.subr.bf16.mxu0 %v3085_v6 }
 0x17b   :  { %2141 = vmatpush1.bf16.msra.mxu0 %v3088_v11 }
 0x17c   :  { %2143 = vmatprep.subr.bf16.mxu0 %v3091_v12 }
 0x17f   :  { %2145 = vmatpush1.bf16.msra.mxu0 %v3094_v17 }
 0x180   :  { %2147 = vmatprep.subr.bf16.mxu0 %v3097_v18 }
 0x183   :  { %2149 = vmatpush1.bf16.msra.mxu0 %v3100_v23 }
 0x184   :  { %2151 = vmatprep.subr.bf16.mxu0 %v3103_v24 }
 0x187   :  { %2153 = vmatpush1.bf16.msra.mxu0 %v3106_v29  ;;  %v482_v60 = vpop.f32.mrb[0].mxu0 }
 0x188   :  { %2155 = vmatprep.subr.bf16.mxu0 %v3109_v30  ;;  %v533_v62 = vsub.f32 %v482_v60, %v3132_v54  ;;  %v541_v1 = vsub.f32 0.0, %v482_v60  ;;  %v3141_v2 = vpop.f32.mrb[1].mxu0  ;;  %v1031_v60 = vld [vmem:[#allocation13 + $0x1d8] sm:$0xff] }
 0x189   :  { %v486_v7 = vpop.f32.mrb[2].mxu0 }
 0x18a   :  { %v537_v9 = vmax.f32 %v533_v62, 0.0  ;;  %v545_v10 = vsub.f32 %v541_v1, %v3132_v54  ;;  %v535_v13 = vsub.f32 %v486_v7, %v3132_v54  ;;  %v543_v14 = vsub.f32 0.0, %v486_v7  ;;  %v3147_v15 = vpop.f32.mrb[3].mxu0  ;;  %v558_v1 = vld [vmem:[#allocation7 + $0x8] sm:$0xff]  ;;  %v633_v7 = vld [vmem:[#allocation10 + $0x250] sm:$0xff] }
 0x18b   :  { %2157 = vmatpush1.bf16.msra.mxu0 %v3112_v36  ;;  %v2100_v62 = vpack.c.bf16 %v629_v45, %v627_v44  ;;  %v2104_v20 = vpack.c.bf16 %v633_v7, %v631_v4  ;;  %v654_v4 = vld [vmem:[#allocation10 + $0x2f8] sm:$0xff]  ;;  %v534_v7 = vsub.f32 %v3141_v2, %v3132_v54 }
 0x18c   :  { %2159 = vmatprep.subr.bf16.mxu0 %v3115_v37  ;;  %v549_v22 = vmax.f32 %v545_v10, 0.0  ;;  %v539_v26 = vmax.f32 %v535_v13, 0.0  ;;  %v547_v27 = vsub.f32 %v543_v14, %v3132_v54  ;;  %v3161_v10 = vpack.c.bf16 %v1026_v57, %v1024_v53  ;;  %v638_v13 = vld [vmem:[#allocation10 + $0x278] sm:$0xff] }
 0x18d   :  { %v3164_v14 = vpack.c.bf16 %v1031_v60, %v1029_v59  ;;  %v650_v53 = vld [vmem:[#allocation10 + $0x2d8] sm:$0xff]  ;;  %v542_v57 = vsub.f32 0.0, %v3141_v2  ;;  %v2116_v59 = vpack.c.bf16 %v645_v50, %v643_v46 }
 0x18e   :  { %v553_v35 = vsub.f32 %v537_v9, %v549_v22  ;;  %v551_v40 = vmax.f32 %v547_v27, 0.0  ;;  %v636_v9 = vld [vmem:[#allocation10 + $0x268] sm:$0xff]  ;;  %v2905_v22 = vmov 0.0   ;;  %v637_v27 = vld [vmem:[#allocation10 + $0x270] sm:$0xff] }
 0x18f   :  { %2161 = vmatpush1.bf16.msra.mxu0 %v3118_v42  ;;  %v2106_v25 = vpack.c.bf16 %v638_v13, %v636_v9  ;;  %v546_v9 = vsub.f32 %v542_v57, %v3132_v54  ;;  %v544_v13 = vsub.f32 0.0, %v3147_v15 }
 0x190   :  { %2163 = vmatprep.subr.bf16.mxu0 %v3121_v43  ;;  %719 = vmatprep.mubr.f32.mxu1 %v553_v35  ;;  %v555_v51 = vsub.f32 %v539_v26, %v551_v40  ;;  %v635_v26 = vld [vmem:[#allocation10 + $0x260] sm:$0xff]  ;;  %v2110_v35 = vpack.c.bf16 %v642_v33, %v640_v31  ;;  %v644_v40 = vld [vmem:[#allocation10 + $0x2a8] sm:$0xff]  ;;  %v536_v31 = vsub.f32 %v3147_v15, %v3132_v54 }
 0x191   :  { %720 = vmatmul.mubr.f32.vlgmr.msra.gmra.mrb[4].mxu1 %v557_v38  ;;  %v2108_v34 = vpack.c.bf16 %v637_v27, %v635_v26  ;;  %v639_v38 = vld [vmem:[#allocation10 + $0x280] sm:$0xff]  ;;  %v538_v26 = vmax.f32 %v534_v7, 0.0  ;;  %v550_v27 = vmax.f32 %v546_v9, 0.0  ;;  %v548_v33 = vsub.f32 %v544_v13, %v3132_v54  ;;  %v1034_v54 = vld [vmem:[#allocation13 + $0x1f0] sm:$0xff] }
 0x192   :  { %2097 = vmatpush1.bf16.msra.mxu1 %v2096_v39  ;;  %725 = vmatprep.mubr.f32.mxu1 %v555_v51  ;;  %v641_v39 = vld [vmem:[#allocation10 + $0x290] sm:$0xff]  ;;  %v648_v51 = vld [vmem:[#allocation10 + $0x2c8] sm:$0xff]  ;;  %v1032_v15 = vld [vmem:[#allocation13 + $0x1e0] sm:$0xff] }
 0x193   :  { %2165 = vmatpush1.bf16.msra.mxu0 %v3124_v48  ;;  %2099 = vmatprep.subr.bf16.mxu1 %v2098_v41  ;;  %v646_v41 = vld [vmem:[#allocation10 + $0x2b8] sm:$0xff]  ;;  %v2112_v44 = vpack.c.bf16 %v641_v39, %v639_v38  ;;  %v2118_v60 = vpack.c.bf16 %v650_v53, %v648_v51  ;;  %v554_v2 = vsub.f32 %v538_v26, %v550_v27  ;;  %v552_v38 = vmax.f32 %v548_v33, 0.0  ;;  %v837_v51 = vld [vmem:[%s3753_s7] sm:$0x3]  ;;  %s2906_s7 = smov [#allocation15]  }
 0x194   :  { %2167 = vmatprep.subr.bf16.mxu0 %v3127_v49  ;;  %v2114_v45 = vpack.c.bf16 %v646_v41, %v644_v40  ;;  %v1033_v40 = vld [vmem:[#allocation13 + $0x1e8] sm:$0xff]  ;;  %v1035_v41 = vld [vmem:[#allocation13 + $0x1f8] sm:$0xff]  ;;  %s1926_s28 = sshll.u32 %s2906_s7, 4  ;;  %s1927_s28 = int_to_ptr.vmem [resolvable:$true] %s1926_s28 }
 0x195   :  { %726 = vmatmul.mubr.f32.gmra.mrb[6].mxu1 %v558_v1  ;;  %v649_v1 = vld [vmem:[#allocation10 + $0x2d0] sm:$0xff]  ;;  %s2860_s4 = scalar_lea.vmem %s1927_s28, 512  ;;  %p2865_p7 = scmp.lt.s32.totalorder %s1927_s28, %s1927_s28 }
 0x196   :  { %2101 = vmatpush1.bf16.msra.mxu1 %v2100_v62  ;;  %796 = vmatprep.mubr.f32.mxu1 %v2905_v22  ;;  %v647_v62 = vld [vmem:[#allocation10 + $0x2c0] sm:$0xff]  ;;  %p2861_p6 = scmp.ne.s32.totalorder %s1927_s28, %s2860_s4  ;;  %p2866_p8 = scmp.lt.s32.totalorder %s2860_s4, %s2860_s4 }
 0x197   :  { %2169 = vmatpush1.bf16.msra.mxu0 %v3135_v55  ;;  %2103 = vmatprep.subr.bf16.mxu1 %v2102_v3  ;;  %v652_v3 = vld [vmem:[#allocation10 + $0x2e8] sm:$0xff]  ;;  %v2120_v16 = vpack.c.bf16 %v649_v1, %v647_v62 }
 0x198   :  { %2171 = vmatprep.subr.bf16.mxu0 %v3138_v61  ;;  %v2122_v19 = vpack.c.bf16 %v654_v4, %v652_v3  ;;  %p2867_p9 = por %p2866_p8, %p2865_p7 }
 0x19a   :  { %2105 = vmatpush1.bf16.msra.mxu1 %v2104_v20  ;;  %v651_v20 = vld [vmem:[#allocation10 + $0x2e0] sm:$0xff]  ;;  %p2868_p10 = pnand %p2867_p9, %p2861_p6 }
 0x19b   :  { %2173 = vmatpush1.bf16.msra.mxu0 %v3143_v8  ;;  %2107 = vmatprep.subr.bf16.mxu1 %v2106_v25  ;;  %v653_v25 = vld [vmem:[#allocation10 + $0x2f0] sm:$0xff] }
 0x19c   :  { %2175 = vmatprep.subr.bf16.mxu0 %v3151_v21 }
 0x19e   :  { %2109 = vmatpush1.bf16.msra.mxu1 %v2108_v34  ;;  %v2124_v34 = vpack.c.bf16 %v653_v25, %v651_v20 }
 0x19f   :  { %2177 = vmatpush1.bf16.msra.mxu0 %v3156_v47  ;;  %2111 = vmatprep.subr.bf16.mxu1 %v2110_v35  ;;  %v540_v35 = vmax.f32 %v536_v31, 0.0 }
 0x1a0   :  { %2179 = vmatprep.subr.bf16.mxu0 %v3158_v52 }
 0x1a1   :  { %v556_v39 = vsub.f32 %v540_v35, %v552_v38 }
 0x1a2   :  { %2113 = vmatpush1.bf16.msra.mxu1 %v2112_v44  ;;  %v3181_v44 = vpack.c.bf16 %v1035_v41, %v1033_v40 }
 0x1a3   :  { %2181 = vmatpush1.bf16.msra.mxu0 %v3161_v10  ;;  %2115 = vmatprep.subr.bf16.mxu1 %v2114_v45  ;;  %v3184_v45 = vpack.c.bf16 %v1034_v54, %v1032_v15 }
 0x1a4   :  { %2183 = vmatprep.subr.bf16.mxu0 %v3164_v14  ;;  %3763 = vst [vmem:[#allocation22_spill] sm:$0xff] %v3181_v44 }
 0x1a5   :  { %3764 = vst [vmem:[#allocation23_spill] sm:$0xff] %v3184_v45 }
 0x1a6   :  { %2117 = vmatpush1.bf16.msra.mxu1 %v2116_v59 }
 0x1a7   :  { %2185 = vmatpush1.bf16.msra.mxu0 %v3167_v28  ;;  %2119 = vmatprep.subr.bf16.mxu1 %v2118_v60 }
 0x1a8   :  { %2187 = vmatprep.subr.bf16.mxu0 %v3181_v44 }
 0x1aa   :  { %2121 = vmatpush1.bf16.msra.mxu1 %v2120_v16 }
 0x1ab   :  { %2123 = vmatprep.subr.bf16.mxu1 %v2122_v19  ;;  %2189 = vmatpush1.bf16.msra.mxu0 %v3184_v45 }
 0x1ac   :  { %2255 = vmatprep.subr.bf16.mxu0 %v3065_v32 }
 0x1ae   :  { %2125 = vmatpush1.bf16.msra.mxu1 %v2124_v34 }
 0x1af   :  { %2191 = vmatprep.subr.bf16.mxu1 %v3065_v32 }
 0x1b1   :  { %797 = vmatmul.mubr.f32.vlgmr.msra.gmra.mrb[4].mxu1 %v554_v2 }
 0x1b2   :  { %802 = vmatprep.mubr.f32.mxu1 %v2905_v22  ;;  %2193 = vmatpush1.bf16.msra.mxu1 %v3071_v56  ;;  %v839_v22 = vlaneseq }
 0x1b3   :  { %2195 = vmatprep.subr.bf16.mxu1 %v3073_v58 }
 0x1b4   :  { %v840_v46 = vshrl.u32 %v839_v22, 7 }
 0x1b5   :  { %803 = vmatmul.mubr.f32.gmra.mrb[6].mxu1 %v556_v39 }
 0x1b6   :  { %2197 = vmatpush1.bf16.msra.mxu1 %v3076_v63  ;;  %v845_v50 = vsub.s32 1, %v840_v46  ;;  %v841_v53 = vsub.s32 0, %v840_v46 }
 0x1b7   :  { %2199 = vmatprep.subr.bf16.mxu1 %v3079_v0 }
 0x1b8   :  { %v846_v57 = vrot.slane %v837_v51, %v845_v50  ;;  %v842_v59 = vrot.slane %v837_v51, %v841_v53 }
 0x1ba   :  { %2201 = vmatpush1.bf16.msra.mxu1 %v3082_v5 }
 0x1bb   :  { %2203 = vmatprep.subr.bf16.mxu1 %v3085_v6 }
 0x1be   :  { %2205 = vmatpush1.bf16.msra.mxu1 %v3088_v11 }
 0x1bf   :  { %2207 = vmatprep.subr.bf16.mxu1 %v3091_v12 }
 0x1c2   :  { %2209 = vmatpush1.bf16.msra.mxu1 %v3094_v17 }
 0x1c3   :  { %2211 = vmatprep.subr.bf16.mxu1 %v3097_v18 }
 0x1c6   :  { %2213 = vmatpush1.bf16.msra.mxu1 %v3100_v23 }
 0x1c7   :  { %2215 = vmatprep.subr.bf16.mxu1 %v3103_v24 }
 0x1ca   :  { %2217 = vmatpush1.bf16.msra.mxu1 %v3106_v29 }
 0x1cb   :  { %2219 = vmatprep.subr.bf16.mxu1 %v3109_v30 }
 0x1ce   :  { %2221 = vmatpush1.bf16.msra.mxu1 %v3112_v36 }
 0x1cf   :  { %2223 = vmatprep.subr.bf16.mxu1 %v3115_v37 }
 0x1d2   :  { %2225 = vmatpush1.bf16.msra.mxu1 %v3118_v42 }
 0x1d3   :  { %2227 = vmatprep.subr.bf16.mxu1 %v3121_v43 }
 0x1d6   :  { %2229 = vmatpush1.bf16.msra.mxu1 %v3124_v48 }
 0x1d7   :  { %2231 = vmatprep.subr.bf16.mxu1 %v3127_v49 }
 0x1da   :  { %2233 = vmatpush1.bf16.msra.mxu1 %v3135_v55 }
 0x1db   :  { %2235 = vmatprep.subr.bf16.mxu1 %v3138_v61 }
 0x1de   :  { %2237 = vmatpush1.bf16.msra.mxu1 %v3143_v8 }
 0x1df   :  { %2239 = vmatprep.subr.bf16.mxu1 %v3151_v21 }
 0x1e2   :  { %2241 = vmatpush1.bf16.msra.mxu1 %v3156_v47 }
 0x1e3   :  { %2243 = vmatprep.subr.bf16.mxu1 %v3158_v52 }
 0x1e6   :  { %2245 = vmatpush1.bf16.msra.mxu1 %v3161_v10 }
 0x1e7   :  { %2247 = vmatprep.subr.bf16.mxu1 %v3164_v14 }
 0x1ea   :  { %2249 = vmatpush1.bf16.msra.mxu1 %v3167_v28 }
 0x1eb   :  { %2251 = vmatprep.subr.bf16.mxu1 %v3181_v44 }
 0x1ee   :  { %2253 = vmatpush1.bf16.msra.mxu1 %v3184_v45 }
 0x1ef   :  { %2319 = vmatprep.subr.bf16.mxu1 %v3065_v32 }
 0x241   :  { %v963_v60 = vpop.f32.mrb[4].mxu0 }
 0x242   :  { %v965_v62 = vpop.f32.mrb[5].mxu0  ;;  %v3224_v4 = vadd.f32 %v963_v60, %v842_v59 }
 0x243   :  { %v3222_v1 = vadd.f32 %v965_v62, %v846_v57  ;;  %v967_v3 = vpop.f32.mrb[6].mxu0 }
 0x244   :  { %v969_v7 = vpop.f32.mrb[7].mxu0  ;;  %v3232_v13 = vadd.f32 %v967_v3, %v842_v59 }
 0x245   :  { %v3226_v9 = vadd.f32 %v969_v7, %v846_v57  ;;  %1100 = vmatprep.mubr.f32.mxu0 %v3222_v1 }
 0x246   :  { %1101 = vmatmul.mubr.f32.vlgmr.msra.gmra.mrb[8].mxu0 %v3224_v4 }
 0x247   :  { %1106 = vmatprep.mubr.f32.mxu0 %v3226_v9  ;;  %2257 = vmatpush1.bf16.msra.mxu0 %v3071_v56 }
 0x248   :  { %2259 = vmatprep.subr.bf16.mxu0 %v3073_v58 }
 0x24a   :  { %1107 = vmatmul.mubr.f32.gmra.mrb[10].mxu0 %v3232_v13 }
 0x24b   :  { %2261 = vmatpush1.bf16.msra.mxu0 %v3076_v63 }
 0x24c   :  { %2263 = vmatprep.subr.bf16.mxu0 %v3079_v0 }
 0x24f   :  { %2265 = vmatpush1.bf16.msra.mxu0 %v3082_v5 }
 0x250   :  { %2267 = vmatprep.subr.bf16.mxu0 %v3085_v6 }
 0x253   :  { %2269 = vmatpush1.bf16.msra.mxu0 %v3088_v11 }
 0x254   :  { %2271 = vmatprep.subr.bf16.mxu0 %v3091_v12 }
 0x257   :  { %2273 = vmatpush1.bf16.msra.mxu0 %v3094_v17 }
 0x258   :  { %2275 = vmatprep.subr.bf16.mxu0 %v3097_v18 }
 0x25b   :  { %2277 = vmatpush1.bf16.msra.mxu0 %v3100_v23 }
 0x25c   :  { %2279 = vmatprep.subr.bf16.mxu0 %v3103_v24 }
 0x25f   :  { %2281 = vmatpush1.bf16.msra.mxu0 %v3106_v29 }
 0x260   :  { %2283 = vmatprep.subr.bf16.mxu0 %v3109_v30 }
 0x263   :  { %2285 = vmatpush1.bf16.msra.mxu0 %v3112_v36 }
 0x264   :  { %2287 = vmatprep.subr.bf16.mxu0 %v3115_v37 }
 0x267   :  { %2289 = vmatpush1.bf16.msra.mxu0 %v3118_v42 }
 0x268   :  { %2291 = vmatprep.subr.bf16.mxu0 %v3121_v43 }
 0x26b   :  { %2293 = vmatpush1.bf16.msra.mxu0 %v3124_v48 }
 0x26c   :  { %2295 = vmatprep.subr.bf16.mxu0 %v3127_v49 }
 0x26f   :  { %2297 = vmatpush1.bf16.msra.mxu0 %v3135_v55 }
 0x270   :  { %2299 = vmatprep.subr.bf16.mxu0 %v3138_v61 }
 0x273   :  { %2301 = vmatpush1.bf16.msra.mxu0 %v3143_v8 }
 0x274   :  { %2303 = vmatprep.subr.bf16.mxu0 %v3151_v21 }
 0x277   :  { %2305 = vmatpush1.bf16.msra.mxu0 %v3156_v47 }
 0x278   :  { %2307 = vmatprep.subr.bf16.mxu0 %v3158_v52 }
 0x27b   :  { %2309 = vmatpush1.bf16.msra.mxu0 %v3161_v10 }
 0x27c   :  { %2311 = vmatprep.subr.bf16.mxu0 %v3164_v14 }
 0x27f   :  { %2313 = vmatpush1.bf16.msra.mxu0 %v3167_v28 }
 0x280   :  { %2315 = vmatprep.subr.bf16.mxu0 %v3181_v44 }
 0x283   :  { %2317 = vmatpush1.bf16.msra.mxu0 %v3184_v45 }
 0x284   :  { %2383 = vmatprep.subr.bf16.mxu0 %v3065_v32  ;;  %v798_v16 = vpop.f32.mrb[4].mxu1 }
 0x285   :  { %v800_v19 = vpop.f32.mrb[5].mxu1 }
 0x288   :  { %v804_v20 = vpop.f32.mrb[6].mxu1 }
 0x289   :  { %v806_v25 = vpop.f32.mrb[7].mxu1 }
 0x319   :  { %v1102_v26 = vpop.f32.mrb[8].mxu0 }
 0x31a   :  { %v3266_v27 = vsub.f32 %v1102_v26, %v798_v16  ;;  %v1104_v31 = vpop.f32.mrb[9].mxu0 }
 0x31b   :  { %v3268_v33 = vsub.f32 %v1104_v31, %v800_v19 }
 0x31c   :  { %v1121_v34 = vmul.f32 %v3266_v27, %v3266_v27  ;;  %v3278_v39 = vsub.f32 0.0, %v3266_v27 }
 0x31d   :  { %v3273_v2 = vsub.f32 0.0, %v3268_v33  ;;  %v1108_v35 = vpop.f32.mrb[10].mxu0  ;;  %v1122_v38 = vmul.f32 %v3268_v33, %v3268_v33 }
 0x31e   :  { %v3280_v40 = vsub.f32 %v1108_v35, %v804_v20  ;;  %v1110_v41 = vpop.f32.mrb[11].mxu0 }
 0x31f   :  { %v3282_v15 = vsub.f32 %v1110_v41, %v806_v25  ;;  %1195 = vmatprep.mubr.f32.mxu1 %v3273_v2  ;;  %v1125_v54 = vadd.f32 %v1122_v38, %v1121_v34 }
 0x320   :  { %1196 = vmatmul.mubr.f32.vlgmr.msra.gmra.mrb[8].mxu1 %v3278_v39  ;;  %v1123_v22 = vmul.f32 %v3280_v40, %v3280_v40  ;;  %v3295_v51 = vsub.f32 0.0, %v3280_v40 }
 0x321   :  { %v3289_v46 = vsub.f32 0.0, %v3282_v15  ;;  %1126 = vadd.xlane.f32.xlu1 %v1125_v54  ;;  %v1124_v50 = vmul.f32 %v3282_v15, %v3282_v15  ;;  %2321 = vmatpush1.bf16.msra.mxu1 %v3071_v56 }
 0x322   :  { %2323 = vmatprep.subr.bf16.mxu1 %v3073_v58 }
 0x323   :  { %1201 = vmatprep.mubr.f32.mxu1 %v3289_v46  ;;  %v1128_v53 = vadd.f32 %v1124_v50, %v1123_v22 }
 0x324   :  { %1202 = vmatmul.mubr.f32.gmra.mrb[10].mxu1 %v3295_v51 }
 0x325   :  { %1129 = vadd.xlane.f32.xlu1 %v1128_v53  ;;  %2325 = vmatpush1.bf16.msra.mxu1 %v3076_v63 }
 0x326   :  { %2327 = vmatprep.subr.bf16.mxu1 %v3079_v0 }
 0x329   :  { %2329 = vmatpush1.bf16.msra.mxu1 %v3082_v5 }
 0x32a   :  { %2331 = vmatprep.subr.bf16.mxu1 %v3085_v6 }
 0x32d   :  { %2333 = vmatpush1.bf16.msra.mxu1 %v3088_v11 }
 0x32e   :  { %2335 = vmatprep.subr.bf16.mxu1 %v3091_v12 }
 0x331   :  { %2337 = vmatpush1.bf16.msra.mxu1 %v3094_v17 }
 0x332   :  { %2339 = vmatprep.subr.bf16.mxu1 %v3097_v18 }
 0x335   :  { %2341 = vmatpush1.bf16.msra.mxu1 %v3100_v23 }
 0x336   :  { %2343 = vmatprep.subr.bf16.mxu1 %v3103_v24 }
 0x339   :  { %2345 = vmatpush1.bf16.msra.mxu1 %v3106_v29 }
 0x33a   :  { %2347 = vmatprep.subr.bf16.mxu1 %v3109_v30 }
 0x33d   :  { %2349 = vmatpush1.bf16.msra.mxu1 %v3112_v36 }
 0x33e   :  { %2351 = vmatprep.subr.bf16.mxu1 %v3115_v37 }
 0x341   :  { %2353 = vmatpush1.bf16.msra.mxu1 %v3118_v42 }
 0x342   :  { %2355 = vmatprep.subr.bf16.mxu1 %v3121_v43 }
 0x345   :  { %2357 = vmatpush1.bf16.msra.mxu1 %v3124_v48 }
 0x346   :  { %2359 = vmatprep.subr.bf16.mxu1 %v3127_v49 }
 0x349   :  { %2361 = vmatpush1.bf16.msra.mxu1 %v3135_v55 }
 0x34a   :  { %2363 = vmatprep.subr.bf16.mxu1 %v3138_v61 }
 0x34d   :  { %2365 = vmatpush1.bf16.msra.mxu1 %v3143_v8 }
 0x34e   :  { %2367 = vmatprep.subr.bf16.mxu1 %v3151_v21 }
 0x351   :  { %2369 = vmatpush1.bf16.msra.mxu1 %v3156_v47 }
 0x352   :  { %2371 = vmatprep.subr.bf16.mxu1 %v3158_v52 }
 0x355   :  { %2373 = vmatpush1.bf16.msra.mxu1 %v3161_v10 }
 0x356   :  { %2375 = vmatprep.subr.bf16.mxu1 %v3164_v14 }
 0x359   :  { %2377 = vmatpush1.bf16.msra.mxu1 %v3167_v28 }
 0x35a   :  { %2379 = vmatprep.subr.bf16.mxu1 %v3181_v44 }
 0x35d   :  { %2381 = vmatpush1.bf16.msra.mxu1 %v3184_v45 }
 0x35e   :  { %2447 = vmatprep.subr.bf16.mxu1 %v3065_v32 }
 0x3ae   :  { %v1127_v38 = vpop.xlane.xlu1 %1126 }
 0x3f3   :  { %v1197_v57 = vpop.f32.mrb[8].mxu1 }
 0x3f4   :  { %v1208_v59 = vmul.f32 %v1197_v57, %v3278_v39  ;;  %v1199_v60 = vpop.f32.mrb[9].mxu1 }
 0x3f5   :  { %v1209_v62 = vmul.f32 %v1199_v60, %v3273_v2 }
 0x3f7   :  { %v1203_v3 = vpop.f32.mrb[10].mxu1  ;;  %v1212_v7 = vadd.f32 %v1209_v62, %v1208_v59  ;;  %v1130_v59 = vpop.xlane.xlu1 %1129 }
 0x3f8   :  { %v1210_v16 = vmul.f32 %v1203_v3, %v3295_v51  ;;  %v1205_v19 = vpop.f32.mrb[11].mxu1 }
 0x3f9   :  { %v1211_v20 = vmul.f32 %v1205_v19, %v3289_v46  ;;  %1213 = vadd.xlane.f32.xlu0 %v1212_v7 }
 0x3fb   :  { %v1215_v25 = vadd.f32 %v1211_v20, %v1210_v16 }
 0x3fd   :  { %1216 = vadd.xlane.f32.xlu0 %v1215_v25 }
 0x486   :  { %v1214_v26 = vpop.xlane.xlu0 %1213 }
 0x487   :  { %v1218_v31 = vmax.f32 %v1214_v26, 1e-30 }
 0x489   :  { %2684 = vrcp.f32 %v1218_v31 }
 0x48a   :  { %v1217_v34 = vpop.xlane.xlu0 %1216 }
 0x48b   :  { %v1219_v35 = vmax.f32 %v1217_v34, 1e-30 }
 0x48d   :  { %2686 = vrcp.f32 %v1219_v35 }
 0x493   :  { %v2685_v41 = vpop.eup %2684 }
 0x494   :  { %v3334_v54 = vmul.f32 %v2685_v41, %v1127_v38  ;;  %v1250_v41 = vmax.f32 %v1127_v38, 1e-30 }
 0x496   :  { %v1232_v22 = vmul.f32 %v3334_v54, %v1197_v57  ;;  %v1233_v50 = vmul.f32 %v3334_v54, %v1199_v60  ;;  %2688 = vrcp.f32 %v1250_v41 }
 0x497   :  { %v2687_v53 = vpop.eup %2686 }
 0x498   :  { %v3338_v62 = vmul.f32 %v2687_v53, %v1130_v59  ;;  %v3341_v7 = vadd.f32 %v1232_v22, %v3266_v27  ;;  %v3344_v16 = vadd.f32 %v1233_v50, %v3268_v33 }
 0x49a   :  { %v1240_v20 = vmul.f32 %v3341_v7, %v3341_v7  ;;  %v1241_v25 = vmul.f32 %v3344_v16, %v3344_v16  ;;  %v1234_v57 = vmul.f32 %v3338_v62, %v1203_v3  ;;  %v1235_v60 = vmul.f32 %v3338_v62, %v1205_v19 }
 0x49b   :  { %v1251_v3 = vmax.f32 %v1130_v59, 1e-30 }
 0x49c   :  { %v1244_v26 = vadd.f32 %v1241_v25, %v1240_v20  ;;  %v3353_v31 = vadd.f32 %v1234_v57, %v3280_v40  ;;  %v3356_v27 = vadd.f32 %v1235_v60, %v3282_v15  ;;  %v1256_v15 = vsub.f32 0.0, %v3341_v7 }
 0x49d   :  { %2690 = vrcp.f32 %v1251_v3  ;;  %v1257_v20 = vsub.f32 0.0, %v3344_v16 }
 0x49e   :  { %1245 = vadd.xlane.f32.xlu0 %v1244_v26  ;;  %v1242_v33 = vmul.f32 %v3353_v31, %v3353_v31  ;;  %v1243_v34 = vmul.f32 %v3356_v27, %v3356_v27 }
 0x4a0   :  { %v1247_v35 = vadd.f32 %v1243_v34, %v1242_v33  ;;  %v2689_v19 = vpop.eup %2688  ;;  %v1259_v34 = vsub.f32 0.0, %v3356_v27 }
 0x4a2   :  { %1248 = vadd.xlane.f32.xlu1 %v1247_v35  ;;  %v1258_v35 = vsub.f32 0.0, %v3353_v31 }
 0x4a7   :  { %v2691_v25 = vpop.eup %2690 }
 0x52b   :  { %v3362_v22 = vpop.xlane.xlu0 %1245 }
 0x52c   :  { %v1253_v40 = vmul.f32 %v2689_v19, %v3362_v22 }
 0x52e   :  { %v1260_v50 = vmul.f32 %v1253_v40, %v3278_v39  ;;  %v1261_v53 = vmul.f32 %v1253_v40, %v3273_v2 }
 0x52f   :  { %v3371_v38 = vpop.xlane.xlu1 %1248 }
 0x530   :  { %v3369_v57 = vadd.f32 %v1260_v50, %v1256_v15  ;;  %v3373_v59 = vadd.f32 %v1261_v53, %v1257_v20  ;;  %v1255_v60 = vmul.f32 %v2691_v25, %v3371_v38 }
 0x532   :  { %1332 = vmatprep.mubr.f32.mxu0 %v3373_v59  ;;  %v1262_v26 = vmul.f32 %v1255_v60, %v3295_v51  ;;  %v1263_v33 = vmul.f32 %v1255_v60, %v3289_v46 }
 0x533   :  { %1333 = vmatmul.mubr.f32.vlgmr.msra.gmra.mrb[12].mxu0 %v3369_v57 }
 0x534   :  { %2385 = vmatpush1.bf16.msra.mxu0 %v3071_v56  ;;  %v3383_v41 = vadd.f32 %v1263_v33, %v1259_v34  ;;  %v3385_v3 = vadd.f32 %v1262_v26, %v1258_v35 }
 0x535   :  { %2387 = vmatprep.subr.bf16.mxu0 %v3073_v58 }
 0x536   :  { %1338 = vmatprep.mubr.f32.mxu0 %v3383_v41 }
 0x537   :  { %1339 = vmatmul.mubr.f32.gmra.mrb[14].mxu0 %v3385_v3 }
 0x538   :  { %2389 = vmatpush1.bf16.msra.mxu0 %v3076_v63 }
 0x539   :  { %2391 = vmatprep.subr.bf16.mxu0 %v3079_v0 }
 0x53c   :  { %2393 = vmatpush1.bf16.msra.mxu0 %v3082_v5 }
 0x53d   :  { %2395 = vmatprep.subr.bf16.mxu0 %v3085_v6 }
 0x540   :  { %2397 = vmatpush1.bf16.msra.mxu0 %v3088_v11 }
 0x541   :  { %2399 = vmatprep.subr.bf16.mxu0 %v3091_v12 }
 0x544   :  { %2401 = vmatpush1.bf16.msra.mxu0 %v3094_v17 }
 0x545   :  { %2403 = vmatprep.subr.bf16.mxu0 %v3097_v18 }
 0x548   :  { %2405 = vmatpush1.bf16.msra.mxu0 %v3100_v23 }
 0x549   :  { %2407 = vmatprep.subr.bf16.mxu0 %v3103_v24 }
 0x54c   :  { %2409 = vmatpush1.bf16.msra.mxu0 %v3106_v29 }
 0x54d   :  { %2411 = vmatprep.subr.bf16.mxu0 %v3109_v30 }
 0x550   :  { %2413 = vmatpush1.bf16.msra.mxu0 %v3112_v36 }
 0x551   :  { %2415 = vmatprep.subr.bf16.mxu0 %v3115_v37 }
 0x554   :  { %2417 = vmatpush1.bf16.msra.mxu0 %v3118_v42 }
 0x555   :  { %2419 = vmatprep.subr.bf16.mxu0 %v3121_v43 }
 0x558   :  { %2421 = vmatpush1.bf16.msra.mxu0 %v3124_v48 }
 0x559   :  { %2423 = vmatprep.subr.bf16.mxu0 %v3127_v49 }
 0x55c   :  { %2425 = vmatpush1.bf16.msra.mxu0 %v3135_v55 }
 0x55d   :  { %2427 = vmatprep.subr.bf16.mxu0 %v3138_v61 }
 0x560   :  { %2429 = vmatpush1.bf16.msra.mxu0 %v3143_v8 }
 0x561   :  { %2431 = vmatprep.subr.bf16.mxu0 %v3151_v21 }
 0x564   :  { %2433 = vmatpush1.bf16.msra.mxu0 %v3156_v47 }
 0x565   :  { %2435 = vmatprep.subr.bf16.mxu0 %v3158_v52 }
 0x568   :  { %2437 = vmatpush1.bf16.msra.mxu0 %v3161_v10 }
 0x569   :  { %2439 = vmatprep.subr.bf16.mxu0 %v3164_v14 }
 0x56c   :  { %2441 = vmatpush1.bf16.msra.mxu0 %v3167_v28 }
 0x56d   :  { %2443 = vmatprep.subr.bf16.mxu0 %v3181_v44  ;;  %v1224_v44 = vmul.f32 %v3334_v54, %v3278_v39 }
 0x570   :  { %2445 = vmatpush1.bf16.msra.mxu0 %v3184_v45 }
 0x571   :  { %2511 = vmatprep.subr.bf16.mxu0 %v3065_v32 }
 0x606   :  { %v1334_v19 = vpop.f32.mrb[12].mxu0 }
 0x607   :  { %v1345_v40 = vmul.f32 %v1334_v19, %v3369_v57  ;;  %v1336_v15 = vpop.f32.mrb[13].mxu0 }
 0x608   :  { %v1346_v50 = vmul.f32 %v1336_v15, %v3373_v59 }
 0x60a   :  { %v1349_v53 = vadd.f32 %v1346_v50, %v1345_v40  ;;  %v1340_v20 = vpop.f32.mrb[14].mxu0  ;;  %v1225_v40 = vmul.f32 %v3334_v54, %v3273_v2 }
 0x60b   :  { %v1347_v25 = vmul.f32 %v1340_v20, %v3385_v3  ;;  %v1342_v60 = vpop.f32.mrb[15].mxu0 }
 0x60c   :  { %1350 = vadd.xlane.f32.xlu0 %v1349_v53  ;;  %v1348_v26 = vmul.f32 %v1342_v60, %v3383_v41  ;;  %v1226_v53 = vmul.f32 %v3338_v62, %v3295_v51 }
 0x60e   :  { %v1352_v33 = vadd.f32 %v1348_v26, %v1347_v25  ;;  %v1227_v25 = vmul.f32 %v3338_v62, %v3289_v46  ;;  %v1228_v26 = vadd.f32 %v1224_v44, %v3224_v4 }
 0x610   :  { %1353 = vadd.xlane.f32.xlu1 %v1352_v33  ;;  %v1229_v33 = vadd.f32 %v1225_v40, %v3222_v1  ;;  %v1231_v62 = vadd.f32 %v1227_v25, %v3226_v9 }
 0x699   :  { %v1351_v34 = vpop.xlane.xlu0 %1350 }
 0x69a   :  { %v1355_v35 = vmax.f32 %v1351_v34, 1e-30 }
 0x69c   :  { %2692 = vrcp.f32 %v1355_v35 }
 0x69d   :  { %v1354_v32 = vpop.xlane.xlu1 %1353 }
 0x69e   :  { %v1356_v45 = vmax.f32 %v1354_v32, 1e-30 }
 0x6a0   :  { %2694 = vrcp.f32 %v1356_v45 }
 0x6a6   :  { %v2693_v50 = vpop.eup %2692 }
 0x6a7   :  { %v1358_v28 = vmul.f32 %v2693_v50, %v3362_v22 }
 0x6a9   :  { %v1361_v45 = vmul.f32 %v1358_v28, %v3369_v57  ;;  %v1362_v39 = vmul.f32 %v1358_v28, %v3373_v59  ;;  %v1369_v34 = vmul.f32 %v1358_v28, %v1334_v19  ;;  %v1370_v35 = vmul.f32 %v1358_v28, %v1336_v15 }
 0x6aa   :  { %v2695_v2 = vpop.eup %2694  ;;  %v1230_v28 = vadd.f32 %v1226_v53, %v3232_v13 }
 0x6ab   :  { %v3438_v54 = vadd.f32 %v1369_v34, %v3341_v7  ;;  %v3441_v32 = vadd.f32 %v1370_v35, %v3344_v16  ;;  %v3443_v51 = vadd.f32 %v1361_v45, %v1228_v26  ;;  %v3445_v46 = vadd.f32 %v1362_v39, %v1229_v33 }
 0x6ac   :  { %v1360_v44 = vmul.f32 %v2695_v2, %v3371_v38 }
 0x6ad   :  { %v1377_v1 = vmul.f32 %v3438_v54, %v3438_v54  ;;  %v1378_v4 = vmul.f32 %v3441_v32, %v3441_v32  ;;  %v1393_v39 = vsub.f32 0.0, %v3438_v54  ;;  %v1394_v2 = vsub.f32 0.0, %v3441_v32 }
 0x6ae   :  { %v1363_v7 = vmul.f32 %v1360_v44, %v3385_v3  ;;  %v1364_v16 = vmul.f32 %v1360_v44, %v3383_v41  ;;  %v1371_v19 = vmul.f32 %v1360_v44, %v1340_v20  ;;  %v1372_v15 = vmul.f32 %v1360_v44, %v1342_v60 }
 0x6af   :  { %v1381_v40 = vadd.f32 %v1378_v4, %v1377_v1  ;;  %v1387_v60 = vmax.f32 %v3362_v22, 1e-30 }
 0x6b0   :  { %v3457_v50 = vadd.f32 %v1371_v19, %v3353_v31  ;;  %v3460_v26 = vadd.f32 %v1372_v15, %v3356_v27  ;;  %v3462_v33 = vadd.f32 %v1363_v7, %v1230_v28  ;;  %v3464_v45 = vadd.f32 %v1364_v16, %v1231_v62  ;;  %v3767_v19 = vld [vmem:[#allocation23_spill] sm:$0xff] }
 0x6b1   :  { %1382 = vadd.xlane.f32.xlu0 %v1381_v40  ;;  %2696 = vrcp.f32 %v1387_v60  ;;  %v1388_v31 = vmax.f32 %v3371_v38, 1e-30 }
 0x6b2   :  { %v1379_v9 = vmul.f32 %v3457_v50, %v3457_v50  ;;  %v1380_v13 = vmul.f32 %v3460_v26, %v3460_v26 }
 0x6b3   :  { %2698 = vrcp.f32 %v1388_v31 }
 0x6b4   :  { %v1384_v20 = vadd.f32 %v1380_v13, %v1379_v9 }
 0x6b6   :  { %1385 = vadd.xlane.f32.xlu1 %v1384_v20 }
 0x6bb   :  { %v2697_v27 = vpop.eup %2696 }
 0x6bd   :  { %v2699_v44 = vpop.eup %2698 }
 0x73e   :  { %v3472_v53 = vpop.xlane.xlu0 %1382 }
 0x73f   :  { %v1390_v25 = vmul.f32 %v2697_v27, %v3472_v53 }
 0x741   :  { %v1397_v34 = vmul.f32 %v1390_v25, %v3369_v57  ;;  %v1398_v35 = vmul.f32 %v1390_v25, %v3373_v59  ;;  %v1396_v57 = vsub.f32 0.0, %v3460_v26  ;;  %v1395_v59 = vsub.f32 0.0, %v3457_v50 }
 0x743   :  { %v3479_v1 = vadd.f32 %v1397_v34, %v1393_v39  ;;  %v3481_v22 = vpop.xlane.xlu1 %1385  ;;  %v3483_v38 = vadd.f32 %v1398_v35, %v1394_v2 }
 0x744   :  { %v1392_v4 = vmul.f32 %v2699_v44, %v3481_v22 }
 0x745   :  { %1469 = vmatprep.mubr.f32.mxu1 %v3483_v38 }
 0x746   :  { %v1399_v28 = vmul.f32 %v1392_v4, %v3385_v3  ;;  %v1400_v62 = vmul.f32 %v1392_v4, %v3383_v41  ;;  %1470 = vmatmul.mubr.f32.vlgmr.msra.gmra.mrb[12].mxu1 %v3479_v1  ;;  %v3765_v41 = vld [vmem:[#allocation21_spill] sm:$0xff]  ;;  %v3766_v3 = vld [vmem:[#allocation22_spill] sm:$0xff] }
 0x747   :  { %2449 = vmatpush1.bf16.msra.mxu1 %v3071_v56 }
 0x748   :  { %v3493_v7 = vadd.f32 %v1400_v62, %v1396_v57  ;;  %v3495_v16 = vadd.f32 %v1399_v28, %v1395_v59  ;;  %2451 = vmatprep.subr.bf16.mxu1 %v3073_v58 }
 0x74a   :  { %1475 = vmatprep.mubr.f32.mxu1 %v3493_v7 }
 0x74b   :  { %1476 = vmatmul.mubr.f32.gmra.mrb[14].mxu1 %v3495_v16 }
 0x74c   :  { %2453 = vmatpush1.bf16.msra.mxu1 %v3076_v63 }
 0x74d   :  { %2455 = vmatprep.subr.bf16.mxu1 %v3079_v0 }
 0x750   :  { %2457 = vmatpush1.bf16.msra.mxu1 %v3082_v5 }
 0x751   :  { %2459 = vmatprep.subr.bf16.mxu1 %v3085_v6 }
 0x754   :  { %2461 = vmatpush1.bf16.msra.mxu1 %v3088_v11 }
 0x755   :  { %2463 = vmatprep.subr.bf16.mxu1 %v3091_v12 }
 0x758   :  { %2465 = vmatpush1.bf16.msra.mxu1 %v3094_v17 }
 0x759   :  { %2467 = vmatprep.subr.bf16.mxu1 %v3097_v18 }
 0x75c   :  { %2469 = vmatpush1.bf16.msra.mxu1 %v3100_v23 }
 0x75d   :  { %2471 = vmatprep.subr.bf16.mxu1 %v3103_v24 }
 0x760   :  { %2473 = vmatpush1.bf16.msra.mxu1 %v3106_v29 }
 0x761   :  { %2475 = vmatprep.subr.bf16.mxu1 %v3109_v30 }
 0x764   :  { %2477 = vmatpush1.bf16.msra.mxu1 %v3112_v36 }
 0x765   :  { %2479 = vmatprep.subr.bf16.mxu1 %v3115_v37 }
 0x768   :  { %2481 = vmatpush1.bf16.msra.mxu1 %v3118_v42 }
 0x769   :  { %2483 = vmatprep.subr.bf16.mxu1 %v3121_v43 }
 0x76c   :  { %2485 = vmatpush1.bf16.msra.mxu1 %v3124_v48 }
 0x76d   :  { %2487 = vmatprep.subr.bf16.mxu1 %v3127_v49 }
 0x770   :  { %2489 = vmatpush1.bf16.msra.mxu1 %v3135_v55 }
 0x771   :  { %2491 = vmatprep.subr.bf16.mxu1 %v3138_v61 }
 0x774   :  { %2493 = vmatpush1.bf16.msra.mxu1 %v3143_v8 }
 0x775   :  { %2495 = vmatprep.subr.bf16.mxu1 %v3151_v21 }
 0x778   :  { %2497 = vmatpush1.bf16.msra.mxu1 %v3156_v47 }
 0x779   :  { %2499 = vmatprep.subr.bf16.mxu1 %v3158_v52 }
 0x77c   :  { %2501 = vmatpush1.bf16.msra.mxu1 %v3161_v10 }
 0x77d   :  { %2503 = vmatprep.subr.bf16.mxu1 %v3164_v14 }
 0x780   :  { %2505 = vmatpush1.bf16.msra.mxu1 %v3765_v41 }
 0x781   :  { %2507 = vmatprep.subr.bf16.mxu1 %v3766_v3 }
 0x784   :  { %2509 = vmatpush1.bf16.msra.mxu1 %v3767_v19 }
 0x819   :  { %v1471_v15 = vpop.f32.mrb[12].mxu1 }
 0x81a   :  { %v1482_v40 = vmul.f32 %v1471_v15, %v3479_v1  ;;  %v1473_v9 = vpop.f32.mrb[13].mxu1 }
 0x81b   :  { %v1483_v13 = vmul.f32 %v1473_v9, %v3483_v38 }
 0x81d   :  { %v1486_v20 = vadd.f32 %v1483_v13, %v1482_v40 }
 0x81e   :  { %v1477_v60 = vpop.f32.mrb[14].mxu1 }
 0x81f   :  { %v1484_v31 = vmul.f32 %v1477_v60, %v3495_v16  ;;  %v1479_v27 = vpop.f32.mrb[15].mxu1  ;;  %1487 = vadd.xlane.f32.xlu0 %v1486_v20 }
 0x820   :  { %v1485_v25 = vmul.f32 %v1479_v27, %v3493_v7 }
 0x822   :  { %v1489_v39 = vadd.f32 %v1485_v25, %v1484_v31 }
 0x824   :  { %1490 = vadd.xlane.f32.xlu1 %v1489_v39 }
 0x8ac   :  { %v1488_v34 = vpop.xlane.xlu0 %1487 }
 0x8ad   :  { %v1492_v35 = vmax.f32 %v1488_v34, 1e-30 }
 0x8af   :  { %2700 = vrcp.f32 %v1492_v35 }
 0x8b1   :  { %v1491_v2 = vpop.xlane.xlu1 %1490 }
 0x8b2   :  { %v1493_v44 = vmax.f32 %v1491_v2, 1e-30 }
 0x8b4   :  { %2702 = vrcp.f32 %v1493_v44 }
 0x8b9   :  { %v2701_v4 = vpop.eup %2700 }
 0x8ba   :  { %v1495_v28 = vmul.f32 %v2701_v4, %v3472_v53 }
 0x8bc   :  { %v1506_v62 = vmul.f32 %v1495_v28, %v1471_v15  ;;  %v1507_v57 = vmul.f32 %v1495_v28, %v1473_v9  ;;  %v1498_v59 = vmul.f32 %v1495_v28, %v3479_v1  ;;  %v1499_v40 = vmul.f32 %v1495_v28, %v3483_v38 }
 0x8be   :  { %v2703_v13 = vpop.eup %2702  ;;  %v3537_v20 = vadd.f32 %v1506_v62, %v3438_v54  ;;  %v3540_v31 = vadd.f32 %v1507_v57, %v3441_v32  ;;  %v3543_v25 = vadd.f32 %v1498_v59, %v3443_v51  ;;  %v3546_v39 = vadd.f32 %v1499_v40, %v3445_v46 }
 0x8bf   :  { %v1497_v15 = vmul.f32 %v2703_v13, %v3481_v22 }
 0x8c0   :  { %v1514_v9 = vmul.f32 %v3537_v20, %v3537_v20  ;;  %v1515_v34 = vmul.f32 %v3540_v31, %v3540_v31  ;;  %v1530_v59 = vsub.f32 0.0, %v3537_v20 }
 0x8c1   :  { %v1508_v35 = vmul.f32 %v1497_v15, %v1477_v60  ;;  %v1509_v54 = vmul.f32 %v1497_v15, %v1479_v27  ;;  %v1500_v2 = vmul.f32 %v1497_v15, %v3495_v16  ;;  %v1501_v32 = vmul.f32 %v1497_v15, %v3493_v7 }
 0x8c2   :  { %v1518_v44 = vadd.f32 %v1515_v34, %v1514_v9  ;;  %v1531_v15 = vsub.f32 0.0, %v3540_v31 }
 0x8c3   :  { %v3556_v51 = vadd.f32 %v1508_v35, %v3457_v50  ;;  %v3559_v46 = vadd.f32 %v1509_v54, %v3460_v26  ;;  %v3562_v4 = vadd.f32 %v1500_v2, %v3462_v33  ;;  %v3565_v28 = vadd.f32 %v1501_v32, %v3464_v45 }
 0x8c4   :  { %1519 = vadd.xlane.f32.xlu0 %v1518_v44  ;;  %v1524_v50 = vmax.f32 %v3472_v53, 1e-30  ;;  %v1525_v26 = vmax.f32 %v3481_v22, 1e-30 }
 0x8c5   :  { %v1516_v60 = vmul.f32 %v3556_v51, %v3556_v51  ;;  %v1517_v27 = vmul.f32 %v3559_v46, %v3559_v46 }
 0x8c6   :  { %2704 = vrcp.f32 %v1524_v50 }
 0x8c7   :  { %v1521_v62 = vadd.f32 %v1517_v27, %v1516_v60  ;;  %2706 = vrcp.f32 %v1525_v26 }
 0x8c9   :  { %1522 = vadd.xlane.f32.xlu1 %v1521_v62 }
 0x8d0   :  { %v2705_v33 = vpop.eup %2704 }
 0x8d1   :  { %v2707_v9 = vpop.eup %2706 }
 0x951   :  { %v3573_v57 = vpop.xlane.xlu0 %1519 }
 0x952   :  { %v1527_v45 = vmul.f32 %v2705_v33, %v3573_v57 }
 0x954   :  { %v1534_v40 = vmul.f32 %v1527_v45, %v3479_v1  ;;  %v1535_v13 = vmul.f32 %v1527_v45, %v3483_v38  ;;  %v1533_v1 = vsub.f32 0.0, %v3559_v46  ;;  %v1532_v38 = vsub.f32 0.0, %v3556_v51 }
 0x956   :  { %v3580_v34 = vadd.f32 %v1534_v40, %v1530_v59  ;;  %v3582_v53 = vpop.xlane.xlu1 %1522  ;;  %v3584_v22 = vadd.f32 %v1535_v13, %v1531_v15 }
 0x957   :  { %v1529_v35 = vmul.f32 %v2707_v9, %v3582_v53 }
 0x958   :  { %1606 = vmatprep.mubr.f32.mxu0 %v3584_v22 }
 0x959   :  { %v1536_v54 = vmul.f32 %v1529_v35, %v3495_v16  ;;  %v1537_v2 = vmul.f32 %v1529_v35, %v3493_v7  ;;  %1607 = vmatmul.mubr.f32.vlgmr.msra.gmra.mrb[16].mxu0 %v3580_v34 }
 0x95a   :  { %2513 = vmatpush1.bf16.msra.mxu0 %v3071_v56 }
 0x95b   :  { %v3594_v32 = vadd.f32 %v1537_v2, %v1533_v1  ;;  %v3596_v44 = vadd.f32 %v1536_v54, %v1532_v38  ;;  %2515 = vmatprep.subr.bf16.mxu0 %v3073_v58 }
 0x95d   :  { %1612 = vmatprep.mubr.f32.mxu0 %v3594_v32 }
 0x95e   :  { %1613 = vmatmul.mubr.f32.gmra.mrb[18].mxu0 %v3596_v44 }
 0x95f   :  { %2517 = vmatpush1.bf16.msra.mxu0 %v3076_v63 }
 0x960   :  { %2519 = vmatprep.subr.bf16.mxu0 %v3079_v0 }
 0x963   :  { %2521 = vmatpush1.bf16.msra.mxu0 %v3082_v5 }
 0x964   :  { %2523 = vmatprep.subr.bf16.mxu0 %v3085_v6 }
 0x967   :  { %2525 = vmatpush1.bf16.msra.mxu0 %v3088_v11 }
 0x968   :  { %2527 = vmatprep.subr.bf16.mxu0 %v3091_v12 }
 0x96b   :  { %2529 = vmatpush1.bf16.msra.mxu0 %v3094_v17 }
 0x96c   :  { %2531 = vmatprep.subr.bf16.mxu0 %v3097_v18 }
 0x96f   :  { %2533 = vmatpush1.bf16.msra.mxu0 %v3100_v23 }
 0x970   :  { %2535 = vmatprep.subr.bf16.mxu0 %v3103_v24 }
 0x973   :  { %2537 = vmatpush1.bf16.msra.mxu0 %v3106_v29 }
 0x974   :  { %2539 = vmatprep.subr.bf16.mxu0 %v3109_v30 }
 0x977   :  { %2541 = vmatpush1.bf16.msra.mxu0 %v3112_v36 }
 0x978   :  { %2543 = vmatprep.subr.bf16.mxu0 %v3115_v37 }
 0x97b   :  { %2545 = vmatpush1.bf16.msra.mxu0 %v3118_v42 }
 0x97c   :  { %2547 = vmatprep.subr.bf16.mxu0 %v3121_v43 }
 0x97f   :  { %2549 = vmatpush1.bf16.msra.mxu0 %v3124_v48 }
 0x980   :  { %2551 = vmatprep.subr.bf16.mxu0 %v3127_v49 }
 0x983   :  { %2553 = vmatpush1.bf16.msra.mxu0 %v3135_v55 }
 0x984   :  { %2555 = vmatprep.subr.bf16.mxu0 %v3138_v61 }
 0x987   :  { %2557 = vmatpush1.bf16.msra.mxu0 %v3143_v8 }
 0x988   :  { %2559 = vmatprep.subr.bf16.mxu0 %v3151_v21 }
 0x98b   :  { %2561 = vmatpush1.bf16.msra.mxu0 %v3156_v47 }
 0x98c   :  { %2563 = vmatprep.subr.bf16.mxu0 %v3158_v52 }
 0x98f   :  { %2565 = vmatpush1.bf16.msra.mxu0 %v3161_v10 }
 0x990   :  { %2567 = vmatprep.subr.bf16.mxu0 %v3164_v14 }
 0x993   :  { %2569 = vmatpush1.bf16.msra.mxu0 %v3765_v41 }
 0x994   :  { %2571 = vmatprep.subr.bf16.mxu0 %v3766_v3 }
 0x997   :  { %2573 = vmatpush1.bf16.msra.mxu0 %v3767_v19 }
 0xa2c   :  { %v1608_v56 = vpop.f32.mrb[16].mxu0 }
 0xa2d   :  { %v1619_v58 = vmul.f32 %v1608_v56, %v3580_v34  ;;  %v1610_v63 = vpop.f32.mrb[17].mxu0 }
 0xa2e   :  { %v1620_v0 = vmul.f32 %v1610_v63, %v3584_v22 }
 0xa30   :  { %v1623_v5 = vadd.f32 %v1620_v0, %v1619_v58 }
 0xa31   :  { %v1614_v6 = vpop.f32.mrb[18].mxu0 }
 0xa32   :  { %v1621_v11 = vmul.f32 %v1614_v6, %v3596_v44  ;;  %v1616_v12 = vpop.f32.mrb[19].mxu0  ;;  %1624 = vadd.xlane.f32.xlu0 %v1623_v5 }
 0xa33   :  { %v1622_v17 = vmul.f32 %v1616_v12, %v3594_v32 }
 0xa35   :  { %v1626_v18 = vadd.f32 %v1622_v17, %v1621_v11 }
 0xa37   :  { %1627 = vadd.xlane.f32.xlu1 %v1626_v18 }
 0xabf   :  { %v1625_v23 = vpop.xlane.xlu0 %1624 }
 0xac0   :  { %v1629_v24 = vmax.f32 %v1625_v23, 1e-30 }
 0xac2   :  { %2708 = vrcp.f32 %v1629_v24 }
 0xac4   :  { %v1628_v29 = vpop.xlane.xlu1 %1627 }
 0xac5   :  { %v1630_v30 = vmax.f32 %v1628_v29, 1e-30 }
 0xac7   :  { %2710 = vrcp.f32 %v1630_v30 }
 0xacc   :  { %v2709_v36 = vpop.eup %2708 }
 0xacd   :  { %v1632_v37 = vmul.f32 %v2709_v36, %v3573_v57 }
 0xacf   :  { %v1643_v42 = vmul.f32 %v1632_v37, %v1608_v56  ;;  %v1644_v43 = vmul.f32 %v1632_v37, %v1610_v63  ;;  %v1635_v48 = vmul.f32 %v1632_v37, %v3580_v34  ;;  %v1636_v49 = vmul.f32 %v1632_v37, %v3584_v22 }
 0xad1   :  { %v2711_v55 = vpop.eup %2710  ;;  %v3638_v61 = vadd.f32 %v1643_v42, %v3537_v20  ;;  %v3641_v8 = vadd.f32 %v1644_v43, %v3540_v31  ;;  %v3644_v21 = vadd.f32 %v1635_v48, %v3543_v25  ;;  %v3647_v47 = vadd.f32 %v1636_v49, %v3546_v39 }
 0xad2   :  { %v1634_v52 = vmul.f32 %v2711_v55, %v3582_v53 }
 0xad3   :  { %v1651_v10 = vmul.f32 %v3638_v61, %v3638_v61  ;;  %v1652_v14 = vmul.f32 %v3641_v8, %v3641_v8  ;;  %v1667_v26 = vsub.f32 0.0, %v3638_v61  ;;  %v1668_v59 = vsub.f32 0.0, %v3641_v8 }
 0xad4   :  { %v1645_v7 = vmul.f32 %v1634_v52, %v1614_v6  ;;  %v1646_v16 = vmul.f32 %v1634_v52, %v1616_v12  ;;  %v1637_v41 = vmul.f32 %v1634_v52, %v3596_v44  ;;  %v1638_v3 = vmul.f32 %v1634_v52, %v3594_v32 }
 0xad5   :  { %v1655_v19 = vadd.f32 %v1652_v14, %v1651_v10 }
 0xad6   :  { %v3657_v20 = vadd.f32 %v1645_v7, %v3556_v51  ;;  %v3660_v31 = vadd.f32 %v1646_v16, %v3559_v46  ;;  %v3663_v25 = vadd.f32 %v1637_v41, %v3562_v4  ;;  %v3666_v39 = vadd.f32 %v1638_v3, %v3565_v28 }
 0xad7   :  { %1656 = vadd.xlane.f32.xlu0 %v1655_v19  ;;  %v1661_v51 = vmax.f32 %v3573_v57, 1e-30  ;;  %v1662_v46 = vmax.f32 %v3582_v53, 1e-30 }
 0xad8   :  { %v1653_v60 = vmul.f32 %v3657_v20, %v3657_v20  ;;  %v1654_v27 = vmul.f32 %v3660_v31, %v3660_v31 }
 0xad9   :  { %2712 = vrcp.f32 %v1661_v51 }
 0xada   :  { %v1658_v62 = vadd.f32 %v1654_v27, %v1653_v60  ;;  %2714 = vrcp.f32 %v1662_v46 }
 0xadc   :  { %1659 = vadd.xlane.f32.xlu1 %v1658_v62 }
 0xae3   :  { %v2713_v4 = vpop.eup %2712 }
 0xae4   :  { %v2715_v40 = vpop.eup %2714 }
 0xb64   :  { %v3674_v50 = vpop.xlane.xlu0 %1656 }
 0xb65   :  { %v1664_v28 = vmul.f32 %v2713_v4, %v3674_v50  ;;  %v1798_v51 = vmax.f32 %v3674_v50, 1e-30 }
 0xb67   :  { %v1671_v33 = vmul.f32 %v1664_v28, %v3580_v34  ;;  %v1672_v45 = vmul.f32 %v1664_v28, %v3584_v22  ;;  %v1670_v34 = vsub.f32 0.0, %v3660_v31  ;;  %v1669_v22 = vsub.f32 0.0, %v3657_v20 }
 0xb69   :  { %v3681_v13 = vadd.f32 %v1671_v33, %v1667_v26  ;;  %v1660_v57 = vpop.xlane.xlu1 %1659  ;;  %v3683_v15 = vadd.f32 %v1672_v45, %v1668_v59 }
 0xb6a   :  { %v1666_v9 = vmul.f32 %v2715_v40, %v1660_v57  ;;  %v1799_v46 = vmax.f32 %v1660_v57, 1e-30 }
 0xb6b   :  { %1743 = vmatprep.mubr.f32.mxu1 %v3683_v15 }
 0xb6c   :  { %v1673_v53 = vmul.f32 %v1666_v9, %v3596_v44  ;;  %v1674_v35 = vmul.f32 %v1666_v9, %v3594_v32  ;;  %1744 = vmatmul.mubr.f32.vlgmr.msra.gmra.mrb[16].mxu1 %v3681_v13 }
 0xb6e   :  { %v3691_v54 = vadd.f32 %v1674_v35, %v1670_v34  ;;  %v3693_v2 = vadd.f32 %v1673_v53, %v1669_v22 }
 0xb70   :  { %1749 = vmatprep.mubr.f32.mxu1 %v3691_v54 }
 0xb71   :  { %1750 = vmatmul.mubr.f32.gmra.mrb[18].mxu1 %v3693_v2 }
 0xc3f   :  { %v1745_v1 = vpop.f32.mrb[16].mxu1 }
 0xc40   :  { %v1756_v38 = vmul.f32 %v1745_v1, %v3681_v13  ;;  %v1747_v44 = vpop.f32.mrb[17].mxu1 }
 0xc41   :  { %v1757_v32 = vmul.f32 %v1747_v44, %v3683_v15 }
 0xc43   :  { %v1760_v56 = vadd.f32 %v1757_v32, %v1756_v38 }
 0xc44   :  { %v1751_v58 = vpop.f32.mrb[18].mxu1 }
 0xc45   :  { %v1758_v63 = vmul.f32 %v1751_v58, %v3693_v2  ;;  %v1753_v0 = vpop.f32.mrb[19].mxu1  ;;  %1761 = vadd.xlane.f32.xlu0 %v1760_v56 }
 0xc46   :  { %v1759_v5 = vmul.f32 %v1753_v0, %v3691_v54 }
 0xc48   :  { %v1763_v6 = vadd.f32 %v1759_v5, %v1758_v63 }
 0xc4a   :  { %1764 = vadd.xlane.f32.xlu1 %v1763_v6 }
 0xcd2   :  { %v1762_v11 = vpop.xlane.xlu0 %1761 }
 0xcd3   :  { %v1766_v12 = vmax.f32 %v1762_v11, 1e-30 }
 0xcd5   :  { %2716 = vrcp.f32 %v1766_v12 }
 0xcd7   :  { %v1765_v17 = vpop.xlane.xlu1 %1764 }
 0xcd8   :  { %v1767_v18 = vmax.f32 %v1765_v17, 1e-30 }
 0xcda   :  { %2718 = vrcp.f32 %v1767_v18 }
 0xcdb   :  { %2720 = vrcp.f32 %v1798_v51 }
 0xcdc   :  { %2722 = vrcp.f32 %v1799_v46 }
 0xcdf   :  { %v2717_v23 = vpop.eup %2716 }
 0xce0   :  { %v1769_v24 = vmul.f32 %v2717_v23, %v3674_v50 }
 0xce2   :  { %v1780_v29 = vmul.f32 %v1769_v24, %v1745_v1  ;;  %v1781_v30 = vmul.f32 %v1769_v24, %v1747_v44  ;;  %v1772_v36 = vmul.f32 %v1769_v24, %v3681_v13  ;;  %v1773_v37 = vmul.f32 %v1769_v24, %v3683_v15 }
 0xce4   :  { %v2719_v42 = vpop.eup %2718  ;;  %v1784_v43 = vadd.f32 %v1780_v29, %v3638_v61  ;;  %v1785_v48 = vadd.f32 %v1781_v30, %v3641_v8  ;;  %v3707_v49 = vadd.f32 %v1772_v36, %v3644_v21  ;;  %v3710_v55 = vadd.f32 %v1773_v37, %v3647_v47 }
 0xce5   :  { %v1771_v52 = vmul.f32 %v2719_v42, %v1660_v57  ;;  %v2721_v4 = vpop.eup %2720 }
 0xce6   :  { %v1788_v10 = vmul.f32 %v1784_v43, %v1784_v43  ;;  %v1789_v14 = vmul.f32 %v1785_v48, %v1785_v48  ;;  %v2723_v33 = vpop.eup %2722 }
 0xce7   :  { %v1782_v7 = vmul.f32 %v1771_v52, %v1751_v58  ;;  %v1783_v16 = vmul.f32 %v1771_v52, %v1753_v0  ;;  %v1774_v41 = vmul.f32 %v1771_v52, %v3693_v2  ;;  %v1775_v3 = vmul.f32 %v1771_v52, %v3691_v54 }
 0xce8   :  { %v1792_v19 = vadd.f32 %v1789_v14, %v1788_v10 }
 0xce9   :  { %v1786_v61 = vadd.f32 %v1782_v7, %v3657_v20  ;;  %v1787_v8 = vadd.f32 %v1783_v16, %v3660_v31  ;;  %v3717_v21 = vadd.f32 %v1774_v41, %v3663_v25  ;;  %v3720_v47 = vadd.f32 %v1775_v3, %v3666_v39 }
 0xcea   :  { %1793 = vadd.xlane.f32.xlu0 %v1792_v19  ;;  %v1804_v31 = vsub.f32 0.0, %v1784_v43  ;;  %v1805_v39 = vsub.f32 0.0, %v1785_v48 }
 0xceb   :  { %v1790_v60 = vmul.f32 %v1786_v61, %v1786_v61  ;;  %v1791_v27 = vmul.f32 %v1787_v8, %v1787_v8  ;;  %v1807_v53 = vsub.f32 0.0, %v1787_v8  ;;  %v1806_v35 = vsub.f32 0.0, %v1786_v61 }
 0xced   :  { %v1795_v62 = vadd.f32 %v1791_v27, %v1790_v60 }
 0xcef   :  { %1796 = vadd.xlane.f32.xlu1 %v1795_v62 }
 0xd77   :  { %v1794_v20 = vpop.xlane.xlu0 %1793 }
 0xd78   :  { %v1801_v28 = vmul.f32 %v2721_v4, %v1794_v20 }
 0xd7a   :  { %v1808_v25 = vmul.f32 %v1801_v28, %v3681_v13  ;;  %v1809_v26 = vmul.f32 %v1801_v28, %v3683_v15 }
 0xd7c   :  { %v1812_v45 = vadd.f32 %v1808_v25, %v1804_v31  ;;  %v1797_v59 = vpop.xlane.xlu1 %1796  ;;  %v1813_v40 = vadd.f32 %v1809_v26, %v1805_v39 }
 0xd7d   :  { %v1803_v9 = vmul.f32 %v2723_v33, %v1797_v59 }
 0xd7e   :  { %1880 = vmatprep.mubr.f32.mxu0 %v1813_v40 }
 0xd7f   :  { %v1810_v50 = vmul.f32 %v1803_v9, %v3693_v2  ;;  %v1811_v57 = vmul.f32 %v1803_v9, %v3691_v54  ;;  %1881 = vmatmul.mubr.f32.vlgmr.msra.gmra.mrb[20].mxu0 %v1812_v45 }
 0xd81   :  { %v1815_v34 = vadd.f32 %v1811_v57, %v1807_v53  ;;  %v1814_v22 = vadd.f32 %v1810_v50, %v1806_v35 }
 0xd83   :  { %1886 = vmatprep.mubr.f32.mxu0 %v1815_v34 }
 0xd84   :  { %1887 = vmatmul.mubr.f32.gmra.mrb[22].mxu0 %v1814_v22 }
 0xe52   :  { %v1882_v13 = vpop.f32.mrb[20].mxu0 }
 0xe53   :  { %v1893_v15 = vmul.f32 %v1882_v13, %v1812_v45  ;;  %v1884_v1 = vpop.f32.mrb[21].mxu0 }
 0xe54   :  { %v1894_v38 = vmul.f32 %v1884_v1, %v1813_v40 }
 0xe56   :  { %v1897_v44 = vadd.f32 %v1894_v38, %v1893_v15 }
 0xe57   :  { %v1888_v32 = vpop.f32.mrb[22].mxu0 }
 0xe58   :  { %v1895_v56 = vmul.f32 %v1888_v32, %v1814_v22  ;;  %v1890_v58 = vpop.f32.mrb[23].mxu0  ;;  %1898 = vadd.xlane.f32.xlu0 %v1897_v44 }
 0xe59   :  { %v1896_v63 = vmul.f32 %v1890_v58, %v1815_v34 }
 0xe5b   :  { %v1900_v2 = vadd.f32 %v1896_v63, %v1895_v56 }
 0xe5d   :  { %1901 = vadd.xlane.f32.xlu1 %v1900_v2 }
 0xee5   :  { %v1899_v54 = vpop.xlane.xlu0 %1898 }
 0xee6   :  { %v1903_v0 = vmax.f32 %v1899_v54, 1e-30 }
 0xee8   :  { %2724 = vrcp.f32 %v1903_v0 }
 0xeea   :  { %v1902_v5 = vpop.xlane.xlu1 %1901 }
 0xeeb   :  { %v1904_v6 = vmax.f32 %v1902_v5, 1e-30 }
 0xeed   :  { %2726 = vrcp.f32 %v1904_v6 }
 0xef2   :  { %v2725_v11 = vpop.eup %2724 }
 0xef3   :  { %v1906_v12 = vmul.f32 %v2725_v11, %v1794_v20 }
 0xef5   :  { %v1909_v17 = vmul.f32 %v1906_v12, %v1812_v45  ;;  %v1910_v18 = vmul.f32 %v1906_v12, %v1813_v40 }
 0xef7   :  { %v2727_v23 = vpop.eup %2726  ;;  %v1913_v24 = vadd.f32 %v1909_v17, %v3707_v49  ;;  %v1914_v29 = vadd.f32 %v1910_v18, %v3710_v55 }
 0xef8   :  { %v1908_v30 = vmul.f32 %v2727_v23, %v1797_v59 }
 0xef9   :  { %1917 = vst [vmem:[#allocation15] sm:$0xff] %v1913_v24  ;;  %1918 = vst [vmem:[#allocation15 + $0x8] sm:$0xff] %v1914_v29 }
 0xefa   :  { %v1911_v36 = vmul.f32 %v1908_v30, %v1814_v22  ;;  %v1912_v37 = vmul.f32 %v1908_v30, %v1815_v34 }
 0xefc   :  { %v1915_v42 = vadd.f32 %v1911_v36, %v3717_v21  ;;  %v1916_v43 = vadd.f32 %v1912_v37, %v3720_v47 }
 0xefe   :  { %1919 = vst [vmem:[#allocation15 + $0x10] sm:$0xff] %v1915_v42  ;;  %1920 = vst [vmem:[#allocation15 + $0x18] sm:$0xff] %v1916_v43 }
 0xeff   :  { %2871 = shalt.err (!%p2868_p10)
}
 0xf00   :  { %s2872_s30 = scalar_lea.hbm %s3755_s9, 512 }
 0xf01   :  { %p2873_p11 = scmp.ne.s32.totalorder %s3755_s9, %s2872_s30  ;;  %p2876_p12 = scmp.lt.u32.totalorder %s2872_s30, %s3755_s9 }
 0xf03   :  { %p2878_p13 = pnand %p2876_p12, %p2873_p11 }
 0xf05   :  { %2881 = shalt.err (!%p2878_p13)
}
 0xf06   :  { %1932 = dma.vmem_to_hbm [thread:$0]  %s1927_s28, 512, %s3755_s9, [#allocation6], %s2896_s2, %s2896_s2, %s2897_s10  }
 0xf07   :  { %2890 = dma.done.wait [#allocation6], 512  }
 0xf08   :  { %2891 = vsyncadd [#allocation6], 4294966784 }
 0xf09   :  { %1936 = vsyncpa [#allocation5], 1 }
 0xf0a   :  { %1937 = vsyncpa [#allocation8], 1 }
 0xf0b   :  { %1938 = vsyncpa [#allocation11], 1 }
 0xf0c   :  { %1939 = vsyncpa [#allocation14], 1 }
 0xf0d   :  { %1940 = vsyncpa [#allocation6], 1 }

// kernel: tpu_custom_call.1
= control target key start
LH: loop header
LB: loop body
LE: loop exit
PB: predicated region body
PF: predicated region fallthrough
CT: control target
= control target key end

     0   :  { %15 = vsyncpa [#allocation5], 0  ;;  %s3746_s0 = inlined_call_operand.<no memory space> [shape: f32[1], index: 0, kind: input, shape index: {}]   ;;  %s3747_s1 = inlined_call_operand.hbm [shape: bf16[16,256], index: 1, kind: input, shape index: {}]   ;;  %s3748_s2 = inlined_call_operand.hbm [shape: f32[16,128], index: 2, kind: input, shape index: {}]   ;;  %s3749_s3 = inlined_call_operand.hbm [shape: bf16[256,384], index: 3, kind: input, shape index: {}]   ;;  %s3750_s4 = inlined_call_operand.hbm [shape: f32[384,256], index: 4, kind: input, shape index: {}]   ;;  %s3751_s5 = inlined_call_operand.hbm [shape: bf16[128,256], index: 5, kind: input, shape index: {}]   ;;  %s3752_s6 = inlined_call_operand.vmem [shape: f32[1,128], index: 6, kind: input, shape index: {}]   ;;  %s3753_s7 = inlined_call_operand.vmem [shape: f32[1,256], index: 7, kind: input, shape index: {}]   ;;  %s3754_s8 = inlined_call_operand.hbm [shape: f32[256,256], index: 8, kind: input, shape index: {}]   ;;  %s3755_s9 = inlined_call_operand.hbm [shape: f32[16,256], index: 9, kind: output, shape index: {}]  }
   0x1   :  { %16 = vsyncpa [#allocation8], 0 }
   0x2   :  { %17 = vsyncpa [#allocation11], 0 }
   0x3   :  { %18 = vsyncpa [#allocation14], 0 }
   0x4   :  { %19 = vsyncpa [#allocation6], 0  ;;  %s2892_s30 = smov [#allocation7]   ;;  %s2893_s11 = smov [#allocation10]  }
   0x5   :  { %s37_s10 = sshll.u32 %s2892_s30, 4  ;;  %s61_s12 = sshll.u32 %s2893_s11, 4  ;;  %s38_s10 = int_to_ptr.vmem [resolvable:$true] %s37_s10  ;;  %s2957_s12 = int_to_ptr.vmem [resolvable:$true] %s61_s12 }
   0x6   :  { %s2728_s15 = scalar_lea.hbm %s3748_s2, 256 }
   0x7   :  { %p2729_p0 = scmp.ne.s32.totalorder %s3748_s2, %s2728_s15  ;;  %p2732_p1 = scmp.lt.u32.totalorder %s2728_s15, %s3748_s2 }
   0x9   :  { %p2734_p2 = pnand %p2732_p1, %p2729_p0 }
   0xb   :  { %2737 = shalt.err (!%p2734_p2)
}
   0xc   :  { %s2738_s20 = scalar_lea.vmem %s38_s10, 256  ;;  %p2743_p4 = scmp.lt.s32.totalorder %s38_s10, %s38_s10 }
   0xd   :  { %p2739_p3 = scmp.ne.s32.totalorder %s38_s10, %s2738_s20  ;;  %p2744_p5 = scmp.lt.s32.totalorder %s2738_s20, %s2738_s20 }
   0xf   :  { %p2745_p6 = por %p2744_p5, %p2743_p4 }
  0x11   :  { %p2746_p7 = pnand %p2745_p6, %p2739_p3 }
  0x13   :  { %2749 = shalt.err (!%p2746_p7)
}
  0x14   :  { %s2894_s21 = smov 128   ;;  %s2895_s22 = smov 8  }
  0x15   :  { %43 = dma.hbm_to_vmem [thread:$0]  %s3748_s2, 256, %s38_s10, [#allocation8], %s2894_s21, %s2894_s21, %s2895_s22  }
  0x16   :  { %s2750_s27 = scalar_lea.hbm %s3750_s4, 12288 }
  0x17   :  { %p2751_p8 = scmp.ne.s32.totalorder %s3750_s4, %s2750_s27  ;;  %p2754_p9 = scmp.lt.u32.totalorder %s2750_s27, %s3750_s4 }
  0x19   :  { %p2756_p10 = pnand %p2754_p9, %p2751_p8 }
  0x1b   :  { %2759 = shalt.err (!%p2756_p10)
}
  0x1c   :  { %s2760_s13 = scalar_lea.vmem %s2957_s12, 12288  ;;  %p2765_p12 = scmp.lt.s32.totalorder %s2957_s12, %s2957_s12 }
  0x1d   :  { %p2761_p11 = scmp.ne.s32.totalorder %s2957_s12, %s2760_s13  ;;  %p2766_p13 = scmp.lt.s32.totalorder %s2760_s13, %s2760_s13 }
  0x1f   :  { %p2767_p0 = por %p2766_p13, %p2765_p12 }
  0x21   :  { %p2768_p1 = pnand %p2767_p0, %p2761_p11 }
  0x23   :  { %2771 = shalt.err (!%p2768_p1)
}
  0x24   :  { %s2896_s2 = smov 256   ;;  %s2897_s10 = smov 16  }
  0x25   :  { %67 = dma.hbm_to_vmem [thread:$0]  %s3750_s4, 12288, %s2957_s12, [#allocation11], %s2896_s2, %s2896_s2, %s2897_s10  }
  0x26   :  { %s2898_s16 = smov [#allocation4]   ;;  %s2899_s18 = smov [#allocation9]  }
  0x27   :  { %s25_s17 = sshll.u32 %s2898_s16, 4  ;;  %s49_s19 = sshll.u32 %s2899_s18, 4  ;;  %s26_s17 = int_to_ptr.vmem [resolvable:$true] %s25_s17  ;;  %s2994_s19 = int_to_ptr.vmem [resolvable:$true] %s49_s19 }
  0x28   :  { %s2772_s24 = scalar_lea.hbm %s3747_s1, 256 }
  0x29   :  { %p2773_p2 = scmp.ne.s32.totalorder %s3747_s1, %s2772_s24  ;;  %p2776_p3 = scmp.lt.u32.totalorder %s2772_s24, %s3747_s1 }
  0x2b   :  { %p2778_p4 = pnand %p2776_p3, %p2773_p2 }
  0x2d   :  { %2781 = shalt.err (!%p2778_p4)
}
  0x2e   :  { %s2782_s4 = scalar_lea.vmem %s26_s17, 256  ;;  %p2787_p6 = scmp.lt.s32.totalorder %s26_s17, %s26_s17 }
  0x2f   :  { %p2783_p5 = scmp.ne.s32.totalorder %s26_s17, %s2782_s4  ;;  %p2788_p7 = scmp.lt.s32.totalorder %s2782_s4, %s2782_s4 }
  0x31   :  { %p2789_p8 = por %p2788_p7, %p2787_p6 }
  0x33   :  { %p2790_p9 = pnand %p2789_p8, %p2783_p5 }
  0x35   :  { %2793 = shalt.err (!%p2790_p9)
}
  0x36   :  { %31 = dma.hbm_to_vmem [thread:$0]  %s3747_s1, 256, %s26_s17, [#allocation5], %s2894_s21, %s2894_s21, %s2895_s22  }
  0x37   :  { %s2794_s13 = scalar_lea.hbm %s3749_s3, 6144 }
  0x38   :  { %p2795_p10 = scmp.ne.s32.totalorder %s3749_s3, %s2794_s13  ;;  %p2798_p11 = scmp.lt.u32.totalorder %s2794_s13, %s3749_s3 }
  0x3a   :  { %p2800_p12 = pnand %p2798_p11, %p2795_p10 }
  0x3c   :  { %2803 = shalt.err (!%p2800_p12)
}
  0x3d   :  { %s2804_s20 = scalar_lea.vmem %s2994_s19, 6144  ;;  %p2809_p0 = scmp.lt.s32.totalorder %s2994_s19, %s2994_s19 }
  0x3e   :  { %p2805_p13 = scmp.ne.s32.totalorder %s2994_s19, %s2804_s20  ;;  %p2810_p1 = scmp.lt.s32.totalorder %s2804_s20, %s2804_s20 }
  0x40   :  { %p2811_p2 = por %p2810_p1, %p2809_p0 }
  0x42   :  { %p2812_p3 = pnand %p2811_p2, %p2805_p13 }
  0x44   :  { %2815 = shalt.err (!%p2812_p3)
}
  0x45   :  { %s2900_s1 = smov 192   ;;  %s2901_s17 = smov 12  }
  0x46   :  { %55 = dma.hbm_to_vmem [thread:$0]  %s3749_s3, 6144, %s2994_s19, [#allocation8], %s2900_s1, %s2900_s1, %s2901_s17  }
  0x47   :  { %s2902_s25 = smov [#allocation12]   ;;  %s2903_s27 = smov [#allocation13]  }
  0x48   :  { %s73_s26 = sshll.u32 %s2902_s25, 4  ;;  %s89_s28 = sshll.u32 %s2903_s27, 4  ;;  %s74_s26 = int_to_ptr.vmem [resolvable:$true] %s73_s26  ;;  %s3028_s28 = int_to_ptr.vmem [resolvable:$true] %s89_s28 }
  0x49   :  { %s2816_s29 = scalar_lea.hbm %s3751_s5, 2048 }
  0x4a   :  { %p2817_p4 = scmp.ne.s32.totalorder %s3751_s5, %s2816_s29  ;;  %p2820_p5 = scmp.lt.u32.totalorder %s2816_s29, %s3751_s5 }
  0x4c   :  { %p2822_p6 = pnand %p2820_p5, %p2817_p4 }
  0x4e   :  { %2825 = shalt.err (!%p2822_p6)
}
  0x4f   :  { %s2826_s3 = scalar_lea.vmem %s74_s26, 2048  ;;  %p2831_p8 = scmp.lt.s32.totalorder %s74_s26, %s74_s26 }
  0x50   :  { %p2827_p7 = scmp.ne.s32.totalorder %s74_s26, %s2826_s3  ;;  %p2832_p9 = scmp.lt.s32.totalorder %s2826_s3, %s2826_s3 }
  0x52   :  { %p2833_p10 = por %p2832_p9, %p2831_p8 }
  0x54   :  { %p2834_p11 = pnand %p2833_p10, %p2827_p7 }
  0x56   :  { %2837 = shalt.err (!%p2834_p11)
}
  0x57   :  { %79 = dma.hbm_to_vmem [thread:$0]  %s3751_s5, 2048, %s74_s26, [#allocation11], %s2894_s21, %s2894_s21, %s2895_s22  }
  0x58   :  { %s2838_s20 = scalar_lea.hbm %s3754_s8, 8192 }
  0x59   :  { %p2839_p12 = scmp.ne.s32.totalorder %s3754_s8, %s2838_s20  ;;  %p2842_p13 = scmp.lt.u32.totalorder %s2838_s20, %s3754_s8 }
  0x5b   :  { %p2844_p0 = pnand %p2842_p13, %p2839_p12 }
  0x5d   :  { %2847 = shalt.err (!%p2844_p0)
}
  0x5e   :  { %s2848_s25 = scalar_lea.vmem %s3028_s28, 8192  ;;  %p2853_p2 = scmp.lt.s32.totalorder %s3028_s28, %s3028_s28 }
  0x5f   :  { %p2849_p1 = scmp.ne.s32.totalorder %s3028_s28, %s2848_s25  ;;  %p2854_p3 = scmp.lt.s32.totalorder %s2848_s25, %s2848_s25 }
  0x61   :  { %p2855_p4 = por %p2854_p3, %p2853_p2 }
  0x63   :  { %p2856_p5 = pnand %p2855_p4, %p2849_p1 }
  0x65   :  { %2859 = shalt.err (!%p2856_p5)
}
  0x66   :  { %95 = dma.hbm_to_vmem [thread:$0]  %s3754_s8, 8192, %s3028_s28, [#allocation14], %s2896_s2, %s2896_s2, %s2897_s10  }
  0x67   :  { %2882 = dma.done.wait [#allocation5], 256  }
  0x68   :  { %2883 = vsyncadd [#allocation5], 4294967040 }
  0x69   :  { %2884 = dma.done.wait [#allocation8], 6400  }
  0x6a   :  { %2885 = vsyncadd [#allocation8], 4294960896 }
  0x6b   :  { %2886 = dma.done.wait [#allocation11], 14336  }
  0x6c   :  { %2887 = vsyncadd [#allocation11], 4294952960 }
  0x6d   :  { %2888 = dma.done.wait [#allocation14], 8192  }
  0x6e   :  { %2889 = vsyncadd [#allocation14], 4294959104  ;;  %v2593_v0 = vld [vmem:[#allocation9 + $0xc8] ss:$12 sps:$4 sm:$0xff]   ;;  %v2595_v2 = vld [vmem:[#allocation9 + $0xe0] ss:$12 sps:$4 sm:$0xff]  }
  0x6f   :  { %v2594_v1 = vld [vmem:[#allocation9 + $0x8] ss:$12 sps:$4 sm:$0xff]   ;;  %2008 = vmatprep.subr.bf16.mxu1 %v2593_v0  ;;  %v2596_v3 = vld [vmem:[#allocation9 + $0x20] ss:$12 sps:$4 sm:$0xff]   ;;  %v2597_v4 = vld [vmem:[#allocation9 + $0xf8] ss:$12 sps:$4 sm:$0xff]  }
  0x70   :  { %2009 = vmatpush3.bf16.msra.mxu1 %v2594_v1  ;;  %v2598_v5 = vld [vmem:[#allocation9 + $0x38] ss:$12 sps:$4 sm:$0xff]   ;;  %v2599_v6 = vld [vmem:[#allocation9 + $0x110] ss:$12 sps:$4 sm:$0xff]   ;;  %v2601_v8 = vld [vmem:[#allocation9 + $0x128] ss:$12 sps:$4 sm:$0xff]  }
  0x71   :  { %2010 = vmatprep.subr.bf16.mxu1 %v2595_v2  ;;  %v2600_v7 = vld [vmem:[#allocation9 + $0x50] ss:$12 sps:$4 sm:$0xff]   ;;  %v2602_v9 = vld [vmem:[#allocation9 + $0x68] ss:$12 sps:$4 sm:$0xff]   ;;  %v2603_v10 = vld [vmem:[#allocation9 + $0x140] ss:$12 sps:$4 sm:$0xff]  }
  0x72   :  { %v2611_v11 = vld [vmem:[#allocation4 + $0x4] ss:$8 sps:$4 sm:$0xff]   ;;  %v2615_v15 = vld [vmem:[#allocation9 + $0x1c] ss:$12 sps:$4 sm:$0xff]   ;;  %v2618_v18 = vld [vmem:[#allocation9 + $0x34] ss:$12 sps:$4 sm:$0xff]  }
  0x73   :  { %v2612_v12 = vld [vmem:[#allocation9 + $0x4] ss:$12 sps:$4 sm:$0xff]   ;;  %v2614_v13 = vld [vmem:[#allocation9] ss:$12 sps:$4 sm:$0xff]   ;;  %523 = vmatprep.mubr.bf16.mxu1 %v2611_v11  ;;  %480 = vmatprep.mubr.bf16.mxu0 %v2611_v11  ;;  %v2623_v24 = vld [vmem:[#allocation9 + $0x48] ss:$12 sps:$4 sm:$0xff]  }
  0x74   :  { %2011 = vmatpush3.bf16.msra.mxu1 %v2596_v3  ;;  %v2604_v14 = vld [vmem:[#allocation9 + $0x80] ss:$12 sps:$4 sm:$0xff]   ;;  %v2605_v16 = vld [vmem:[#allocation9 + $0x158] ss:$12 sps:$4 sm:$0xff]   ;;  %448 = vmatprep.subr.bf16.mxu0 %v2612_v12  ;;  %v2607_v20 = vld [vmem:[#allocation9 + $0x170] ss:$12 sps:$4 sm:$0xff]  }
  0x75   :  { %2012 = vmatprep.subr.bf16.mxu1 %v2597_v4  ;;  %449 = vmatpush1.bf16.msra.mxu0 %v2614_v13  ;;  %v2617_v17 = vld [vmem:[#allocation9 + $0x18] ss:$12 sps:$4 sm:$0xff]   ;;  %v2620_v21 = vld [vmem:[#allocation9 + $0x30] ss:$12 sps:$4 sm:$0xff]   ;;  %v2609_v25 = vld [vmem:[#allocation4] ss:$8 sps:$4 sm:$0xff]  }
  0x76   :  { %450 = vmatprep.subr.bf16.mxu0 %v2615_v15  ;;  %v2606_v19 = vld [vmem:[#allocation9 + $0x98] ss:$12 sps:$4 sm:$0xff]   ;;  %v2608_v23 = vld [vmem:[#allocation9 + $0xb0] ss:$12 sps:$4 sm:$0xff]   ;;  %v2626_v27 = vld [vmem:[#allocation9 + $0x60] ss:$12 sps:$4 sm:$0xff]  }
  0x77   :  { %v2621_v22 = vld [vmem:[#allocation9 + $0x4c] ss:$12 sps:$4 sm:$0xff]   ;;  %v2624_v26 = vld [vmem:[#allocation9 + $0x64] ss:$12 sps:$4 sm:$0xff]   ;;  %v2627_v28 = vld [vmem:[#allocation9 + $0x7c] ss:$12 sps:$4 sm:$0xff]  }
  0x78   :  { %2013 = vmatpush3.bf16.msra.mxu1 %v2598_v5  ;;  %v2629_v29 = vld [vmem:[#allocation9 + $0x78] ss:$12 sps:$4 sm:$0xff]   ;;  %v2630_v30 = vld [vmem:[#allocation9 + $0x94] ss:$12 sps:$4 sm:$0xff]   ;;  %v2632_v31 = vld [vmem:[#allocation9 + $0x90] ss:$12 sps:$4 sm:$0xff]  }
  0x79   :  { %2014 = vmatprep.subr.bf16.mxu1 %v2599_v6  ;;  %451 = vmatpush1.bf16.msra.mxu0 %v2617_v17  ;;  %v2633_v32 = vld [vmem:[#allocation9 + $0xac] ss:$12 sps:$4 sm:$0xff]   ;;  %v2635_v33 = vld [vmem:[#allocation9 + $0xa8] ss:$12 sps:$4 sm:$0xff]   ;;  %v2636_v34 = vld [vmem:[#allocation9 + $0xc4] ss:$12 sps:$4 sm:$0xff]  }
  0x7a   :  { %452 = vmatprep.subr.bf16.mxu0 %v2618_v18  ;;  %v2638_v35 = vld [vmem:[#allocation9 + $0xc0] ss:$12 sps:$4 sm:$0xff]   ;;  %v2639_v36 = vld [vmem:[#allocation9 + $0xdc] ss:$12 sps:$4 sm:$0xff]   ;;  %v2641_v37 = vld [vmem:[#allocation9 + $0xd8] ss:$12 sps:$4 sm:$0xff]  }
  0x7b   :  { %v2642_v38 = vld [vmem:[#allocation9 + $0xf4] ss:$12 sps:$4 sm:$0xff]   ;;  %v2644_v39 = vld [vmem:[#allocation9 + $0xf0] ss:$12 sps:$4 sm:$0xff]   ;;  %v2645_v40 = vld [vmem:[#allocation9 + $0x10c] ss:$12 sps:$4 sm:$0xff]  }
  0x7c   :  { %2015 = vmatpush3.bf16.msra.mxu1 %v2600_v7  ;;  %v2647_v41 = vld [vmem:[#allocation9 + $0x108] ss:$12 sps:$4 sm:$0xff]   ;;  %v2648_v42 = vld [vmem:[#allocation9 + $0x124] ss:$12 sps:$4 sm:$0xff]   ;;  %v2650_v43 = vld [vmem:[#allocation9 + $0x120] ss:$12 sps:$4 sm:$0xff]  }
  0x7d   :  { %2016 = vmatprep.subr.bf16.mxu1 %v2601_v8  ;;  %453 = vmatpush1.bf16.msra.mxu0 %v2620_v21  ;;  %v2651_v44 = vld [vmem:[#allocation9 + $0x13c] ss:$12 sps:$4 sm:$0xff]   ;;  %v2653_v45 = vld [vmem:[#allocation9 + $0x138] ss:$12 sps:$4 sm:$0xff]   ;;  %v2654_v46 = vld [vmem:[#allocation9 + $0x154] ss:$12 sps:$4 sm:$0xff]  }
  0x7e   :  { %454 = vmatprep.subr.bf16.mxu0 %v2621_v22  ;;  %v2656_v47 = vld [vmem:[#allocation9 + $0x150] ss:$12 sps:$4 sm:$0xff]   ;;  %v2657_v48 = vld [vmem:[#allocation9 + $0x16c] ss:$12 sps:$4 sm:$0xff]   ;;  %v2659_v49 = vld [vmem:[#allocation9 + $0x168] ss:$12 sps:$4 sm:$0xff]  }
  0x7f   :  { %v2662_v50 = vld [vmem:[#allocation12 + $0x4] ss:$8 sps:$4 sm:$0xff]   ;;  %v2660_v51 = vld [vmem:[#allocation12] ss:$8 sps:$4 sm:$0xff]   ;;  %v2665_v52 = vld [vmem:[#allocation12 + $0x14] ss:$8 sps:$4 sm:$0xff]  }
  0x80   :  { %2017 = vmatpush3.bf16.msra.mxu1 %v2602_v9  ;;  %v2663_v53 = vld [vmem:[#allocation12 + $0x10] ss:$8 sps:$4 sm:$0xff]   ;;  %v2668_v54 = vld [vmem:[#allocation12 + $0x24] ss:$8 sps:$4 sm:$0xff]   ;;  %v2666_v55 = vld [vmem:[#allocation12 + $0x20] ss:$8 sps:$4 sm:$0xff]  }
  0x81   :  { %2018 = vmatprep.subr.bf16.mxu1 %v2603_v10  ;;  %455 = vmatpush1.bf16.msra.mxu0 %v2623_v24  ;;  %v2671_v56 = vld [vmem:[#allocation12 + $0x34] ss:$8 sps:$4 sm:$0xff]   ;;  %v2669_v57 = vld [vmem:[#allocation12 + $0x30] ss:$8 sps:$4 sm:$0xff]   ;;  %v2674_v58 = vld [vmem:[#allocation12 + $0x44] ss:$8 sps:$4 sm:$0xff]  }
  0x82   :  { %456 = vmatprep.subr.bf16.mxu0 %v2624_v26  ;;  %v2672_v59 = vld [vmem:[#allocation12 + $0x40] ss:$8 sps:$4 sm:$0xff]   ;;  %v2677_v60 = vld [vmem:[#allocation12 + $0x54] ss:$8 sps:$4 sm:$0xff]   ;;  %v2675_v61 = vld [vmem:[#allocation12 + $0x50] ss:$8 sps:$4 sm:$0xff]  }
  0x83   :  { %v2680_v62 = vld [vmem:[#allocation12 + $0x64] ss:$8 sps:$4 sm:$0xff]   ;;  %v2678_v63 = vld [vmem:[#allocation12 + $0x60] ss:$8 sps:$4 sm:$0xff]   ;;  %v2683_v0 = vld [vmem:[#allocation12 + $0x74] ss:$8 sps:$4 sm:$0xff]  }
  0x84   :  { %2019 = vmatpush3.bf16.msra.mxu1 %v2604_v14  ;;  %v2681_v1 = vld [vmem:[#allocation12 + $0x70] ss:$8 sps:$4 sm:$0xff]   ;;  %v2904_v2 = vmov 0   ;;  %v560_v3 = vld [vmem:[#allocation10 + $0x8] sm:$0xff]  ;;  %v559_v5 = vld [vmem:[#allocation10] sm:$0xff] }
  0x85   :  { %2020 = vmatprep.subr.bf16.mxu1 %v2605_v16  ;;  %457 = vmatpush1.bf16.msra.mxu0 %v2626_v27  ;;  %v562_v4 = vld [vmem:[#allocation10 + $0x18] sm:$0xff]  ;;  %v561_v7 = vld [vmem:[#allocation10 + $0x10] sm:$0xff]  ;;  %v564_v8 = vld [vmem:[#allocation10 + $0x28] sm:$0xff] }
  0x86   :  { %458 = vmatprep.subr.bf16.mxu0 %v2627_v28  ;;  %v2030_v6 = vpack.c.bf16 %v562_v4, %v560_v3  ;;  %v566_v9 = vld [vmem:[#allocation10 + $0x38] sm:$0xff]  ;;  %v2032_v10 = vpack.c.bf16 %v561_v7, %v559_v5  ;;  %v563_v12 = vld [vmem:[#allocation10 + $0x20] sm:$0xff]  ;;  %v565_v13 = vld [vmem:[#allocation10 + $0x30] sm:$0xff] }
  0x87   :  { %v2034_v11 = vpack.c.bf16 %v566_v9, %v564_v8  ;;  %v568_v14 = vld [vmem:[#allocation10 + $0x48] sm:$0xff]  ;;  %v570_v15 = vld [vmem:[#allocation10 + $0x58] sm:$0xff]  ;;  %v2036_v16 = vpack.c.bf16 %v565_v13, %v563_v12  ;;  %v567_v18 = vld [vmem:[#allocation10 + $0x40] sm:$0xff] }
  0x88   :  { %2021 = vmatpush3.bf16.msra.mxu1 %v2606_v19  ;;  %v2038_v17 = vpack.c.bf16 %v570_v15, %v568_v14  ;;  %v569_v19 = vld [vmem:[#allocation10 + $0x50] sm:$0xff]  ;;  %v574_v21 = vld [vmem:[#allocation10 + $0x78] sm:$0xff]  ;;  %v571_v24 = vld [vmem:[#allocation10 + $0x60] sm:$0xff] }
  0x89   :  { %2022 = vmatprep.subr.bf16.mxu1 %v2607_v20  ;;  %459 = vmatpush1.bf16.msra.mxu0 %v2629_v29  ;;  %v572_v20 = vld [vmem:[#allocation10 + $0x68] sm:$0xff]  ;;  %v2040_v22 = vpack.c.bf16 %v569_v19, %v567_v18  ;;  %v578_v27 = vld [vmem:[#allocation10 + $0x98] sm:$0xff]  ;;  %v601_v3 = vld [vmem:[#allocation10 + $0x150] sm:$0xff] }
  0x8a   :  { %460 = vmatprep.subr.bf16.mxu0 %v2630_v30  ;;  %v576_v26 = vld [vmem:[#allocation10 + $0x88] sm:$0xff]  ;;  %v575_v30 = vld [vmem:[#allocation10 + $0x80] sm:$0xff]  ;;  %v606_v5 = vld [vmem:[#allocation10 + $0x178] sm:$0xff] }
  0x8b   :  { %v2046_v29 = vpack.c.bf16 %v578_v27, %v576_v26  ;;  %v604_v4 = vld [vmem:[#allocation10 + $0x168] sm:$0xff]  ;;  %v603_v8 = vld [vmem:[#allocation10 + $0x160] sm:$0xff]  ;;  %v605_v9 = vld [vmem:[#allocation10 + $0x170] sm:$0xff] }
  0x8c   :  { %2023 = vmatpush3.bf16.msra.mxu1 %v2608_v23  ;;  %v2042_v23 = vpack.c.bf16 %v574_v21, %v572_v20  ;;  %v2074_v7 = vpack.c.bf16 %v606_v5, %v604_v4  ;;  %v2076_v12 = vpack.c.bf16 %v605_v9, %v603_v8  ;;  %v607_v14 = vld [vmem:[#allocation10 + $0x180] sm:$0xff]  ;;  %v609_v15 = vld [vmem:[#allocation10 + $0x190] sm:$0xff]  ;;  %v987_v4 = vld [vmem:[#allocation13 + $0x78] sm:$0xff] }
  0x8d   :  { %461 = vmatpush1.bf16.msra.mxu0 %v2632_v31  ;;  %2031 = vmatprep.subr.bf16.mxu1 %v2030_v6  ;;  %v577_v31 = vld [vmem:[#allocation10 + $0x90] sm:$0xff]  ;;  %v2080_v18 = vpack.c.bf16 %v609_v15, %v607_v14  ;;  %v611_v20 = vld [vmem:[#allocation10 + $0x1a0] sm:$0xff]  ;;  %v989_v9 = vld [vmem:[#allocation13 + $0x88] sm:$0xff] }
  0x8e   :  { %462 = vmatprep.subr.bf16.mxu0 %v2633_v32  ;;  %v580_v32 = vld [vmem:[#allocation10 + $0xa8] sm:$0xff]  ;;  %v613_v21 = vld [vmem:[#allocation10 + $0x1b0] sm:$0xff] }
  0x8f   :  { %524 = vmatmul.mubr.bf16.vlgmr.msra.gmra.mrb[0].mxu1 %v2609_v25  ;;  %v617_v27 = vld [vmem:[#allocation10 + $0x1d0] sm:$0xff]  ;;  %v993_v15 = vld [vmem:[#allocation13 + $0xa8] sm:$0xff] }
  0x90   :  { %2033 = vmatpush1.bf16.msra.mxu1 %v2032_v10  ;;  %v608_v10 = vld [vmem:[#allocation10 + $0x188] sm:$0xff]  ;;  %v986_v8 = vld [vmem:[#allocation13 + $0x70] sm:$0xff] }
  0x91   :  { %463 = vmatpush1.bf16.msra.mxu0 %v2635_v33  ;;  %2035 = vmatprep.subr.bf16.mxu1 %v2034_v11  ;;  %v582_v33 = vld [vmem:[#allocation10 + $0xb8] sm:$0xff]  ;;  %v990_v14 = vld [vmem:[#allocation13 + $0x90] sm:$0xff] }
  0x92   :  { %464 = vmatprep.subr.bf16.mxu0 %v2636_v34  ;;  %v2048_v34 = vpack.c.bf16 %v577_v31, %v575_v30  ;;  %v610_v11 = vld [vmem:[#allocation10 + $0x198] sm:$0xff]  ;;  %v620_v30 = vld [vmem:[#allocation10 + $0x1e8] sm:$0xff] }
  0x93   :  { %v2078_v13 = vpack.c.bf16 %v610_v11, %v608_v10  ;;  %v622_v31 = vld [vmem:[#allocation10 + $0x1f8] sm:$0xff] }
  0x94   :  { %2037 = vmatpush1.bf16.msra.mxu1 %v2036_v16  ;;  %v612_v16 = vld [vmem:[#allocation10 + $0x1a8] sm:$0xff]  ;;  %v991_v10 = vld [vmem:[#allocation13 + $0x98] sm:$0xff] }
  0x95   :  { %465 = vmatpush1.bf16.msra.mxu0 %v2638_v35  ;;  %2039 = vmatprep.subr.bf16.mxu1 %v2038_v17  ;;  %v2050_v35 = vpack.c.bf16 %v582_v33, %v580_v32  ;;  %v614_v17 = vld [vmem:[#allocation10 + $0x1b8] sm:$0xff] }
  0x96   :  { %466 = vmatprep.subr.bf16.mxu0 %v2639_v36  ;;  %v579_v36 = vld [vmem:[#allocation10 + $0xa0] sm:$0xff]  ;;  %v2082_v19 = vpack.c.bf16 %v614_v17, %v612_v16  ;;  %v995_v16 = vld [vmem:[#allocation13 + $0xb8] sm:$0xff] }
  0x98   :  { %2041 = vmatpush1.bf16.msra.mxu1 %v2040_v22  ;;  %v616_v22 = vld [vmem:[#allocation10 + $0x1c8] sm:$0xff] }
  0x99   :  { %467 = vmatpush1.bf16.msra.mxu0 %v2641_v37  ;;  %2043 = vmatprep.subr.bf16.mxu1 %v2042_v23  ;;  %v581_v37 = vld [vmem:[#allocation10 + $0xb0] sm:$0xff]  ;;  %v618_v23 = vld [vmem:[#allocation10 + $0x1d8] sm:$0xff] }
  0x9a   :  { %468 = vmatprep.subr.bf16.mxu0 %v2642_v38  ;;  %v584_v38 = vld [vmem:[#allocation10 + $0xc8] sm:$0xff]  ;;  %v2086_v26 = vpack.c.bf16 %v618_v23, %v616_v22  ;;  %v999_v22 = vld [vmem:[#allocation13 + $0xd8] sm:$0xff] }
  0x9d   :  { %469 = vmatpush1.bf16.msra.mxu0 %v2644_v39  ;;  %v586_v39 = vld [vmem:[#allocation10 + $0xd8] sm:$0xff] }
  0x9e   :  { %470 = vmatprep.subr.bf16.mxu0 %v2645_v40  ;;  %v2052_v40 = vpack.c.bf16 %v581_v37, %v579_v36  ;;  %v621_v36 = vld [vmem:[#allocation10 + $0x1f0] sm:$0xff]  ;;  %v624_v37 = vld [vmem:[#allocation10 + $0x208] sm:$0xff] }
  0xa1   :  { %471 = vmatpush1.bf16.msra.mxu0 %v2647_v41  ;;  %v2054_v41 = vpack.c.bf16 %v586_v39, %v584_v38  ;;  %v626_v38 = vld [vmem:[#allocation10 + $0x218] sm:$0xff] }
  0xa2   :  { %472 = vmatprep.subr.bf16.mxu0 %v2648_v42  ;;  %v583_v42 = vld [vmem:[#allocation10 + $0xc0] sm:$0xff] }
  0xa5   :  { %473 = vmatpush1.bf16.msra.mxu0 %v2650_v43  ;;  %v585_v43 = vld [vmem:[#allocation10 + $0xd0] sm:$0xff] }
  0xa6   :  { %474 = vmatprep.subr.bf16.mxu0 %v2651_v44  ;;  %v588_v44 = vld [vmem:[#allocation10 + $0xe8] sm:$0xff] }
  0xa9   :  { %475 = vmatpush1.bf16.msra.mxu0 %v2653_v45  ;;  %v590_v45 = vld [vmem:[#allocation10 + $0xf8] sm:$0xff] }
  0xaa   :  { %476 = vmatprep.subr.bf16.mxu0 %v2654_v46  ;;  %v2056_v46 = vpack.c.bf16 %v585_v43, %v583_v42  ;;  %v1991_v43 = vld [vmem:[%s3752_s6] ss:$0 sm:$0xff] }
  0xad   :  { %477 = vmatpush1.bf16.msra.mxu0 %v2656_v47  ;;  %v2058_v47 = vpack.c.bf16 %v590_v45, %v588_v44 }
  0xae   :  { %478 = vmatprep.subr.bf16.mxu0 %v2657_v48  ;;  %v587_v48 = vld [vmem:[#allocation10 + $0xe0] sm:$0xff] }
  0xb1   :  { %479 = vmatpush1.bf16.msra.mxu0 %v2659_v49  ;;  %v589_v49 = vld [vmem:[#allocation10 + $0xf0] sm:$0xff] }
  0xb2   :  { %929 = vmatprep.subr.bf16.mxu0 %v2662_v50  ;;  %v592_v50 = vld [vmem:[#allocation10 + $0x108] sm:$0xff] }
  0xb4   :  { %481 = vmatmul.mubr.bf16.vlgmr.msra.gmra.mrb[0].mxu0 %v2609_v25  ;;  %v573_v25 = vld [vmem:[#allocation10 + $0x70] sm:$0xff] }
  0xb5   :  { %930 = vmatpush1.bf16.msra.mxu0 %v2660_v51  ;;  %961 = vmatprep.mubr.bf16.mxu0 %v2904_v2  ;;  %v2044_v28 = vpack.c.bf16 %v573_v25, %v571_v24  ;;  %v594_v51 = vld [vmem:[#allocation10 + $0x118] sm:$0xff]  ;;  %v599_v2 = vld [vmem:[#allocation10 + $0x140] sm:$0xff]  ;;  %v2084_v24 = vpack.c.bf16 %v613_v21, %v611_v20  ;;  %v994_v20 = vld [vmem:[#allocation13 + $0xb0] sm:$0xff] }
  0xb6   :  { %931 = vmatprep.subr.bf16.mxu0 %v2665_v52  ;;  %v2060_v52 = vpack.c.bf16 %v589_v49, %v587_v48  ;;  %v2072_v6 = vpack.c.bf16 %v601_v3, %v599_v2  ;;  %v615_v25 = vld [vmem:[#allocation10 + $0x1c0] sm:$0xff]  ;;  %v982_v2 = vld [vmem:[#allocation13 + $0x50] sm:$0xff]  ;;  %v985_v3 = vld [vmem:[#allocation13 + $0x68] sm:$0xff] }
  0xb7   :  { %2045 = vmatpush1.bf16.msra.mxu1 %v2044_v28  ;;  %v973_v28 = vld [vmem:[#allocation13 + $0x8] sm:$0xff]  ;;  %v2088_v33 = vpack.c.bf16 %v617_v27, %v615_v25  ;;  %v996_v25 = vld [vmem:[#allocation13 + $0xc0] sm:$0xff] }
  0xb8   :  { %2047 = vmatprep.subr.bf16.mxu1 %v2046_v29  ;;  %v975_v29 = vld [vmem:[#allocation13 + $0x18] sm:$0xff]  ;;  %v997_v21 = vld [vmem:[#allocation13 + $0xc8] sm:$0xff] }
  0xb9   :  { %932 = vmatpush1.bf16.msra.mxu0 %v2663_v53  ;;  %v2062_v53 = vpack.c.bf16 %v594_v51, %v592_v50  ;;  %v3065_v32 = vpack.c.bf16 %v975_v29, %v973_v28  ;;  %v972_v50 = vld [vmem:[#allocation13] sm:$0xff]  ;;  %v974_v51 = vld [vmem:[#allocation13 + $0x10] sm:$0xff]  ;;  %v1001_v27 = vld [vmem:[#allocation13 + $0xe8] sm:$0xff] }
  0xba   :  { %933 = vmatprep.subr.bf16.mxu0 %v2668_v54  ;;  %v591_v54 = vld [vmem:[#allocation10 + $0x100] sm:$0xff]  ;;  %v1003_v28 = vld [vmem:[#allocation13 + $0xf8] sm:$0xff] }
  0xbb   :  { %2049 = vmatpush1.bf16.msra.mxu1 %v2048_v34  ;;  %v2090_v34 = vpack.c.bf16 %v622_v31, %v620_v30  ;;  %v3109_v30 = vpack.c.bf16 %v1003_v28, %v1001_v27  ;;  %v1000_v31 = vld [vmem:[#allocation13 + $0xe0] sm:$0xff] }
  0xbc   :  { %2051 = vmatprep.subr.bf16.mxu1 %v2050_v35  ;;  %v619_v35 = vld [vmem:[#allocation10 + $0x1e0] sm:$0xff] }
  0xbd   :  { %934 = vmatpush1.bf16.msra.mxu0 %v2666_v55  ;;  %v593_v55 = vld [vmem:[#allocation10 + $0x110] sm:$0xff]  ;;  %v2092_v39 = vpack.c.bf16 %v621_v36, %v619_v35  ;;  %v1007_v35 = vld [vmem:[#allocation13 + $0x118] sm:$0xff]  ;;  %v1020_v28 = vld [vmem:[#allocation13 + $0x180] sm:$0xff] }
  0xbe   :  { %935 = vmatprep.subr.bf16.mxu0 %v2671_v56  ;;  %v596_v56 = vld [vmem:[#allocation10 + $0x128] sm:$0xff] }
  0xbf   :  { %2053 = vmatpush1.bf16.msra.mxu1 %v2052_v40  ;;  %v2094_v40 = vpack.c.bf16 %v626_v38, %v624_v37  ;;  %v1004_v38 = vld [vmem:[#allocation13 + $0x100] sm:$0xff] }
  0xc0   :  { %2055 = vmatprep.subr.bf16.mxu1 %v2054_v41 }
  0xc1   :  { %936 = vmatpush1.bf16.msra.mxu0 %v2669_v57  ;;  %v598_v57 = vld [vmem:[#allocation10 + $0x138] sm:$0xff] }
  0xc2   :  { %937 = vmatprep.subr.bf16.mxu0 %v2674_v58  ;;  %v2064_v58 = vpack.c.bf16 %v593_v55, %v591_v54 }
  0xc3   :  { %2057 = vmatpush1.bf16.msra.mxu1 %v2056_v46 }
  0xc4   :  { %2059 = vmatprep.subr.bf16.mxu1 %v2058_v47 }
  0xc5   :  { %938 = vmatpush1.bf16.msra.mxu0 %v2672_v59  ;;  %v2066_v59 = vpack.c.bf16 %v598_v57, %v596_v56  ;;  %v3071_v56 = vpack.c.bf16 %v974_v51, %v972_v50  ;;  %v1012_v50 = vld [vmem:[#allocation13 + $0x140] sm:$0xff]  ;;  %v1014_v51 = vld [vmem:[#allocation13 + $0x150] sm:$0xff] }
  0xc6   :  { %939 = vmatprep.subr.bf16.mxu0 %v2677_v60  ;;  %v595_v60 = vld [vmem:[#allocation10 + $0x120] sm:$0xff] }
  0xc7   :  { %2061 = vmatpush1.bf16.msra.mxu1 %v2060_v52  ;;  %v977_v52 = vld [vmem:[#allocation13 + $0x28] sm:$0xff] }
  0xc8   :  { %2063 = vmatprep.subr.bf16.mxu1 %v2062_v53  ;;  %v979_v53 = vld [vmem:[#allocation13 + $0x38] sm:$0xff] }
  0xc9   :  { %940 = vmatpush1.bf16.msra.mxu0 %v2675_v61  ;;  %v597_v61 = vld [vmem:[#allocation10 + $0x130] sm:$0xff] }
  0xca   :  { %941 = vmatprep.subr.bf16.mxu0 %v2680_v62  ;;  %v600_v62 = vld [vmem:[#allocation10 + $0x148] sm:$0xff] }
  0xcb   :  { %2065 = vmatpush1.bf16.msra.mxu1 %v2064_v58  ;;  %v3073_v58 = vpack.c.bf16 %v979_v53, %v977_v52  ;;  %v1017_v52 = vld [vmem:[#allocation13 + $0x168] sm:$0xff]  ;;  %v1019_v53 = vld [vmem:[#allocation13 + $0x178] sm:$0xff] }
  0xcc   :  { %2067 = vmatprep.subr.bf16.mxu1 %v2066_v59  ;;  %v976_v59 = vld [vmem:[#allocation13 + $0x20] sm:$0xff] }
  0xcd   :  { %942 = vmatpush1.bf16.msra.mxu0 %v2678_v63  ;;  %v602_v63 = vld [vmem:[#allocation10 + $0x158] sm:$0xff] }
  0xce   :  { %943 = vmatprep.subr.bf16.mxu0 %v2683_v0  ;;  %v2068_v0 = vpack.c.bf16 %v597_v61, %v595_v60  ;;  %v978_v60 = vld [vmem:[#allocation13 + $0x30] sm:$0xff]  ;;  %v981_v61 = vld [vmem:[#allocation13 + $0x48] sm:$0xff] }
  0xd0   :  { %2069 = vmatpush1.bf16.msra.mxu1 %v2068_v0 }
  0xd1   :  { %944 = vmatpush1.bf16.msra.mxu0 %v2681_v1  ;;  %v2070_v1 = vpack.c.bf16 %v602_v63, %v600_v62  ;;  %v983_v62 = vld [vmem:[#allocation13 + $0x58] sm:$0xff]  ;;  %v3076_v63 = vpack.c.bf16 %v978_v60, %v976_v59  ;;  %v1018_v59 = vld [vmem:[#allocation13 + $0x170] sm:$0xff] }
  0xd2   :  { %2127 = vmatprep.subr.bf16.mxu0 %v3065_v32  ;;  %v3079_v0 = vpack.c.bf16 %v983_v62, %v981_v61  ;;  %v3138_v61 = vpack.c.bf16 %v1019_v53, %v1017_v52  ;;  %v1024_v53 = vld [vmem:[#allocation13 + $0x1a0] sm:$0xff] }
  0xd3   :  { %2071 = vmatprep.subr.bf16.mxu1 %v2070_v1  ;;  %v980_v1 = vld [vmem:[#allocation13 + $0x40] sm:$0xff] }
  0xd4   :  { %2073 = vmatpush1.bf16.msra.mxu1 %v2072_v6  ;;  %v3082_v5 = vpack.c.bf16 %v982_v2, %v980_v1  ;;  %v3085_v6 = vpack.c.bf16 %v987_v4, %v985_v3  ;;  %v1021_v3 = vld [vmem:[#allocation13 + $0x188] sm:$0xff]  ;;  %v1023_v4 = vld [vmem:[#allocation13 + $0x198] sm:$0xff] }
  0xd5   :  { %2075 = vmatprep.subr.bf16.mxu1 %v2074_v7  ;;  %v984_v7 = vld [vmem:[#allocation13 + $0x60] sm:$0xff] }
  0xd6   :  { %v3088_v11 = vpack.c.bf16 %v986_v8, %v984_v7 }
  0xd8   :  { %2077 = vmatpush1.bf16.msra.mxu1 %v2076_v12  ;;  %v3091_v12 = vpack.c.bf16 %v991_v10, %v989_v9 }
  0xd9   :  { %2079 = vmatprep.subr.bf16.mxu1 %v2078_v13  ;;  %v988_v13 = vld [vmem:[#allocation13 + $0x80] sm:$0xff] }
  0xda   :  { %v3094_v17 = vpack.c.bf16 %v990_v14, %v988_v13 }
  0xdc   :  { %2081 = vmatpush1.bf16.msra.mxu1 %v2080_v18  ;;  %v3097_v18 = vpack.c.bf16 %v995_v16, %v993_v15  ;;  %v623_v16 = vld [vmem:[#allocation10 + $0x200] sm:$0xff] }
  0xdd   :  { %2083 = vmatprep.subr.bf16.mxu1 %v2082_v19  ;;  %v992_v19 = vld [vmem:[#allocation13 + $0xa0] sm:$0xff] }
  0xde   :  { %v3100_v23 = vpack.c.bf16 %v994_v20, %v992_v19  ;;  %v625_v19 = vld [vmem:[#allocation10 + $0x210] sm:$0xff]  ;;  %v628_v20 = vld [vmem:[#allocation10 + $0x228] sm:$0xff] }
  0xe0   :  { %2085 = vmatpush1.bf16.msra.mxu1 %v2084_v24  ;;  %v3103_v24 = vpack.c.bf16 %v999_v22, %v997_v21  ;;  %v3151_v21 = vpack.c.bf16 %v1023_v4, %v1021_v3  ;;  %v631_v4 = vld [vmem:[#allocation10 + $0x240] sm:$0xff] }
  0xe1   :  { %2087 = vmatprep.subr.bf16.mxu1 %v2086_v26  ;;  %v998_v26 = vld [vmem:[#allocation13 + $0xd0] sm:$0xff] }
  0xe2   :  { %v3106_v29 = vpack.c.bf16 %v998_v26, %v996_v25  ;;  %v630_v25 = vld [vmem:[#allocation10 + $0x238] sm:$0xff] }
  0xe4   :  { %2089 = vmatpush1.bf16.msra.mxu1 %v2088_v33  ;;  %v1002_v33 = vld [vmem:[#allocation13 + $0xf0] sm:$0xff] }
  0xe5   :  { %2091 = vmatprep.subr.bf16.mxu1 %v2090_v34  ;;  %v1005_v34 = vld [vmem:[#allocation13 + $0x108] sm:$0xff]  ;;  %v3112_v36 = vpack.c.bf16 %v1002_v33, %v1000_v31  ;;  %v1022_v31 = vld [vmem:[#allocation13 + $0x190] sm:$0xff] }
  0xe6   :  { %v3115_v37 = vpack.c.bf16 %v1007_v35, %v1005_v34  ;;  %v1025_v33 = vld [vmem:[#allocation13 + $0x1a8] sm:$0xff]  ;;  %v1027_v34 = vld [vmem:[#allocation13 + $0x1b8] sm:$0xff] }
  0xe7   :  { %v3158_v52 = vpack.c.bf16 %v1027_v34, %v1025_v33  ;;  %v642_v33 = vld [vmem:[#allocation10 + $0x298] sm:$0xff] }
  0xe8   :  { %2093 = vmatpush1.bf16.msra.mxu1 %v2092_v39  ;;  %v1006_v39 = vld [vmem:[#allocation13 + $0x110] sm:$0xff] }
  0xe9   :  { %2095 = vmatprep.subr.bf16.mxu1 %v2094_v40  ;;  %v1009_v40 = vld [vmem:[#allocation13 + $0x128] sm:$0xff] }
 0x162   :  { %v2024_v41 = vpop.f32.mrb[0].mxu1 }
 0x163   :  { %v2025_v42 = vpop.f32.mrb[1].mxu1 }
 0x164   :  { %v2026_v44 = vadd.f32 %v2025_v42, %v2024_v41  ;;  %v2027_v45 = vpop.f32.mrb[2].mxu1  ;;  %v1011_v41 = vld [vmem:[#allocation13 + $0x138] sm:$0xff]  ;;  %v3118_v42 = vpack.c.bf16 %v1006_v39, %v1004_v38  ;;  %v557_v38 = vld [vmem:[#allocation7] sm:$0xff]  ;;  %v2096_v39 = vpack.c.bf16 %v625_v19, %v623_v16  ;;  %v1028_v16 = vld [vmem:[#allocation13 + $0x1c0] sm:$0xff] }
 0x165   :  { %v2028_v46 = vpop.f32.mrb[3].mxu1  ;;  %v1030_v19 = vld [vmem:[#allocation13 + $0x1d0] sm:$0xff] }
 0x166   :  { %v816_v47 = vadd.f32 %v2026_v44, %v1991_v43  ;;  %v2029_v48 = vadd.f32 %v2028_v46, %v2027_v45  ;;  %v1008_v44 = vld [vmem:[#allocation13 + $0x120] sm:$0xff]  ;;  %v1010_v45 = vld [vmem:[#allocation13 + $0x130] sm:$0xff]  ;;  %v1013_v46 = vld [vmem:[#allocation13 + $0x148] sm:$0xff] }
 0x168   :  { %v817_v49 = vadd.f32 %v2029_v48, %v1991_v43  ;;  %v818_v54 = vmax.f32 %v816_v47, 0.0  ;;  %v3121_v43 = vpack.c.bf16 %v1011_v41, %v1009_v40  ;;  %v1015_v47 = vld [vmem:[#allocation13 + $0x158] sm:$0xff]  ;;  %v3124_v48 = vpack.c.bf16 %v1010_v45, %v1008_v44  ;;  %v627_v44 = vld [vmem:[#allocation10 + $0x220] sm:$0xff]  ;;  %v629_v45 = vld [vmem:[#allocation10 + $0x230] sm:$0xff] }
 0x169   :  { %v2098_v41 = vpack.c.bf16 %v630_v25, %v628_v20 }
 0x16a   :  { %v819_v55 = vmax.f32 %v817_v49, 0.0  ;;  %v3127_v49 = vpack.c.bf16 %v1015_v47, %v1013_v46  ;;  %v632_v46 = vld [vmem:[#allocation10 + $0x248] sm:$0xff]  ;;  %v3156_v47 = vpack.c.bf16 %v1022_v31, %v1020_v28  ;;  %v3167_v28 = vpack.c.bf16 %v1030_v19, %v1028_v16 }
 0x16b   :  { %v640_v31 = vld [vmem:[#allocation10 + $0x288] sm:$0xff] }
 0x16c   :  { %v820_v57 = vpack.c.bf16 %v819_v55, %v818_v54  ;;  %v3132_v54 = vstv %s3746_s0  ;;  %v3135_v55 = vpack.c.bf16 %v1014_v51, %v1012_v50  ;;  %v634_v50 = vld [vmem:[#allocation10 + $0x258] sm:$0xff]  ;;  %3762 = vst [vmem:[#allocation21_spill] sm:$0xff] %v3167_v28 }
 0x16d   :  { %v2102_v3 = vpack.c.bf16 %v634_v50, %v632_v46  ;;  %v643_v46 = vld [vmem:[#allocation10 + $0x2a0] sm:$0xff]  ;;  %v645_v50 = vld [vmem:[#allocation10 + $0x2b0] sm:$0xff] }
 0x16e   :  { %962 = vmatmul.mubr.bf16.vlgmr.msra.gmra.mrb[4].mxu0 %v820_v57  ;;  %v1016_v57 = vld [vmem:[#allocation13 + $0x160] sm:$0xff] }
 0x16f   :  { %2129 = vmatpush1.bf16.msra.mxu0 %v3071_v56  ;;  %v3143_v8 = vpack.c.bf16 %v1018_v59, %v1016_v57  ;;  %v1026_v57 = vld [vmem:[#allocation13 + $0x1b0] sm:$0xff]  ;;  %v1029_v59 = vld [vmem:[#allocation13 + $0x1c8] sm:$0xff] }
 0x170   :  { %2131 = vmatprep.subr.bf16.mxu0 %v3073_v58 }
 0x173   :  { %2133 = vmatpush1.bf16.msra.mxu0 %v3076_v63 }
 0x174   :  { %2135 = vmatprep.subr.bf16.mxu0 %v3079_v0 }
 0x177   :  { %2137 = vmatpush1.bf16.msra.mxu0 %v3082_v5 }
 0x178   :  { %2139 = vmatprep.subr.bf16.mxu0 %v3085_v6 }
 0x17b   :  { %2141 = vmatpush1.bf16.msra.mxu0 %v3088_v11 }
 0x17c   :  { %2143 = vmatprep.subr.bf16.mxu0 %v3091_v12 }
 0x17f   :  { %2145 = vmatpush1.bf16.msra.mxu0 %v3094_v17 }
 0x180   :  { %2147 = vmatprep.subr.bf16.mxu0 %v3097_v18 }
 0x183   :  { %2149 = vmatpush1.bf16.msra.mxu0 %v3100_v23 }
 0x184   :  { %2151 = vmatprep.subr.bf16.mxu0 %v3103_v24 }
 0x187   :  { %2153 = vmatpush1.bf16.msra.mxu0 %v3106_v29  ;;  %v482_v60 = vpop.f32.mrb[0].mxu0 }
 0x188   :  { %2155 = vmatprep.subr.bf16.mxu0 %v3109_v30  ;;  %v533_v62 = vsub.f32 %v482_v60, %v3132_v54  ;;  %v541_v1 = vsub.f32 0.0, %v482_v60  ;;  %v3141_v2 = vpop.f32.mrb[1].mxu0  ;;  %v1031_v60 = vld [vmem:[#allocation13 + $0x1d8] sm:$0xff] }
 0x189   :  { %v486_v7 = vpop.f32.mrb[2].mxu0 }
 0x18a   :  { %v537_v9 = vmax.f32 %v533_v62, 0.0  ;;  %v545_v10 = vsub.f32 %v541_v1, %v3132_v54  ;;  %v535_v13 = vsub.f32 %v486_v7, %v3132_v54  ;;  %v543_v14 = vsub.f32 0.0, %v486_v7  ;;  %v3147_v15 = vpop.f32.mrb[3].mxu0  ;;  %v558_v1 = vld [vmem:[#allocation7 + $0x8] sm:$0xff]  ;;  %v633_v7 = vld [vmem:[#allocation10 + $0x250] sm:$0xff] }
 0x18b   :  { %2157 = vmatpush1.bf16.msra.mxu0 %v3112_v36  ;;  %v2100_v62 = vpack.c.bf16 %v629_v45, %v627_v44  ;;  %v2104_v20 = vpack.c.bf16 %v633_v7, %v631_v4  ;;  %v654_v4 = vld [vmem:[#allocation10 + $0x2f8] sm:$0xff]  ;;  %v534_v7 = vsub.f32 %v3141_v2, %v3132_v54 }
 0x18c   :  { %2159 = vmatprep.subr.bf16.mxu0 %v3115_v37  ;;  %v549_v22 = vmax.f32 %v545_v10, 0.0  ;;  %v539_v26 = vmax.f32 %v535_v13, 0.0  ;;  %v547_v27 = vsub.f32 %v543_v14, %v3132_v54  ;;  %v3161_v10 = vpack.c.bf16 %v1026_v57, %v1024_v53  ;;  %v638_v13 = vld [vmem:[#allocation10 + $0x278] sm:$0xff] }
 0x18d   :  { %v3164_v14 = vpack.c.bf16 %v1031_v60, %v1029_v59  ;;  %v650_v53 = vld [vmem:[#allocation10 + $0x2d8] sm:$0xff]  ;;  %v542_v57 = vsub.f32 0.0, %v3141_v2  ;;  %v2116_v59 = vpack.c.bf16 %v645_v50, %v643_v46 }
 0x18e   :  { %v553_v35 = vsub.f32 %v537_v9, %v549_v22  ;;  %v551_v40 = vmax.f32 %v547_v27, 0.0  ;;  %v636_v9 = vld [vmem:[#allocation10 + $0x268] sm:$0xff]  ;;  %v2905_v22 = vmov 0.0   ;;  %v637_v27 = vld [vmem:[#allocation10 + $0x270] sm:$0xff] }
 0x18f   :  { %2161 = vmatpush1.bf16.msra.mxu0 %v3118_v42  ;;  %v2106_v25 = vpack.c.bf16 %v638_v13, %v636_v9  ;;  %v546_v9 = vsub.f32 %v542_v57, %v3132_v54  ;;  %v544_v13 = vsub.f32 0.0, %v3147_v15 }
 0x190   :  { %2163 = vmatprep.subr.bf16.mxu0 %v3121_v43  ;;  %719 = vmatprep.mubr.f32.mxu1 %v553_v35  ;;  %v555_v51 = vsub.f32 %v539_v26, %v551_v40  ;;  %v635_v26 = vld [vmem:[#allocation10 + $0x260] sm:$0xff]  ;;  %v2110_v35 = vpack.c.bf16 %v642_v33, %v640_v31  ;;  %v644_v40 = vld [vmem:[#allocation10 + $0x2a8] sm:$0xff]  ;;  %v536_v31 = vsub.f32 %v3147_v15, %v3132_v54 }
 0x191   :  { %720 = vmatmul.mubr.f32.vlgmr.msra.gmra.mrb[4].mxu1 %v557_v38  ;;  %v2108_v34 = vpack.c.bf16 %v637_v27, %v635_v26  ;;  %v639_v38 = vld [vmem:[#allocation10 + $0x280] sm:$0xff]  ;;  %v538_v26 = vmax.f32 %v534_v7, 0.0  ;;  %v550_v27 = vmax.f32 %v546_v9, 0.0  ;;  %v548_v33 = vsub.f32 %v544_v13, %v3132_v54  ;;  %v1034_v54 = vld [vmem:[#allocation13 + $0x1f0] sm:$0xff] }
 0x192   :  { %2097 = vmatpush1.bf16.msra.mxu1 %v2096_v39  ;;  %725 = vmatprep.mubr.f32.mxu1 %v555_v51  ;;  %v641_v39 = vld [vmem:[#allocation10 + $0x290] sm:$0xff]  ;;  %v648_v51 = vld [vmem:[#allocation10 + $0x2c8] sm:$0xff]  ;;  %v1032_v15 = vld [vmem:[#allocation13 + $0x1e0] sm:$0xff] }
 0x193   :  { %2165 = vmatpush1.bf16.msra.mxu0 %v3124_v48  ;;  %2099 = vmatprep.subr.bf16.mxu1 %v2098_v41  ;;  %v646_v41 = vld [vmem:[#allocation10 + $0x2b8] sm:$0xff]  ;;  %v2112_v44 = vpack.c.bf16 %v641_v39, %v639_v38  ;;  %v2118_v60 = vpack.c.bf16 %v650_v53, %v648_v51  ;;  %v554_v2 = vsub.f32 %v538_v26, %v550_v27  ;;  %v552_v38 = vmax.f32 %v548_v33, 0.0  ;;  %v837_v51 = vld [vmem:[%s3753_s7] sm:$0x3]  ;;  %s2906_s7 = smov [#allocation15]  }
 0x194   :  { %2167 = vmatprep.subr.bf16.mxu0 %v3127_v49  ;;  %v2114_v45 = vpack.c.bf16 %v646_v41, %v644_v40  ;;  %v1033_v40 = vld [vmem:[#allocation13 + $0x1e8] sm:$0xff]  ;;  %v1035_v41 = vld [vmem:[#allocation13 + $0x1f8] sm:$0xff]  ;;  %s1926_s28 = sshll.u32 %s2906_s7, 4  ;;  %s1927_s28 = int_to_ptr.vmem [resolvable:$true] %s1926_s28 }
 0x195   :  { %726 = vmatmul.mubr.f32.gmra.mrb[6].mxu1 %v558_v1  ;;  %v649_v1 = vld [vmem:[#allocation10 + $0x2d0] sm:$0xff]  ;;  %s2860_s4 = scalar_lea.vmem %s1927_s28, 512  ;;  %p2865_p7 = scmp.lt.s32.totalorder %s1927_s28, %s1927_s28 }
 0x196   :  { %2101 = vmatpush1.bf16.msra.mxu1 %v2100_v62  ;;  %796 = vmatprep.mubr.f32.mxu1 %v2905_v22  ;;  %v647_v62 = vld [vmem:[#allocation10 + $0x2c0] sm:$0xff]  ;;  %p2861_p6 = scmp.ne.s32.totalorder %s1927_s28, %s2860_s4  ;;  %p2866_p8 = scmp.lt.s32.totalorder %s2860_s4, %s2860_s4 }
 0x197   :  { %2169 = vmatpush1.bf16.msra.mxu0 %v3135_v55  ;;  %2103 = vmatprep.subr.bf16.mxu1 %v2102_v3  ;;  %v652_v3 = vld [vmem:[#allocation10 + $0x2e8] sm:$0xff]  ;;  %v2120_v16 = vpack.c.bf16 %v649_v1, %v647_v62 }
 0x198   :  { %2171 = vmatprep.subr.bf16.mxu0 %v3138_v61  ;;  %v2122_v19 = vpack.c.bf16 %v654_v4, %v652_v3  ;;  %p2867_p9 = por %p2866_p8, %p2865_p7 }
 0x19a   :  { %2105 = vmatpush1.bf16.msra.mxu1 %v2104_v20  ;;  %v651_v20 = vld [vmem:[#allocation10 + $0x2e0] sm:$0xff]  ;;  %p2868_p10 = pnand %p2867_p9, %p2861_p6 }
 0x19b   :  { %2173 = vmatpush1.bf16.msra.mxu0 %v3143_v8  ;;  %2107 = vmatprep.subr.bf16.mxu1 %v2106_v25  ;;  %v653_v25 = vld [vmem:[#allocation10 + $0x2f0] sm:$0xff] }
 0x19c   :  { %2175 = vmatprep.subr.bf16.mxu0 %v3151_v21 }
 0x19e   :  { %2109 = vmatpush1.bf16.msra.mxu1 %v2108_v34  ;;  %v2124_v34 = vpack.c.bf16 %v653_v25, %v651_v20 }
 0x19f   :  { %2177 = vmatpush1.bf16.msra.mxu0 %v3156_v47  ;;  %2111 = vmatprep.subr.bf16.mxu1 %v2110_v35  ;;  %v540_v35 = vmax.f32 %v536_v31, 0.0 }
 0x1a0   :  { %2179 = vmatprep.subr.bf16.mxu0 %v3158_v52 }
 0x1a1   :  { %v556_v39 = vsub.f32 %v540_v35, %v552_v38 }
 0x1a2   :  { %2113 = vmatpush1.bf16.msra.mxu1 %v2112_v44  ;;  %v3181_v44 = vpack.c.bf16 %v1035_v41, %v1033_v40 }
 0x1a3   :  { %2181 = vmatpush1.bf16.msra.mxu0 %v3161_v10  ;;  %2115 = vmatprep.subr.bf16.mxu1 %v2114_v45  ;;  %v3184_v45 = vpack.c.bf16 %v1034_v54, %v1032_v15 }
 0x1a4   :  { %2183 = vmatprep.subr.bf16.mxu0 %v3164_v14  ;;  %3763 = vst [vmem:[#allocation22_spill] sm:$0xff] %v3181_v44 }
 0x1a5   :  { %3764 = vst [vmem:[#allocation23_spill] sm:$0xff] %v3184_v45 }
 0x1a6   :  { %2117 = vmatpush1.bf16.msra.mxu1 %v2116_v59 }
 0x1a7   :  { %2185 = vmatpush1.bf16.msra.mxu0 %v3167_v28  ;;  %2119 = vmatprep.subr.bf16.mxu1 %v2118_v60 }
 0x1a8   :  { %2187 = vmatprep.subr.bf16.mxu0 %v3181_v44 }
 0x1aa   :  { %2121 = vmatpush1.bf16.msra.mxu1 %v2120_v16 }
 0x1ab   :  { %2123 = vmatprep.subr.bf16.mxu1 %v2122_v19  ;;  %2189 = vmatpush1.bf16.msra.mxu0 %v3184_v45 }
 0x1ac   :  { %2255 = vmatprep.subr.bf16.mxu0 %v3065_v32 }
 0x1ae   :  { %2125 = vmatpush1.bf16.msra.mxu1 %v2124_v34 }
 0x1af   :  { %2191 = vmatprep.subr.bf16.mxu1 %v3065_v32 }
 0x1b1   :  { %797 = vmatmul.mubr.f32.vlgmr.msra.gmra.mrb[4].mxu1 %v554_v2 }
 0x1b2   :  { %802 = vmatprep.mubr.f32.mxu1 %v2905_v22  ;;  %2193 = vmatpush1.bf16.msra.mxu1 %v3071_v56  ;;  %v839_v22 = vlaneseq }
 0x1b3   :  { %2195 = vmatprep.subr.bf16.mxu1 %v3073_v58 }
 0x1b4   :  { %v840_v46 = vshrl.u32 %v839_v22, 7 }
 0x1b5   :  { %803 = vmatmul.mubr.f32.gmra.mrb[6].mxu1 %v556_v39 }
 0x1b6   :  { %2197 = vmatpush1.bf16.msra.mxu1 %v3076_v63  ;;  %v845_v50 = vsub.s32 1, %v840_v46  ;;  %v841_v53 = vsub.s32 0, %v840_v46 }
 0x1b7   :  { %2199 = vmatprep.subr.bf16.mxu1 %v3079_v0 }
 0x1b8   :  { %v846_v57 = vrot.slane %v837_v51, %v845_v50  ;;  %v842_v59 = vrot.slane %v837_v51, %v841_v53 }
 0x1ba   :  { %2201 = vmatpush1.bf16.msra.mxu1 %v3082_v5 }
 0x1bb   :  { %2203 = vmatprep.subr.bf16.mxu1 %v3085_v6 }
 0x1be   :  { %2205 = vmatpush1.bf16.msra.mxu1 %v3088_v11 }
 0x1bf   :  { %2207 = vmatprep.subr.bf16.mxu1 %v3091_v12 }
 0x1c2   :  { %2209 = vmatpush1.bf16.msra.mxu1 %v3094_v17 }
 0x1c3   :  { %2211 = vmatprep.subr.bf16.mxu1 %v3097_v18 }
 0x1c6   :  { %2213 = vmatpush1.bf16.msra.mxu1 %v3100_v23 }
 0x1c7   :  { %2215 = vmatprep.subr.bf16.mxu1 %v3103_v24 }
 0x1ca   :  { %2217 = vmatpush1.bf16.msra.mxu1 %v3106_v29 }
 0x1cb   :  { %2219 = vmatprep.subr.bf16.mxu1 %v3109_v30 }
 0x1ce   :  { %2221 = vmatpush1.bf16.msra.mxu1 %v3112_v36 }
 0x1cf   :  { %2223 = vmatprep.subr.bf16.mxu1 %v3115_v37 }
 0x1d2   :  { %2225 = vmatpush1.bf16.msra.mxu1 %v3118_v42 }
 0x1d3   :  { %2227 = vmatprep.subr.bf16.mxu1 %v3121_v43 }
 0x1d6   :  { %2229 = vmatpush1.bf16.msra.mxu1 %v3124_v48 }
 0x1d7   :  { %2231 = vmatprep.subr.bf16.mxu1 %v3127_v49 }
 0x1da   :  { %2233 = vmatpush1.bf16.msra.mxu1 %v3135_v55 }
 0x1db   :  { %2235 = vmatprep.subr.bf16.mxu1 %v3138_v61 }
 0x1de   :  { %2237 = vmatpush1.bf16.msra.mxu1 %v3143_v8 }
 0x1df   :  { %2239 = vmatprep.subr.bf16.mxu1 %v3151_v21 }
 0x1e2   :  { %2241 = vmatpush1.bf16.msra.mxu1 %v3156_v47 }
 0x1e3   :  { %2243 = vmatprep.subr.bf16.mxu1 %v3158_v52 }
 0x1e6   :  { %2245 = vmatpush1.bf16.msra.mxu1 %v3161_v10 }
 0x1e7   :  { %2247 = vmatprep.subr.bf16.mxu1 %v3164_v14 }
 0x1ea   :  { %2249 = vmatpush1.bf16.msra.mxu1 %v3167_v28 }
 0x1eb   :  { %2251 = vmatprep.subr.bf16.mxu1 %v3181_v44 }
 0x1ee   :  { %2253 = vmatpush1.bf16.msra.mxu1 %v3184_v45 }
 0x1ef   :  { %2319 = vmatprep.subr.bf16.mxu1 %v3065_v32 }
 0x241   :  { %v963_v60 = vpop.f32.mrb[4].mxu0 }
 0x242   :  { %v965_v62 = vpop.f32.mrb[5].mxu0  ;;  %v3224_v4 = vadd.f32 %v963_v60, %v842_v59 }
 0x243   :  { %v3222_v1 = vadd.f32 %v965_v62, %v846_v57  ;;  %v967_v3 = vpop.f32.mrb[6].mxu0 }
 0x244   :  { %v969_v7 = vpop.f32.mrb[7].mxu0  ;;  %v3232_v13 = vadd.f32 %v967_v3, %v842_v59 }
 0x245   :  { %v3226_v9 = vadd.f32 %v969_v7, %v846_v57  ;;  %1100 = vmatprep.mubr.f32.mxu0 %v3222_v1 }
 0x246   :  { %1101 = vmatmul.mubr.f32.vlgmr.msra.gmra.mrb[8].mxu0 %v3224_v4 }
 0x247   :  { %1106 = vmatprep.mubr.f32.mxu0 %v3226_v9  ;;  %2257 = vmatpush1.bf16.msra.mxu0 %v3071_v56 }
 0x248   :  { %2259 = vmatprep.subr.bf16.mxu0 %v3073_v58 }
 0x24a   :  { %1107 = vmatmul.mubr.f32.gmra.mrb[10].mxu0 %v3232_v13 }
 0x24b   :  { %2261 = vmatpush1.bf16.msra.mxu0 %v3076_v63 }
 0x24c   :  { %2263 = vmatprep.subr.bf16.mxu0 %v3079_v0 }
 0x24f   :  { %2265 = vmatpush1.bf16.msra.mxu0 %v3082_v5 }
 0x250   :  { %2267 = vmatprep.subr.bf16.mxu0 %v3085_v6 }
 0x253   :  { %2269 = vmatpush1.bf16.msra.mxu0 %v3088_v11 }
 0x254   :  { %2271 = vmatprep.subr.bf16.mxu0 %v3091_v12 }
 0x257   :  { %2273 = vmatpush1.bf16.msra.mxu0 %v3094_v17 }
 0x258   :  { %2275 = vmatprep.subr.bf16.mxu0 %v3097_v18 }
 0x25b   :  { %2277 = vmatpush1.bf16.msra.mxu0 %v3100_v23 }
 0x25c   :  { %2279 = vmatprep.subr.bf16.mxu0 %v3103_v24 }
 0x25f   :  { %2281 = vmatpush1.bf16.msra.mxu0 %v3106_v29 }
 0x260   :  { %2283 = vmatprep.subr.bf16.mxu0 %v3109_v30 }
 0x263   :  { %2285 = vmatpush1.bf16.msra.mxu0 %v3112_v36 }
 0x264   :  { %2287 = vmatprep.subr.bf16.mxu0 %v3115_v37 }
 0x267   :  { %2289 = vmatpush1.bf16.msra.mxu0 %v3118_v42 }
 0x268   :  { %2291 = vmatprep.subr.bf16.mxu0 %v3121_v43 }
 0x26b   :  { %2293 = vmatpush1.bf16.msra.mxu0 %v3124_v48 }
 0x26c   :  { %2295 = vmatprep.subr.bf16.mxu0 %v3127_v49 }
 0x26f   :  { %2297 = vmatpush1.bf16.msra.mxu0 %v3135_v55 }
 0x270   :  { %2299 = vmatprep.subr.bf16.mxu0 %v3138_v61 }
 0x273   :  { %2301 = vmatpush1.bf16.msra.mxu0 %v3143_v8 }
 0x274   :  { %2303 = vmatprep.subr.bf16.mxu0 %v3151_v21 }
 0x277   :  { %2305 = vmatpush1.bf16.msra.mxu0 %v3156_v47 }
 0x278   :  { %2307 = vmatprep.subr.bf16.mxu0 %v3158_v52 }
 0x27b   :  { %2309 = vmatpush1.bf16.msra.mxu0 %v3161_v10 }
 0x27c   :  { %2311 = vmatprep.subr.bf16.mxu0 %v3164_v14 }
 0x27f   :  { %2313 = vmatpush1.bf16.msra.mxu0 %v3167_v28 }
 0x280   :  { %2315 = vmatprep.subr.bf16.mxu0 %v3181_v44 }
 0x283   :  { %2317 = vmatpush1.bf16.msra.mxu0 %v3184_v45 }
 0x284   :  { %2383 = vmatprep.subr.bf16.mxu0 %v3065_v32  ;;  %v798_v16 = vpop.f32.mrb[4].mxu1 }
 0x285   :  { %v800_v19 = vpop.f32.mrb[5].mxu1 }
 0x288   :  { %v804_v20 = vpop.f32.mrb[6].mxu1 }
 0x289   :  { %v806_v25 = vpop.f32.mrb[7].mxu1 }
 0x319   :  { %v1102_v26 = vpop.f32.mrb[8].mxu0 }
 0x31a   :  { %v3266_v27 = vsub.f32 %v1102_v26, %v798_v16  ;;  %v1104_v31 = vpop.f32.mrb[9].mxu0 }
 0x31b   :  { %v3268_v33 = vsub.f32 %v1104_v31, %v800_v19 }
 0x31c   :  { %v1121_v34 = vmul.f32 %v3266_v27, %v3266_v27  ;;  %v3278_v39 = vsub.f32 0.0, %v3266_v27 }
 0x31d   :  { %v3273_v2 = vsub.f32 0.0, %v3268_v33  ;;  %v1108_v35 = vpop.f32.mrb[10].mxu0  ;;  %v1122_v38 = vmul.f32 %v3268_v33, %v3268_v33 }
 0x31e   :  { %v3280_v40 = vsub.f32 %v1108_v35, %v804_v20  ;;  %v1110_v41 = vpop.f32.mrb[11].mxu0 }
 0x31f   :  { %v3282_v15 = vsub.f32 %v1110_v41, %v806_v25  ;;  %1195 = vmatprep.mubr.f32.mxu1 %v3273_v2  ;;  %v1125_v54 = vadd.f32 %v1122_v38, %v1121_v34 }
 0x320   :  { %1196 = vmatmul.mubr.f32.vlgmr.msra.gmra.mrb[8].mxu1 %v3278_v39  ;;  %v1123_v22 = vmul.f32 %v3280_v40, %v3280_v40  ;;  %v3295_v51 = vsub.f32 0.0, %v3280_v40 }
 0x321   :  { %v3289_v46 = vsub.f32 0.0, %v3282_v15  ;;  %1126 = vadd.xlane.f32.xlu1 %v1125_v54  ;;  %v1124_v50 = vmul.f32 %v3282_v15, %v3282_v15  ;;  %2321 = vmatpush1.bf16.msra.mxu1 %v3071_v56 }
 0x322   :  { %2323 = vmatprep.subr.bf16.mxu1 %v3073_v58 }
 0x323   :  { %1201 = vmatprep.mubr.f32.mxu1 %v3289_v46  ;;  %v1128_v53 = vadd.f32 %v1124_v50, %v1123_v22 }
 0x324   :  { %1202 = vmatmul.mubr.f32.gmra.mrb[10].mxu1 %v3295_v51 }
 0x325   :  { %1129 = vadd.xlane.f32.xlu1 %v1128_v53  ;;  %2325 = vmatpush1.bf16.msra.mxu1 %v3076_v63 }
 0x326   :  { %2327 = vmatprep.subr.bf16.mxu1 %v3079_v0 }
 0x329   :  { %2329 = vmatpush1.bf16.msra.mxu1 %v3082_v5 }
 0x32a   :  { %2331 = vmatprep.subr.bf16.mxu1 %v3085_v6 }
 0x32d   :  { %2333 = vmatpush1.bf16.msra.mxu1 %v3088_v11 }
 0x32e   :  { %2335 = vmatprep.subr.bf16.mxu1 %v3091_v12 }
 0x331   :  { %2337 = vmatpush1.bf16.msra.mxu1 %v3094_v17 }
 0x332   :  { %2339 = vmatprep.subr.bf16.mxu1 %v3097_v18 }
 0x335   :  { %2341 = vmatpush1.bf16.msra.mxu1 %v3100_v23 }
 0x336   :  { %2343 = vmatprep.subr.bf16.mxu1 %v3103_v24 }
 0x339   :  { %2345 = vmatpush1.bf16.msra.mxu1 %v3106_v29 }
 0x33a   :  { %2347 = vmatprep.subr.bf16.mxu1 %v3109_v30 }
 0x33d   :  { %2349 = vmatpush1.bf16.msra.mxu1 %v3112_v36 }
 0x33e   :  { %2351 = vmatprep.subr.bf16.mxu1 %v3115_v37 }
 0x341   :  { %2353 = vmatpush1.bf16.msra.mxu1 %v3118_v42 }
 0x342   :  { %2355 = vmatprep.subr.bf16.mxu1 %v3121_v43 }
 0x345   :  { %2357 = vmatpush1.bf16.msra.mxu1 %v3124_v48 }
 0x346   :  { %2359 = vmatprep.subr.bf16.mxu1 %v3127_v49 }
 0x349   :  { %2361 = vmatpush1.bf16.msra.mxu1 %v3135_v55 }
 0x34a   :  { %2363 = vmatprep.subr.bf16.mxu1 %v3138_v61 }
 0x34d   :  { %2365 = vmatpush1.bf16.msra.mxu1 %v3143_v8 }
 0x34e   :  { %2367 = vmatprep.subr.bf16.mxu1 %v3151_v21 }
 0x351   :  { %2369 = vmatpush1.bf16.msra.mxu1 %v3156_v47 }
 0x352   :  { %2371 = vmatprep.subr.bf16.mxu1 %v3158_v52 }
 0x355   :  { %2373 = vmatpush1.bf16.msra.mxu1 %v3161_v10 }
 0x356   :  { %2375 = vmatprep.subr.bf16.mxu1 %v3164_v14 }
 0x359   :  { %2377 = vmatpush1.bf16.msra.mxu1 %v3167_v28 }
 0x35a   :  { %2379 = vmatprep.subr.bf16.mxu1 %v3181_v44 }
 0x35d   :  { %2381 = vmatpush1.bf16.msra.mxu1 %v3184_v45 }
 0x35e   :  { %2447 = vmatprep.subr.bf16.mxu1 %v3065_v32 }
 0x3ae   :  { %v1127_v38 = vpop.xlane.xlu1 %1126 }
 0x3f3   :  { %v1197_v57 = vpop.f32.mrb[8].mxu1 }
 0x3f4   :  { %v1208_v59 = vmul.f32 %v1197_v57, %v3278_v39  ;;  %v1199_v60 = vpop.f32.mrb[9].mxu1 }
 0x3f5   :  { %v1209_v62 = vmul.f32 %v1199_v60, %v3273_v2 }
 0x3f7   :  { %v1203_v3 = vpop.f32.mrb[10].mxu1  ;;  %v1212_v7 = vadd.f32 %v1209_v62, %v1208_v59  ;;  %v1130_v59 = vpop.xlane.xlu1 %1129 }
 0x3f8   :  { %v1210_v16 = vmul.f32 %v1203_v3, %v3295_v51  ;;  %v1205_v19 = vpop.f32.mrb[11].mxu1 }
 0x3f9   :  { %v1211_v20 = vmul.f32 %v1205_v19, %v3289_v46  ;;  %1213 = vadd.xlane.f32.xlu0 %v1212_v7 }
 0x3fb   :  { %v1215_v25 = vadd.f32 %v1211_v20, %v1210_v16 }
 0x3fd   :  { %1216 = vadd.xlane.f32.xlu0 %v1215_v25 }
 0x486   :  { %v1214_v26 = vpop.xlane.xlu0 %1213 }
 0x487   :  { %v1218_v31 = vmax.f32 %v1214_v26, 1e-30 }
 0x489   :  { %2684 = vrcp.f32 %v1218_v31 }
 0x48a   :  { %v1217_v34 = vpop.xlane.xlu0 %1216 }
 0x48b   :  { %v1219_v35 = vmax.f32 %v1217_v34, 1e-30 }
 0x48d   :  { %2686 = vrcp.f32 %v1219_v35 }
 0x493   :  { %v2685_v41 = vpop.eup %2684 }
 0x494   :  { %v3334_v54 = vmul.f32 %v2685_v41, %v1127_v38  ;;  %v1250_v41 = vmax.f32 %v1127_v38, 1e-30 }
 0x496   :  { %v1232_v22 = vmul.f32 %v3334_v54, %v1197_v57  ;;  %v1233_v50 = vmul.f32 %v3334_v54, %v1199_v60  ;;  %2688 = vrcp.f32 %v1250_v41 }
 0x497   :  { %v2687_v53 = vpop.eup %2686 }
 0x498   :  { %v3338_v62 = vmul.f32 %v2687_v53, %v1130_v59  ;;  %v3341_v7 = vadd.f32 %v1232_v22, %v3266_v27  ;;  %v3344_v16 = vadd.f32 %v1233_v50, %v3268_v33 }
 0x49a   :  { %v1240_v20 = vmul.f32 %v3341_v7, %v3341_v7  ;;  %v1241_v25 = vmul.f32 %v3344_v16, %v3344_v16  ;;  %v1234_v57 = vmul.f32 %v3338_v62, %v1203_v3  ;;  %v1235_v60 = vmul.f32 %v3338_v62, %v1205_v19 }
 0x49b   :  { %v1251_v3 = vmax.f32 %v1130_v59, 1e-30 }
 0x49c   :  { %v1244_v26 = vadd.f32 %v1241_v25, %v1240_v20  ;;  %v3353_v31 = vadd.f32 %v1234_v57, %v3280_v40  ;;  %v3356_v27 = vadd.f32 %v1235_v60, %v3282_v15  ;;  %v1256_v15 = vsub.f32 0.0, %v3341_v7 }
 0x49d   :  { %2690 = vrcp.f32 %v1251_v3  ;;  %v1257_v20 = vsub.f32 0.0, %v3344_v16 }
 0x49e   :  { %1245 = vadd.xlane.f32.xlu0 %v1244_v26  ;;  %v1242_v33 = vmul.f32 %v3353_v31, %v3353_v31  ;;  %v1243_v34 = vmul.f32 %v3356_v27, %v3356_v27 }
 0x4a0   :  { %v1247_v35 = vadd.f32 %v1243_v34, %v1242_v33  ;;  %v2689_v19 = vpop.eup %2688  ;;  %v1259_v34 = vsub.f32 0.0, %v3356_v27 }
 0x4a2   :  { %1248 = vadd.xlane.f32.xlu1 %v1247_v35  ;;  %v1258_v35 = vsub.f32 0.0, %v3353_v31 }
 0x4a7   :  { %v2691_v25 = vpop.eup %2690 }
 0x52b   :  { %v3362_v22 = vpop.xlane.xlu0 %1245 }
 0x52c   :  { %v1253_v40 = vmul.f32 %v2689_v19, %v3362_v22 }
 0x52e   :  { %v1260_v50 = vmul.f32 %v1253_v40, %v3278_v39  ;;  %v1261_v53 = vmul.f32 %v1253_v40, %v3273_v2 }
 0x52f   :  { %v3371_v38 = vpop.xlane.xlu1 %1248 }
 0x530   :  { %v3369_v57 = vadd.f32 %v1260_v50, %v1256_v15  ;;  %v3373_v59 = vadd.f32 %v1261_v53, %v1257_v20  ;;  %v1255_v60 = vmul.f32 %v2691_v25, %v3371_v38 }
 0x532   :  { %1332 = vmatprep.mubr.f32.mxu0 %v3373_v59  ;;  %v1262_v26 = vmul.f32 %v1255_v60, %v3295_v51  ;;  %v1263_v33 = vmul.f32 %v1255_v60, %v3289_v46 }
 0x533   :  { %1333 = vmatmul.mubr.f32.vlgmr.msra.gmra.mrb[12].mxu0 %v3369_v57 }
 0x534   :  { %2385 = vmatpush1.bf16.msra.mxu0 %v3071_v56  ;;  %v3383_v41 = vadd.f32 %v1263_v33, %v1259_v34  ;;  %v3385_v3 = vadd.f32 %v1262_v26, %v1258_v35 }
 0x535   :  { %2387 = vmatprep.subr.bf16.mxu0 %v3073_v58 }
 0x536   :  { %1338 = vmatprep.mubr.f32.mxu0 %v3383_v41 }
 0x537   :  { %1339 = vmatmul.mubr.f32.gmra.mrb[14].mxu0 %v3385_v3 }
 0x538   :  { %2389 = vmatpush1.bf16.msra.mxu0 %v3076_v63 }
 0x539   :  { %2391 = vmatprep.subr.bf16.mxu0 %v3079_v0 }
 0x53c   :  { %2393 = vmatpush1.bf16.msra.mxu0 %v3082_v5 }
 0x53d   :  { %2395 = vmatprep.subr.bf16.mxu0 %v3085_v6 }
 0x540   :  { %2397 = vmatpush1.bf16.msra.mxu0 %v3088_v11 }
 0x541   :  { %2399 = vmatprep.subr.bf16.mxu0 %v3091_v12 }
 0x544   :  { %2401 = vmatpush1.bf16.msra.mxu0 %v3094_v17 }
 0x545   :  { %2403 = vmatprep.subr.bf16.mxu0 %v3097_v18 }
 0x548   :  { %2405 = vmatpush1.bf16.msra.mxu0 %v3100_v23 }
 0x549   :  { %2407 = vmatprep.subr.bf16.mxu0 %v3103_v24 }
 0x54c   :  { %2409 = vmatpush1.bf16.msra.mxu0 %v3106_v29 }
 0x54d   :  { %2411 = vmatprep.subr.bf16.mxu0 %v3109_v30 }
 0x550   :  { %2413 = vmatpush1.bf16.msra.mxu0 %v3112_v36 }
 0x551   :  { %2415 = vmatprep.subr.bf16.mxu0 %v3115_v37 }
 0x554   :  { %2417 = vmatpush1.bf16.msra.mxu0 %v3118_v42 }
 0x555   :  { %2419 = vmatprep.subr.bf16.mxu0 %v3121_v43 }
 0x558   :  { %2421 = vmatpush1.bf16.msra.mxu0 %v3124_v48 }
 0x559   :  { %2423 = vmatprep.subr.bf16.mxu0 %v3127_v49 }
 0x55c   :  { %2425 = vmatpush1.bf16.msra.mxu0 %v3135_v55 }
 0x55d   :  { %2427 = vmatprep.subr.bf16.mxu0 %v3138_v61 }
 0x560   :  { %2429 = vmatpush1.bf16.msra.mxu0 %v3143_v8 }
 0x561   :  { %2431 = vmatprep.subr.bf16.mxu0 %v3151_v21 }
 0x564   :  { %2433 = vmatpush1.bf16.msra.mxu0 %v3156_v47 }
 0x565   :  { %2435 = vmatprep.subr.bf16.mxu0 %v3158_v52 }
 0x568   :  { %2437 = vmatpush1.bf16.msra.mxu0 %v3161_v10 }
 0x569   :  { %2439 = vmatprep.subr.bf16.mxu0 %v3164_v14 }
 0x56c   :  { %2441 = vmatpush1.bf16.msra.mxu0 %v3167_v28 }
 0x56d   :  { %2443 = vmatprep.subr.bf16.mxu0 %v3181_v44  ;;  %v1224_v44 = vmul.f32 %v3334_v54, %v3278_v39 }
 0x570   :  { %2445 = vmatpush1.bf16.msra.mxu0 %v3184_v45 }
 0x571   :  { %2511 = vmatprep.subr.bf16.mxu0 %v3065_v32 }
 0x606   :  { %v1334_v19 = vpop.f32.mrb[12].mxu0 }
 0x607   :  { %v1345_v40 = vmul.f32 %v1334_v19, %v3369_v57  ;;  %v1336_v15 = vpop.f32.mrb[13].mxu0 }
 0x608   :  { %v1346_v50 = vmul.f32 %v1336_v15, %v3373_v59 }
 0x60a   :  { %v1349_v53 = vadd.f32 %v1346_v50, %v1345_v40  ;;  %v1340_v20 = vpop.f32.mrb[14].mxu0  ;;  %v1225_v40 = vmul.f32 %v3334_v54, %v3273_v2 }
 0x60b   :  { %v1347_v25 = vmul.f32 %v1340_v20, %v3385_v3  ;;  %v1342_v60 = vpop.f32.mrb[15].mxu0 }
 0x60c   :  { %1350 = vadd.xlane.f32.xlu0 %v1349_v53  ;;  %v1348_v26 = vmul.f32 %v1342_v60, %v3383_v41  ;;  %v1226_v53 = vmul.f32 %v3338_v62, %v3295_v51 }
 0x60e   :  { %v1352_v33 = vadd.f32 %v1348_v26, %v1347_v25  ;;  %v1227_v25 = vmul.f32 %v3338_v62, %v3289_v46  ;;  %v1228_v26 = vadd.f32 %v1224_v44, %v3224_v4 }
 0x610   :  { %1353 = vadd.xlane.f32.xlu1 %v1352_v33  ;;  %v1229_v33 = vadd.f32 %v1225_v40, %v3222_v1  ;;  %v1231_v62 = vadd.f32 %v1227_v25, %v3226_v9 }
 0x699   :  { %v1351_v34 = vpop.xlane.xlu0 %1350 }
 0x69a   :  { %v1355_v35 = vmax.f32 %v1351_v34, 1e-30 }
 0x69c   :  { %2692 = vrcp.f32 %v1355_v35 }
 0x69d   :  { %v1354_v32 = vpop.xlane.xlu1 %1353 }
 0x69e   :  { %v1356_v45 = vmax.f32 %v1354_v32, 1e-30 }
 0x6a0   :  { %2694 = vrcp.f32 %v1356_v45 }
 0x6a6   :  { %v2693_v50 = vpop.eup %2692 }
 0x6a7   :  { %v1358_v28 = vmul.f32 %v2693_v50, %v3362_v22 }
 0x6a9   :  { %v1361_v45 = vmul.f32 %v1358_v28, %v3369_v57  ;;  %v1362_v39 = vmul.f32 %v1358_v28, %v3373_v59  ;;  %v1369_v34 = vmul.f32 %v1358_v28, %v1334_v19  ;;  %v1370_v35 = vmul.f32 %v1358_v28, %v1336_v15 }
 0x6aa   :  { %v2695_v2 = vpop.eup %2694  ;;  %v1230_v28 = vadd.f32 %v1226_v53, %v3232_v13 }
 0x6ab   :  { %v3438_v54 = vadd.f32 %v1369_v34, %v3341_v7  ;;  %v3441_v32 = vadd.f32 %v1370_v35, %v3344_v16  ;;  %v3443_v51 = vadd.f32 %v1361_v45, %v1228_v26  ;;  %v3445_v46 = vadd.f32 %v1362_v39, %v1229_v33 }
 0x6ac   :  { %v1360_v44 = vmul.f32 %v2695_v2, %v3371_v38 }
 0x6ad   :  { %v1377_v1 = vmul.f32 %v3438_v54, %v3438_v54  ;;  %v1378_v4 = vmul.f32 %v3441_v32, %v3441_v32  ;;  %v1393_v39 = vsub.f32 0.0, %v3438_v54  ;;  %v1394_v2 = vsub.f32 0.0, %v3441_v32 }
 0x6ae   :  { %v1363_v7 = vmul.f32 %v1360_v44, %v3385_v3  ;;  %v1364_v16 = vmul.f32 %v1360_v44, %v3383_v41  ;;  %v1371_v19 = vmul.f32 %v1360_v44, %v1340_v20  ;;  %v1372_v15 = vmul.f32 %v1360_v44, %v1342_v60 }
 0x6af   :  { %v1381_v40 = vadd.f32 %v1378_v4, %v1377_v1  ;;  %v1387_v60 = vmax.f32 %v3362_v22, 1e-30 }
 0x6b0   :  { %v3457_v50 = vadd.f32 %v1371_v19, %v3353_v31  ;;  %v3460_v26 = vadd.f32 %v1372_v15, %v3356_v27  ;;  %v3462_v33 = vadd.f32 %v1363_v7, %v1230_v28  ;;  %v3464_v45 = vadd.f32 %v1364_v16, %v1231_v62  ;;  %v3767_v19 = vld [vmem:[#allocation23_spill] sm:$0xff] }
 0x6b1   :  { %1382 = vadd.xlane.f32.xlu0 %v1381_v40  ;;  %2696 = vrcp.f32 %v1387_v60  ;;  %v1388_v31 = vmax.f32 %v3371_v38, 1e-30 }
 0x6b2   :  { %v1379_v9 = vmul.f32 %v3457_v50, %v3457_v50  ;;  %v1380_v13 = vmul.f32 %v3460_v26, %v3460_v26 }
 0x6b3   :  { %2698 = vrcp.f32 %v1388_v31 }
 0x6b4   :  { %v1384_v20 = vadd.f32 %v1380_v13, %v1379_v9 }
 0x6b6   :  { %1385 = vadd.xlane.f32.xlu1 %v1384_v20 }
 0x6bb   :  { %v2697_v27 = vpop.eup %2696 }
 0x6bd   :  { %v2699_v44 = vpop.eup %2698 }
 0x73e   :  { %v3472_v53 = vpop.xlane.xlu0 %1382 }
 0x73f   :  { %v1390_v25 = vmul.f32 %v2697_v27, %v3472_v53 }
 0x741   :  { %v1397_v34 = vmul.f32 %v1390_v25, %v3369_v57  ;;  %v1398_v35 = vmul.f32 %v1390_v25, %v3373_v59  ;;  %v1396_v57 = vsub.f32 0.0, %v3460_v26  ;;  %v1395_v59 = vsub.f32 0.0, %v3457_v50 }
 0x743   :  { %v3479_v1 = vadd.f32 %v1397_v34, %v1393_v39  ;;  %v3481_v22 = vpop.xlane.xlu1 %1385  ;;  %v3483_v38 = vadd.f32 %v1398_v35, %v1394_v2 }
 0x744   :  { %v1392_v4 = vmul.f32 %v2699_v44, %v3481_v22 }
 0x745   :  { %1469 = vmatprep.mubr.f32.mxu1 %v3483_v38 }
 0x746   :  { %v1399_v28 = vmul.f32 %v1392_v4, %v3385_v3  ;;  %v1400_v62 = vmul.f32 %v1392_v4, %v3383_v41  ;;  %1470 = vmatmul.mubr.f32.vlgmr.msra.gmra.mrb[12].mxu1 %v3479_v1  ;;  %v3765_v41 = vld [vmem:[#allocation21_spill] sm:$0xff]  ;;  %v3766_v3 = vld [vmem:[#allocation22_spill] sm:$0xff] }
 0x747   :  { %2449 = vmatpush1.bf16.msra.mxu1 %v3071_v56 }
 0x748   :  { %v3493_v7 = vadd.f32 %v1400_v62, %v1396_v57  ;;  %v3495_v16 = vadd.f32 %v1399_v28, %v1395_v59  ;;  %2451 = vmatprep.subr.bf16.mxu1 %v3073_v58 }
 0x74a   :  { %1475 = vmatprep.mubr.f32.mxu1 %v3493_v7 }
 0x74b   :  { %1476 = vmatmul.mubr.f32.gmra.mrb[14].mxu1 %v3495_v16 }
 0x74c   :  { %2453 = vmatpush1.bf16.msra.mxu1 %v3076_v63 }
 0x74d   :  { %2455 = vmatprep.subr.bf16.mxu1 %v3079_v0 }
 0x750   :  { %2457 = vmatpush1.bf16.msra.mxu1 %v3082_v5 }
 0x751   :  { %2459 = vmatprep.subr.bf16.mxu1 %v3085_v6 }
 0x754   :  { %2461 = vmatpush1.bf16.msra.mxu1 %v3088_v11 }
 0x755   :  { %2463 = vmatprep.subr.bf16.mxu1 %v3091_v12 }
 0x758   :  { %2465 = vmatpush1.bf16.msra.mxu1 %v3094_v17 }
 0x759   :  { %2467 = vmatprep.subr.bf16.mxu1 %v3097_v18 }
 0x75c   :  { %2469 = vmatpush1.bf16.msra.mxu1 %v3100_v23 }
 0x75d   :  { %2471 = vmatprep.subr.bf16.mxu1 %v3103_v24 }
 0x760   :  { %2473 = vmatpush1.bf16.msra.mxu1 %v3106_v29 }
 0x761   :  { %2475 = vmatprep.subr.bf16.mxu1 %v3109_v30 }
 0x764   :  { %2477 = vmatpush1.bf16.msra.mxu1 %v3112_v36 }
 0x765   :  { %2479 = vmatprep.subr.bf16.mxu1 %v3115_v37 }
 0x768   :  { %2481 = vmatpush1.bf16.msra.mxu1 %v3118_v42 }
 0x769   :  { %2483 = vmatprep.subr.bf16.mxu1 %v3121_v43 }
 0x76c   :  { %2485 = vmatpush1.bf16.msra.mxu1 %v3124_v48 }
 0x76d   :  { %2487 = vmatprep.subr.bf16.mxu1 %v3127_v49 }
 0x770   :  { %2489 = vmatpush1.bf16.msra.mxu1 %v3135_v55 }
 0x771   :  { %2491 = vmatprep.subr.bf16.mxu1 %v3138_v61 }
 0x774   :  { %2493 = vmatpush1.bf16.msra.mxu1 %v3143_v8 }
 0x775   :  { %2495 = vmatprep.subr.bf16.mxu1 %v3151_v21 }
 0x778   :  { %2497 = vmatpush1.bf16.msra.mxu1 %v3156_v47 }
 0x779   :  { %2499 = vmatprep.subr.bf16.mxu1 %v3158_v52 }
 0x77c   :  { %2501 = vmatpush1.bf16.msra.mxu1 %v3161_v10 }
 0x77d   :  { %2503 = vmatprep.subr.bf16.mxu1 %v3164_v14 }
 0x780   :  { %2505 = vmatpush1.bf16.msra.mxu1 %v3765_v41 }
 0x781   :  { %2507 = vmatprep.subr.bf16.mxu1 %v3766_v3 }
 0x784   :  { %2509 = vmatpush1.bf16.msra.mxu1 %v3767_v19 }
 0x819   :  { %v1471_v15 = vpop.f32.mrb[12].mxu1 }
 0x81a   :  { %v1482_v40 = vmul.f32 %v1471_v15, %v3479_v1  ;;  %v1473_v9 = vpop.f32.mrb[13].mxu1 }
 0x81b   :  { %v1483_v13 = vmul.f32 %v1473_v9, %v3483_v38 }
 0x81d   :  { %v1486_v20 = vadd.f32 %v1483_v13, %v1482_v40 }
 0x81e   :  { %v1477_v60 = vpop.f32.mrb[14].mxu1 }
 0x81f   :  { %v1484_v31 = vmul.f32 %v1477_v60, %v3495_v16  ;;  %v1479_v27 = vpop.f32.mrb[15].mxu1  ;;  %1487 = vadd.xlane.f32.xlu0 %v1486_v20 }
 0x820   :  { %v1485_v25 = vmul.f32 %v1479_v27, %v3493_v7 }
 0x822   :  { %v1489_v39 = vadd.f32 %v1485_v25, %v1484_v31 }
 0x824   :  { %1490 = vadd.xlane.f32.xlu1 %v1489_v39 }
 0x8ac   :  { %v1488_v34 = vpop.xlane.xlu0 %1487 }
 0x8ad   :  { %v1492_v35 = vmax.f32 %v1488_v34, 1e-30 }
 0x8af   :  { %2700 = vrcp.f32 %v1492_v35 }
 0x8b1   :  { %v1491_v2 = vpop.xlane.xlu1 %1490 }
 0x8b2   :  { %v1493_v44 = vmax.f32 %v1491_v2, 1e-30 }
 0x8b4   :  { %2702 = vrcp.f32 %v1493_v44 }
 0x8b9   :  { %v2701_v4 = vpop.eup %2700 }
 0x8ba   :  { %v1495_v28 = vmul.f32 %v2701_v4, %v3472_v53 }
 0x8bc   :  { %v1506_v62 = vmul.f32 %v1495_v28, %v1471_v15  ;;  %v1507_v57 = vmul.f32 %v1495_v28, %v1473_v9  ;;  %v1498_v59 = vmul.f32 %v1495_v28, %v3479_v1  ;;  %v1499_v40 = vmul.f32 %v1495_v28, %v3483_v38 }
 0x8be   :  { %v2703_v13 = vpop.eup %2702  ;;  %v3537_v20 = vadd.f32 %v1506_v62, %v3438_v54  ;;  %v3540_v31 = vadd.f32 %v1507_v57, %v3441_v32  ;;  %v3543_v25 = vadd.f32 %v1498_v59, %v3443_v51  ;;  %v3546_v39 = vadd.f32 %v1499_v40, %v3445_v46 }
 0x8bf   :  { %v1497_v15 = vmul.f32 %v2703_v13, %v3481_v22 }
 0x8c0   :  { %v1514_v9 = vmul.f32 %v3537_v20, %v3537_v20  ;;  %v1515_v34 = vmul.f32 %v3540_v31, %v3540_v31  ;;  %v1530_v59 = vsub.f32 0.0, %v3537_v20 }
 0x8c1   :  { %v1508_v35 = vmul.f32 %v1497_v15, %v1477_v60  ;;  %v1509_v54 = vmul.f32 %v1497_v15, %v1479_v27  ;;  %v1500_v2 = vmul.f32 %v1497_v15, %v3495_v16  ;;  %v1501_v32 = vmul.f32 %v1497_v15, %v3493_v7 }
 0x8c2   :  { %v1518_v44 = vadd.f32 %v1515_v34, %v1514_v9  ;;  %v1531_v15 = vsub.f32 0.0, %v3540_v31 }
 0x8c3   :  { %v3556_v51 = vadd.f32 %v1508_v35, %v3457_v50  ;;  %v3559_v46 = vadd.f32 %v1509_v54, %v3460_v26  ;;  %v3562_v4 = vadd.f32 %v1500_v2, %v3462_v33  ;;  %v3565_v28 = vadd.f32 %v1501_v32, %v3464_v45 }
 0x8c4   :  { %1519 = vadd.xlane.f32.xlu0 %v1518_v44  ;;  %v1524_v50 = vmax.f32 %v3472_v53, 1e-30  ;;  %v1525_v26 = vmax.f32 %v3481_v22, 1e-30 }
 0x8c5   :  { %v1516_v60 = vmul.f32 %v3556_v51, %v3556_v51  ;;  %v1517_v27 = vmul.f32 %v3559_v46, %v3559_v46 }
 0x8c6   :  { %2704 = vrcp.f32 %v1524_v50 }
 0x8c7   :  { %v1521_v62 = vadd.f32 %v1517_v27, %v1516_v60  ;;  %2706 = vrcp.f32 %v1525_v26 }
 0x8c9   :  { %1522 = vadd.xlane.f32.xlu1 %v1521_v62 }
 0x8d0   :  { %v2705_v33 = vpop.eup %2704 }
 0x8d1   :  { %v2707_v9 = vpop.eup %2706 }
 0x951   :  { %v3573_v57 = vpop.xlane.xlu0 %1519 }
 0x952   :  { %v1527_v45 = vmul.f32 %v2705_v33, %v3573_v57 }
 0x954   :  { %v1534_v40 = vmul.f32 %v1527_v45, %v3479_v1  ;;  %v1535_v13 = vmul.f32 %v1527_v45, %v3483_v38  ;;  %v1533_v1 = vsub.f32 0.0, %v3559_v46  ;;  %v1532_v38 = vsub.f32 0.0, %v3556_v51 }
 0x956   :  { %v3580_v34 = vadd.f32 %v1534_v40, %v1530_v59  ;;  %v3582_v53 = vpop.xlane.xlu1 %1522  ;;  %v3584_v22 = vadd.f32 %v1535_v13, %v1531_v15 }
 0x957   :  { %v1529_v35 = vmul.f32 %v2707_v9, %v3582_v53 }
 0x958   :  { %1606 = vmatprep.mubr.f32.mxu0 %v3584_v22 }
 0x959   :  { %v1536_v54 = vmul.f32 %v1529_v35, %v3495_v16  ;;  %v1537_v2 = vmul.f32 %v1529_v35, %v3493_v7  ;;  %1607 = vmatmul.mubr.f32.vlgmr.msra.gmra.mrb[16].mxu0 %v3580_v34 }
 0x95a   :  { %2513 = vmatpush1.bf16.msra.mxu0 %v3071_v56 }
 0x95b   :  { %v3594_v32 = vadd.f32 %v1537_v2, %v1533_v1  ;;  %v3596_v44 = vadd.f32 %v1536_v54, %v1532_v38  ;;  %2515 = vmatprep.subr.bf16.mxu0 %v3073_v58 }
 0x95d   :  { %1612 = vmatprep.mubr.f32.mxu0 %v3594_v32 }
 0x95e   :  { %1613 = vmatmul.mubr.f32.gmra.mrb[18].mxu0 %v3596_v44 }
 0x95f   :  { %2517 = vmatpush1.bf16.msra.mxu0 %v3076_v63 }
 0x960   :  { %2519 = vmatprep.subr.bf16.mxu0 %v3079_v0 }
 0x963   :  { %2521 = vmatpush1.bf16.msra.mxu0 %v3082_v5 }
 0x964   :  { %2523 = vmatprep.subr.bf16.mxu0 %v3085_v6 }
 0x967   :  { %2525 = vmatpush1.bf16.msra.mxu0 %v3088_v11 }
 0x968   :  { %2527 = vmatprep.subr.bf16.mxu0 %v3091_v12 }
 0x96b   :  { %2529 = vmatpush1.bf16.msra.mxu0 %v3094_v17 }
 0x96c   :  { %2531 = vmatprep.subr.bf16.mxu0 %v3097_v18 }
 0x96f   :  { %2533 = vmatpush1.bf16.msra.mxu0 %v3100_v23 }
 0x970   :  { %2535 = vmatprep.subr.bf16.mxu0 %v3103_v24 }
 0x973   :  { %2537 = vmatpush1.bf16.msra.mxu0 %v3106_v29 }
 0x974   :  { %2539 = vmatprep.subr.bf16.mxu0 %v3109_v30 }
 0x977   :  { %2541 = vmatpush1.bf16.msra.mxu0 %v3112_v36 }
 0x978   :  { %2543 = vmatprep.subr.bf16.mxu0 %v3115_v37 }
 0x97b   :  { %2545 = vmatpush1.bf16.msra.mxu0 %v3118_v42 }
 0x97c   :  { %2547 = vmatprep.subr.bf16.mxu0 %v3121_v43 }
 0x97f   :  { %2549 = vmatpush1.bf16.msra.mxu0 %v3124_v48 }
 0x980   :  { %2551 = vmatprep.subr.bf16.mxu0 %v3127_v49 }
 0x983   :  { %2553 = vmatpush1.bf16.msra.mxu0 %v3135_v55 }
 0x984   :  { %2555 = vmatprep.subr.bf16.mxu0 %v3138_v61 }
 0x987   :  { %2557 = vmatpush1.bf16.msra.mxu0 %v3143_v8 }
 0x988   :  { %2559 = vmatprep.subr.bf16.mxu0 %v3151_v21 }
 0x98b   :  { %2561 = vmatpush1.bf16.msra.mxu0 %v3156_v47 }
 0x98c   :  { %2563 = vmatprep.subr.bf16.mxu0 %v3158_v52 }
 0x98f   :  { %2565 = vmatpush1.bf16.msra.mxu0 %v3161_v10 }
 0x990   :  { %2567 = vmatprep.subr.bf16.mxu0 %v3164_v14 }
 0x993   :  { %2569 = vmatpush1.bf16.msra.mxu0 %v3765_v41 }
 0x994   :  { %2571 = vmatprep.subr.bf16.mxu0 %v3766_v3 }
 0x997   :  { %2573 = vmatpush1.bf16.msra.mxu0 %v3767_v19 }
 0xa2c   :  { %v1608_v56 = vpop.f32.mrb[16].mxu0 }
 0xa2d   :  { %v1619_v58 = vmul.f32 %v1608_v56, %v3580_v34  ;;  %v1610_v63 = vpop.f32.mrb[17].mxu0 }
 0xa2e   :  { %v1620_v0 = vmul.f32 %v1610_v63, %v3584_v22 }
 0xa30   :  { %v1623_v5 = vadd.f32 %v1620_v0, %v1619_v58 }
 0xa31   :  { %v1614_v6 = vpop.f32.mrb[18].mxu0 }
 0xa32   :  { %v1621_v11 = vmul.f32 %v1614_v6, %v3596_v44  ;;  %v1616_v12 = vpop.f32.mrb[19].mxu0  ;;  %1624 = vadd.xlane.f32.xlu0 %v1623_v5 }
 0xa33   :  { %v1622_v17 = vmul.f32 %v1616_v12, %v3594_v32 }
 0xa35   :  { %v1626_v18 = vadd.f32 %v1622_v17, %v1621_v11 }
 0xa37   :  { %1627 = vadd.xlane.f32.xlu1 %v1626_v18 }
 0xabf   :  { %v1625_v23 = vpop.xlane.xlu0 %1624 }
 0xac0   :  { %v1629_v24 = vmax.f32 %v1625_v23, 1e-30 }
 0xac2   :  { %2708 = vrcp.f32 %v1629_v24 }
 0xac4   :  { %v1628_v29 = vpop.xlane.xlu1 %1627 }
 0xac5   :  { %v1630_v30 = vmax.f32 %v1628_v29, 1e-30 }
 0xac7   :  { %2710 = vrcp.f32 %v1630_v30 }
 0xacc   :  { %v2709_v36 = vpop.eup %2708 }
 0xacd   :  { %v1632_v37 = vmul.f32 %v2709_v36, %v3573_v57 }
 0xacf   :  { %v1643_v42 = vmul.f32 %v1632_v37, %v1608_v56  ;;  %v1644_v43 = vmul.f32 %v1632_v37, %v1610_v63  ;;  %v1635_v48 = vmul.f32 %v1632_v37, %v3580_v34  ;;  %v1636_v49 = vmul.f32 %v1632_v37, %v3584_v22 }
 0xad1   :  { %v2711_v55 = vpop.eup %2710  ;;  %v3638_v61 = vadd.f32 %v1643_v42, %v3537_v20  ;;  %v3641_v8 = vadd.f32 %v1644_v43, %v3540_v31  ;;  %v3644_v21 = vadd.f32 %v1635_v48, %v3543_v25  ;;  %v3647_v47 = vadd.f32 %v1636_v49, %v3546_v39 }
 0xad2   :  { %v1634_v52 = vmul.f32 %v2711_v55, %v3582_v53 }
 0xad3   :  { %v1651_v10 = vmul.f32 %v3638_v61, %v3638_v61  ;;  %v1652_v14 = vmul.f32 %v3641_v8, %v3641_v8  ;;  %v1667_v26 = vsub.f32 0.0, %v3638_v61  ;;  %v1668_v59 = vsub.f32 0.0, %v3641_v8 }
 0xad4   :  { %v1645_v7 = vmul.f32 %v1634_v52, %v1614_v6  ;;  %v1646_v16 = vmul.f32 %v1634_v52, %v1616_v12  ;;  %v1637_v41 = vmul.f32 %v1634_v52, %v3596_v44  ;;  %v1638_v3 = vmul.f32 %v1634_v52, %v3594_v32 }
 0xad5   :  { %v1655_v19 = vadd.f32 %v1652_v14, %v1651_v10 }
 0xad6   :  { %v3657_v20 = vadd.f32 %v1645_v7, %v3556_v51  ;;  %v3660_v31 = vadd.f32 %v1646_v16, %v3559_v46  ;;  %v3663_v25 = vadd.f32 %v1637_v41, %v3562_v4  ;;  %v3666_v39 = vadd.f32 %v1638_v3, %v3565_v28 }
 0xad7   :  { %1656 = vadd.xlane.f32.xlu0 %v1655_v19  ;;  %v1661_v51 = vmax.f32 %v3573_v57, 1e-30  ;;  %v1662_v46 = vmax.f32 %v3582_v53, 1e-30 }
 0xad8   :  { %v1653_v60 = vmul.f32 %v3657_v20, %v3657_v20  ;;  %v1654_v27 = vmul.f32 %v3660_v31, %v3660_v31 }
 0xad9   :  { %2712 = vrcp.f32 %v1661_v51 }
 0xada   :  { %v1658_v62 = vadd.f32 %v1654_v27, %v1653_v60  ;;  %2714 = vrcp.f32 %v1662_v46 }
 0xadc   :  { %1659 = vadd.xlane.f32.xlu1 %v1658_v62 }
 0xae3   :  { %v2713_v4 = vpop.eup %2712 }
 0xae4   :  { %v2715_v40 = vpop.eup %2714 }
 0xb64   :  { %v3674_v50 = vpop.xlane.xlu0 %1656 }
 0xb65   :  { %v1664_v28 = vmul.f32 %v2713_v4, %v3674_v50  ;;  %v1798_v51 = vmax.f32 %v3674_v50, 1e-30 }
 0xb67   :  { %v1671_v33 = vmul.f32 %v1664_v28, %v3580_v34  ;;  %v1672_v45 = vmul.f32 %v1664_v28, %v3584_v22  ;;  %v1670_v34 = vsub.f32 0.0, %v3660_v31  ;;  %v1669_v22 = vsub.f32 0.0, %v3657_v20 }
 0xb69   :  { %v3681_v13 = vadd.f32 %v1671_v33, %v1667_v26  ;;  %v1660_v57 = vpop.xlane.xlu1 %1659  ;;  %v3683_v15 = vadd.f32 %v1672_v45, %v1668_v59 }
 0xb6a   :  { %v1666_v9 = vmul.f32 %v2715_v40, %v1660_v57  ;;  %v1799_v46 = vmax.f32 %v1660_v57, 1e-30 }
 0xb6b   :  { %1743 = vmatprep.mubr.f32.mxu1 %v3683_v15 }
 0xb6c   :  { %v1673_v53 = vmul.f32 %v1666_v9, %v3596_v44  ;;  %v1674_v35 = vmul.f32 %v1666_v9, %v3594_v32  ;;  %1744 = vmatmul.mubr.f32.vlgmr.msra.gmra.mrb[16].mxu1 %v3681_v13 }
 0xb6e   :  { %v3691_v54 = vadd.f32 %v1674_v35, %v1670_v34  ;;  %v3693_v2 = vadd.f32 %v1673_v53, %v1669_v22 }
 0xb70   :  { %1749 = vmatprep.mubr.f32.mxu1 %v3691_v54 }
 0xb71   :  { %1750 = vmatmul.mubr.f32.gmra.mrb[18].mxu1 %v3693_v2 }
 0xc3f   :  { %v1745_v1 = vpop.f32.mrb[16].mxu1 }
 0xc40   :  { %v1756_v38 = vmul.f32 %v1745_v1, %v3681_v13  ;;  %v1747_v44 = vpop.f32.mrb[17].mxu1 }
 0xc41   :  { %v1757_v32 = vmul.f32 %v1747_v44, %v3683_v15 }
 0xc43   :  { %v1760_v56 = vadd.f32 %v1757_v32, %v1756_v38 }
 0xc44   :  { %v1751_v58 = vpop.f32.mrb[18].mxu1 }
 0xc45   :  { %v1758_v63 = vmul.f32 %v1751_v58, %v3693_v2  ;;  %v1753_v0 = vpop.f32.mrb[19].mxu1  ;;  %1761 = vadd.xlane.f32.xlu0 %v1760_v56 }
 0xc46   :  { %v1759_v5 = vmul.f32 %v1753_v0, %v3691_v54 }
 0xc48   :  { %v1763_v6 = vadd.f32 %v1759_v5, %v1758_v63 }
 0xc4a   :  { %1764 = vadd.xlane.f32.xlu1 %v1763_v6 }
 0xcd2   :  { %v1762_v11 = vpop.xlane.xlu0 %1761 }
 0xcd3   :  { %v1766_v12 = vmax.f32 %v1762_v11, 1e-30 }
 0xcd5   :  { %2716 = vrcp.f32 %v1766_v12 }
 0xcd7   :  { %v1765_v17 = vpop.xlane.xlu1 %1764 }
 0xcd8   :  { %v1767_v18 = vmax.f32 %v1765_v17, 1e-30 }
 0xcda   :  { %2718 = vrcp.f32 %v1767_v18 }
 0xcdb   :  { %2720 = vrcp.f32 %v1798_v51 }
 0xcdc   :  { %2722 = vrcp.f32 %v1799_v46 }
 0xcdf   :  { %v2717_v23 = vpop.eup %2716 }
 0xce0   :  { %v1769_v24 = vmul.f32 %v2717_v23, %v3674_v50 }
 0xce2   :  { %v1780_v29 = vmul.f32 %v1769_v24, %v1745_v1  ;;  %v1781_v30 = vmul.f32 %v1769_v24, %v1747_v44  ;;  %v1772_v36 = vmul.f32 %v1769_v24, %v3681_v13  ;;  %v1773_v37 = vmul.f32 %v1769_v24, %v3683_v15 }
 0xce4   :  { %v2719_v42 = vpop.eup %2718  ;;  %v1784_v43 = vadd.f32 %v1780_v29, %v3638_v61  ;;  %v1785_v48 = vadd.f32 %v1781_v30, %v3641_v8  ;;  %v3707_v49 = vadd.f32 %v1772_v36, %v3644_v21  ;;  %v3710_v55 = vadd.f32 %v1773_v37, %v3647_v47 }
 0xce5   :  { %v1771_v52 = vmul.f32 %v2719_v42, %v1660_v57  ;;  %v2721_v4 = vpop.eup %2720 }
 0xce6   :  { %v1788_v10 = vmul.f32 %v1784_v43, %v1784_v43  ;;  %v1789_v14 = vmul.f32 %v1785_v48, %v1785_v48  ;;  %v2723_v33 = vpop.eup %2722 }
 0xce7   :  { %v1782_v7 = vmul.f32 %v1771_v52, %v1751_v58  ;;  %v1783_v16 = vmul.f32 %v1771_v52, %v1753_v0  ;;  %v1774_v41 = vmul.f32 %v1771_v52, %v3693_v2  ;;  %v1775_v3 = vmul.f32 %v1771_v52, %v3691_v54 }
 0xce8   :  { %v1792_v19 = vadd.f32 %v1789_v14, %v1788_v10 }
 0xce9   :  { %v1786_v61 = vadd.f32 %v1782_v7, %v3657_v20  ;;  %v1787_v8 = vadd.f32 %v1783_v16, %v3660_v31  ;;  %v3717_v21 = vadd.f32 %v1774_v41, %v3663_v25  ;;  %v3720_v47 = vadd.f32 %v1775_v3, %v3666_v39 }
 0xcea   :  { %1793 = vadd.xlane.f32.xlu0 %v1792_v19  ;;  %v1804_v31 = vsub.f32 0.0, %v1784_v43  ;;  %v1805_v39 = vsub.f32 0.0, %v1785_v48 }
 0xceb   :  { %v1790_v60 = vmul.f32 %v1786_v61, %v1786_v61  ;;  %v1791_v27 = vmul.f32 %v1787_v8, %v1787_v8  ;;  %v1807_v53 = vsub.f32 0.0, %v1787_v8  ;;  %v1806_v35 = vsub.f32 0.0, %v1786_v61 }
 0xced   :  { %v1795_v62 = vadd.f32 %v1791_v27, %v1790_v60 }
 0xcef   :  { %1796 = vadd.xlane.f32.xlu1 %v1795_v62 }
 0xd77   :  { %v1794_v20 = vpop.xlane.xlu0 %1793 }
 0xd78   :  { %v1801_v28 = vmul.f32 %v2721_v4, %v1794_v20 }
 0xd7a   :  { %v1808_v25 = vmul.f32 %v1801_v28, %v3681_v13  ;;  %v1809_v26 = vmul.f32 %v1801_v28, %v3683_v15 }
 0xd7c   :  { %v1812_v45 = vadd.f32 %v1808_v25, %v1804_v31  ;;  %v1797_v59 = vpop.xlane.xlu1 %1796  ;;  %v1813_v40 = vadd.f32 %v1809_v26, %v1805_v39 }
 0xd7d   :  { %v1803_v9 = vmul.f32 %v2723_v33, %v1797_v59 }
 0xd7e   :  { %1880 = vmatprep.mubr.f32.mxu0 %v1813_v40 }
 0xd7f   :  { %v1810_v50 = vmul.f32 %v1803_v9, %v3693_v2  ;;  %v1811_v57 = vmul.f32 %v1803_v9, %v3691_v54  ;;  %1881 = vmatmul.mubr.f32.vlgmr.msra.gmra.mrb[20].mxu0 %v1812_v45 }
 0xd81   :  { %v1815_v34 = vadd.f32 %v1811_v57, %v1807_v53  ;;  %v1814_v22 = vadd.f32 %v1810_v50, %v1806_v35 }
 0xd83   :  { %1886 = vmatprep.mubr.f32.mxu0 %v1815_v34 }
 0xd84   :  { %1887 = vmatmul.mubr.f32.gmra.mrb[22].mxu0 %v1814_v22 }
 0xe52   :  { %v1882_v13 = vpop.f32.mrb[20].mxu0 }
 0xe53   :  { %v1893_v15 = vmul.f32 %v1882_v13, %v1812_v45  ;;  %v1884_v1 = vpop.f32.mrb[21].mxu0 }
 0xe54   :  { %v1894_v38 = vmul.f32 %v1884_v1, %v1813_v40 }
 0xe56   :  { %v1897_v44 = vadd.f32 %v1894_v38, %v1893_v15 }
 0xe57   :  { %v1888_v32 = vpop.f32.mrb[22].mxu0 }
 0xe58   :  { %v1895_v56 = vmul.f32 %v1888_v32, %v1814_v22  ;;  %v1890_v58 = vpop.f32.mrb[23].mxu0  ;;  %1898 = vadd.xlane.f32.xlu0 %v1897_v44 }
 0xe59   :  { %v1896_v63 = vmul.f32 %v1890_v58, %v1815_v34 }
 0xe5b   :  { %v1900_v2 = vadd.f32 %v1896_v63, %v1895_v56 }
 0xe5d   :  { %1901 = vadd.xlane.f32.xlu1 %v1900_v2 }
 0xee5   :  { %v1899_v54 = vpop.xlane.xlu0 %1898 }
 0xee6   :  { %v1903_v0 = vmax.f32 %v1899_v54, 1e-30 }
 0xee8   :  { %2724 = vrcp.f32 %v1903_v0 }
 0xeea   :  { %v1902_v5 = vpop.xlane.xlu1 %1901 }
 0xeeb   :  { %v1904_v6 = vmax.f32 %v1902_v5, 1e-30 }
 0xeed   :  { %2726 = vrcp.f32 %v1904_v6 }
 0xef2   :  { %v2725_v11 = vpop.eup %2724 }
 0xef3   :  { %v1906_v12 = vmul.f32 %v2725_v11, %v1794_v20 }
 0xef5   :  { %v1909_v17 = vmul.f32 %v1906_v12, %v1812_v45  ;;  %v1910_v18 = vmul.f32 %v1906_v12, %v1813_v40 }
 0xef7   :  { %v2727_v23 = vpop.eup %2726  ;;  %v1913_v24 = vadd.f32 %v1909_v17, %v3707_v49  ;;  %v1914_v29 = vadd.f32 %v1910_v18, %v3710_v55 }
 0xef8   :  { %v1908_v30 = vmul.f32 %v2727_v23, %v1797_v59 }
 0xef9   :  { %1917 = vst [vmem:[#allocation15] sm:$0xff] %v1913_v24  ;;  %1918 = vst [vmem:[#allocation15 + $0x8] sm:$0xff] %v1914_v29 }
 0xefa   :  { %v1911_v36 = vmul.f32 %v1908_v30, %v1814_v22  ;;  %v1912_v37 = vmul.f32 %v1908_v30, %v1815_v34 }
 0xefc   :  { %v1915_v42 = vadd.f32 %v1911_v36, %v3717_v21  ;;  %v1916_v43 = vadd.f32 %v1912_v37, %v3720_v47 }
 0xefe   :  { %1919 = vst [vmem:[#allocation15 + $0x10] sm:$0xff] %v1915_v42  ;;  %1920 = vst [vmem:[#allocation15 + $0x18] sm:$0xff] %v1916_v43 }
 0xeff   :  { %2871 = shalt.err (!%p2868_p10)
}
 0xf00   :  { %s2872_s30 = scalar_lea.hbm %s3755_s9, 512 }
 0xf01   :  { %p2873_p11 = scmp.ne.s32.totalorder %s3755_s9, %s2872_s30  ;;  %p2876_p12 = scmp.lt.u32.totalorder %s2872_s30, %s3755_s9 }
 0xf03   :  { %p2878_p13 = pnand %p2876_p12, %p2873_p11 }
 0xf05   :  { %2881 = shalt.err (!%p2878_p13)
}
 0xf06   :  { %1932 = dma.vmem_to_hbm [thread:$0]  %s1927_s28, 512, %s3755_s9, [#allocation6], %s2896_s2, %s2896_s2, %s2897_s10  }
 0xf07   :  { %2890 = dma.done.wait [#allocation6], 512  }
 0xf08   :  { %2891 = vsyncadd [#allocation6], 4294966784 }
 0xf09   :  { %1936 = vsyncpa [#allocation5], 1 }
 0xf0a   :  { %1937 = vsyncpa [#allocation8], 1 }
 0xf0b   :  { %1938 = vsyncpa [#allocation11], 1 }
 0xf0c   :  { %1939 = vsyncpa [#allocation14], 1 }
 0xf0d   :  { %1940 = vsyncpa [#allocation6], 1 }

</bundles_post_ra>
